<compile_context>
chip_gen: v6e
topology: v6e:2x2x1
jax: 0.10.0
libtpu: 0.0.40
codegen_flags: <defaults>
</compile_context>

<pallas_src>
import jax
import jax.numpy as jnp
from jax.experimental import pallas as pl
from jax.experimental.pallas import tpu as pltpu

Z_DIM = 100
HIDDEN = (256, 512, 1024)
IMAGE_DIM = 28 * 28        # 784, classic MNIST GAN
Z_PAD = 128                # 100 -> 128  (lane-aligned K for layer 1)
IMG_PAD = 896              # 784 -> 896 = 7*128 (lane-dense output stores)


def _round_up(n, m):
    return (n + m - 1) // m * m


def _leaky_relu(x, slope=0.2):
    return jnp.where(x > 0, x, slope * x)


def generator_kernel(x_ref,
                     w1_ref, b1_ref,
                     w2_ref, b2_ref,
                     w3_ref, b3_ref,
                     w4_ref, b4_ref,
                     o_ref):
    # 4 bf16 MXU matmuls with f32 accumulation; activations on the VPU in f32,
    # one bf16 cast per layer to feed the next matmul.
    h = x_ref[...]  # bf16 (TILE_B, 128)

    h = jnp.dot(h, w1_ref[...], preferred_element_type=jnp.float32) + b1_ref[...]
    h = _leaky_relu(h).astype(jnp.bfloat16)

    h = jnp.dot(h, w2_ref[...], preferred_element_type=jnp.float32) + b2_ref[...]
    h = _leaky_relu(h).astype(jnp.bfloat16)

    h = jnp.dot(h, w3_ref[...], preferred_element_type=jnp.float32) + b3_ref[...]
    h = _leaky_relu(h).astype(jnp.bfloat16)

    h = jnp.dot(h, w4_ref[...], preferred_element_type=jnp.float32) + b4_ref[...]
    o_ref[...] = jnp.tanh(h)  # padded columns: tanh(0) = 0, sliced off outside


def generator_forward(x, params):
    """x: (B, Z_DIM) f32. params: list of 4 (W_t, b): W_t (in, out) f32, b (1, out) f32."""
    batch = x.shape[0]
    (w1, b1), (w2, b2), (w3, b3), (w4, b4) = params

    # ---- zero-pad to 128-aligned dims (wrapper-side) ----
    # layer-1 K: 100 -> 128 (extra rows zero; extra x features also zero)
    w1p = jnp.zeros((Z_PAD, w1.shape[1]), w1.dtype).at[:Z_DIM, :].set(w1)
    # layer-4 N: 784 -> 896 (zero cols / zero bias so padding never leaks)
    w4p = jnp.zeros((w4.shape[0], IMG_PAD), w4.dtype).at[:, :IMAGE_DIM].set(w4)
    b4p = jnp.zeros((1, IMG_PAD), b4.dtype).at[:, :IMAGE_DIM].set(b4)

    weights = [w.astype(jnp.bfloat16) for w in (w1p, w2, w3, w4p)]
    biases = [b1, b2, b3, b4p]  # biases stay f32 (tiny; added to the f32 accumulator)

    # ---- batch tiling ----
    tile_b = min(256, _round_up(batch, 8))
    b_pad = _round_up(batch, tile_b)
    xp = jnp.zeros((b_pad, Z_PAD), jnp.bfloat16).at[:batch, :Z_DIM].set(
        x.astype(jnp.bfloat16))

    grid = (b_pad // tile_b,)

    def batch_map(i):
        return (i, 0)

    def const_map(i):          # weights/biases stay resident in VMEM across steps
        return (0, 0)

    in_specs = [pl.BlockSpec((tile_b, Z_PAD), batch_map)]
    flat = []
    for w, b in zip(weights, biases):
        in_specs.append(pl.BlockSpec(w.shape, const_map))
        in_specs.append(pl.BlockSpec(b.shape, const_map))
        flat.extend([w, b])

    out = pl.pallas_call(
        generator_kernel,
        out_shape=jax.ShapeDtypeStruct((b_pad, IMG_PAD), jnp.float32),
        grid_spec=pltpu.PrefetchScalarGridSpec(
            num_scalar_prefetch=0,
            grid=grid,
            in_specs=in_specs,
            out_specs=pl.BlockSpec((tile_b, IMG_PAD), batch_map),
        ),
        compiler_params=pltpu.CompilerParams(
            dimension_semantics=("parallel",),
            vmem_limit_bytes=24 << 20,
        ),
    )(xp, *flat)

    return out[:batch, :IMAGE_DIM]


generator_forward_jit = jax.jit(generator_forward)


def init_params(key):
    """Deterministic init mimicking PyTorch Linear default U(-1/sqrt(in), 1/sqrt(in))."""
    dims = (Z_DIM,) + HIDDEN + (IMAGE_DIM,)
    params = []
    for i in range(len(dims) - 1):
        fan_in, fan_out = dims[i], dims[i + 1]
        key, kw, kb = jax.random.split(key, 3)
        bound = 1.0 / (fan_in ** 0.5)
        # stored pre-transposed: (in, out)
        w_t = jax.random.uniform(kw, (fan_in, fan_out), jnp.float32, -bound, bound)
        b = jax.random.uniform(kb, (1, fan_out), jnp.float32, -bound, bound)
        params.append((w_t, b))
    return params


def generator_reference_f32(x, params):
    """Pure f32 reference (original module semantics)."""
    h = x
    for i, (w_t, b) in enumerate(params):
        h = h @ w_t + b
        h = _leaky_relu(h) if i < len(params) - 1 else jnp.tanh(h)
    return h


def generator_reference_bf16(x, params):
    """Reference mirroring the kernel's bf16 weight/activation casts."""
    h = x.astype(jnp.bfloat16)
    for i, (w_t, b) in enumerate(params):
        h = jnp.dot(h, w_t.astype(jnp.bfloat16),
                    preferred_element_type=jnp.float32) + b
        if i < len(params) - 1:
            h = _leaky_relu(h).astype(jnp.bfloat16)
        else:
            h = jnp.tanh(h)
    return h


if __name__ == "__main__":
    key = jax.random.PRNGKey(0)
    key, kx = jax.random.split(key)

    batch = 8
    x = jax.random.normal(kx, (batch, Z_DIM), jnp.float32)
    params = init_params(key)

    out = generator_forward_jit(x, params)
    out = jax.block_until_ready(out)
    assert out.shape == (batch, IMAGE_DIM), out.shape

    ref_bf16 = generator_reference_bf16(x, params)
    ref_f32 = generator_reference_f32(x, params)

    err_bf16 = float(jnp.max(jnp.abs(out - ref_bf16)))
    err_f32 = float(jnp.max(jnp.abs(out - ref_f32)))
    assert err_bf16 < 1e-2, err_bf16   # matches bf16-mirrored math closely
    assert err_f32 < 5e-2, err_f32     # within bf16 quantization of f32 semantics

    print("KERNEL_OK")
</pallas_src>

<mosaic_0001>
module attributes {stable_mosaic.version = 11 : i64} {
  func.func @generator_kernel(%arg0: i32, %arg1: memref<8x128xbf16, #tpu.memory_space<vmem>>, %arg2: memref<128x256xbf16, #tpu.memory_space<vmem>>, %arg3: memref<1x256xf32, #tpu.memory_space<vmem>>, %arg4: memref<256x512xbf16, #tpu.memory_space<vmem>>, %arg5: memref<1x512xf32, #tpu.memory_space<vmem>>, %arg6: memref<512x1024xbf16, #tpu.memory_space<vmem>>, %arg7: memref<1x1024xf32, #tpu.memory_space<vmem>>, %arg8: memref<1024x896xbf16, #tpu.memory_space<vmem>>, %arg9: memref<1x896xf32, #tpu.memory_space<vmem>>, %arg10: memref<8x896xf32, #tpu.memory_space<vmem>>) attributes {dimension_semantics = [#tpu.dimension_semantics<parallel>], iteration_bounds = array<i64: 1>, scalar_prefetch = 0 : i64, scratch_operands = 0 : i64, tpu.core_type = #tpu.core_type<tc>, window_params = [{transform_indices = @transform_0, window_bounds = array<i64: 8, 128>}, {pipeline_mode = #tpu.pipeline_mode<synchronous>, transform_indices = @transform_1, window_bounds = array<i64: 128, 256>}, {pipeline_mode = #tpu.pipeline_mode<synchronous>, transform_indices = @transform_2, window_bounds = array<i64: 1, 256>}, {pipeline_mode = #tpu.pipeline_mode<synchronous>, transform_indices = @transform_3, window_bounds = array<i64: 256, 512>}, {pipeline_mode = #tpu.pipeline_mode<synchronous>, transform_indices = @transform_4, window_bounds = array<i64: 1, 512>}, {pipeline_mode = #tpu.pipeline_mode<synchronous>, transform_indices = @transform_5, window_bounds = array<i64: 512, 1024>}, {pipeline_mode = #tpu.pipeline_mode<synchronous>, transform_indices = @transform_6, window_bounds = array<i64: 1, 1024>}, {pipeline_mode = #tpu.pipeline_mode<synchronous>, transform_indices = @transform_7, window_bounds = array<i64: 1024, 896>}, {pipeline_mode = #tpu.pipeline_mode<synchronous>, transform_indices = @transform_8, window_bounds = array<i64: 1, 896>}, {transform_indices = @transform_9, window_bounds = array<i64: 8, 896>}]} {
    %c0 = arith.constant 0 : index
    %c0_0 = arith.constant 0 : index
    %0 = vector.load %arg1[%c0, %c0_0] : memref<8x128xbf16, #tpu.memory_space<vmem>>, vector<8x128xbf16>
    %c0_1 = arith.constant 0 : index
    %c0_2 = arith.constant 0 : index
    %1 = vector.load %arg2[%c0_1, %c0_2] : memref<128x256xbf16, #tpu.memory_space<vmem>>, vector<128x256xbf16>
    %cst = arith.constant dense<0.000000e+00> : vector<8x256xf32>
    %2 = tpu.matmul %0, %1, %cst {dimension_numbers = #tpu.dot_dimension_numbers<[1], [0], [0], [1], [0, 0, 1, 1], [], []>} : vector<8x128xbf16>, vector<128x256xbf16>, vector<8x256xf32> -> vector<8x256xf32>
    %c0_3 = arith.constant 0 : index
    %c0_4 = arith.constant 0 : index
    %3 = vector.load %arg3[%c0_3, %c0_4] : memref<1x256xf32, #tpu.memory_space<vmem>>, vector<1x256xf32>
    %4 = vector.broadcast %3 : vector<1x256xf32> to vector<8x256xf32>
    %5 = arith.addf %2, %4 : vector<8x256xf32>
    %cst_5 = arith.constant 0.000000e+00 : f32
    %6 = vector.broadcast %cst_5 : f32 to vector<8x256xf32>
    %7 = arith.cmpf ogt, %5, %6 : vector<8x256xf32>
    %cst_6 = arith.constant 2.000000e-01 : f32
    %8 = vector.broadcast %cst_6 : f32 to vector<8x256xf32>
    %9 = arith.mulf %8, %5 : vector<8x256xf32>
    %10 = arith.select %7, %5, %9 : vector<8x256xi1>, vector<8x256xf32>
    %11 = arith.truncf %10 : vector<8x256xf32> to vector<8x256xbf16>
    %c0_7 = arith.constant 0 : index
    %c0_8 = arith.constant 0 : index
    %12 = vector.load %arg4[%c0_7, %c0_8] : memref<256x512xbf16, #tpu.memory_space<vmem>>, vector<256x512xbf16>
    %cst_9 = arith.constant dense<0.000000e+00> : vector<8x512xf32>
    %13 = tpu.matmul %11, %12, %cst_9 {dimension_numbers = #tpu.dot_dimension_numbers<[1], [0], [0], [1], [0, 0, 1, 1], [], []>} : vector<8x256xbf16>, vector<256x512xbf16>, vector<8x512xf32> -> vector<8x512xf32>
    %c0_10 = arith.constant 0 : index
    %c0_11 = arith.constant 0 : index
    %14 = vector.load %arg5[%c0_10, %c0_11] : memref<1x512xf32, #tpu.memory_space<vmem>>, vector<1x512xf32>
    %15 = vector.broadcast %14 : vector<1x512xf32> to vector<8x512xf32>
    %16 = arith.addf %13, %15 : vector<8x512xf32>
    %cst_12 = arith.constant 0.000000e+00 : f32
    %17 = vector.broadcast %cst_12 : f32 to vector<8x512xf32>
    %18 = arith.cmpf ogt, %16, %17 : vector<8x512xf32>
    %cst_13 = arith.constant 2.000000e-01 : f32
    %19 = vector.broadcast %cst_13 : f32 to vector<8x512xf32>
    %20 = arith.mulf %19, %16 : vector<8x512xf32>
    %21 = arith.select %18, %16, %20 : vector<8x512xi1>, vector<8x512xf32>
    %22 = arith.truncf %21 : vector<8x512xf32> to vector<8x512xbf16>
    %c0_14 = arith.constant 0 : index
    %c0_15 = arith.constant 0 : index
    %23 = vector.load %arg6[%c0_14, %c0_15] : memref<512x1024xbf16, #tpu.memory_space<vmem>>, vector<512x1024xbf16>
    %cst_16 = arith.constant dense<0.000000e+00> : vector<8x1024xf32>
    %24 = tpu.matmul %22, %23, %cst_16 {dimension_numbers = #tpu.dot_dimension_numbers<[1], [0], [0], [1], [0, 0, 1, 1], [], []>} : vector<8x512xbf16>, vector<512x1024xbf16>, vector<8x1024xf32> -> vector<8x1024xf32>
    %c0_17 = arith.constant 0 : index
    %c0_18 = arith.constant 0 : index
    %25 = vector.load %arg7[%c0_17, %c0_18] : memref<1x1024xf32, #tpu.memory_space<vmem>>, vector<1x1024xf32>
    %26 = vector.broadcast %25 : vector<1x1024xf32> to vector<8x1024xf32>
    %27 = arith.addf %24, %26 : vector<8x1024xf32>
    %cst_19 = arith.constant 0.000000e+00 : f32
    %28 = vector.broadcast %cst_19 : f32 to vector<8x1024xf32>
    %29 = arith.cmpf ogt, %27, %28 : vector<8x1024xf32>
    %cst_20 = arith.constant 2.000000e-01 : f32
    %30 = vector.broadcast %cst_20 : f32 to vector<8x1024xf32>
    %31 = arith.mulf %30, %27 : vector<8x1024xf32>
    %32 = arith.select %29, %27, %31 : vector<8x1024xi1>, vector<8x1024xf32>
    %33 = arith.truncf %32 : vector<8x1024xf32> to vector<8x1024xbf16>
    %c0_21 = arith.constant 0 : index
    %c0_22 = arith.constant 0 : index
    %34 = vector.load %arg8[%c0_21, %c0_22] : memref<1024x896xbf16, #tpu.memory_space<vmem>>, vector<1024x896xbf16>
    %cst_23 = arith.constant dense<0.000000e+00> : vector<8x896xf32>
    %35 = tpu.matmul %33, %34, %cst_23 {dimension_numbers = #tpu.dot_dimension_numbers<[1], [0], [0], [1], [0, 0, 1, 1], [], []>} : vector<8x1024xbf16>, vector<1024x896xbf16>, vector<8x896xf32> -> vector<8x896xf32>
    %c0_24 = arith.constant 0 : index
    %c0_25 = arith.constant 0 : index
    %36 = vector.load %arg9[%c0_24, %c0_25] : memref<1x896xf32, #tpu.memory_space<vmem>>, vector<1x896xf32>
    %37 = vector.broadcast %36 : vector<1x896xf32> to vector<8x896xf32>
    %38 = arith.addf %35, %37 : vector<8x896xf32>
    %39 = math.tanh %38 : vector<8x896xf32>
    %c0_26 = arith.constant 0 : index
    %c0_27 = arith.constant 0 : index
    %40 = vector.load %arg10[%c0_26, %c0_27] : memref<8x896xf32, #tpu.memory_space<vmem>>, vector<8x896xf32>
    tpu.vector_store %arg10[%c0_26, %c0_27], %39 {strides = array<i32>} : memref<8x896xf32, #tpu.memory_space<vmem>>, vector<8x896xf32>,
    return
  }
  func.func @transform_0(%arg0: i32) -> (i32, i32) {
    %c0_i32 = arith.constant 0 : i32
    %c0_i32_0 = arith.constant 0 : i32
    return %arg0, %c0_i32 : i32, i32
  }
  func.func @transform_1(%arg0: i32) -> (i32, i32) {
    %c0_i32 = arith.constant 0 : i32
    %c0_i32_0 = arith.constant 0 : i32
    %c0_i32_1 = arith.constant 0 : i32
    return %c0_i32, %c0_i32_0 : i32, i32
  }
  func.func @transform_2(%arg0: i32) -> (i32, i32) {
    %c0_i32 = arith.constant 0 : i32
    %c0_i32_0 = arith.constant 0 : i32
    %c0_i32_1 = arith.constant 0 : i32
    return %c0_i32, %c0_i32_0 : i32, i32
  }
  func.func @transform_3(%arg0: i32) -> (i32, i32) {
    %c0_i32 = arith.constant 0 : i32
    %c0_i32_0 = arith.constant 0 : i32
    %c0_i32_1 = arith.constant 0 : i32
    return %c0_i32, %c0_i32_0 : i32, i32
  }
  func.func @transform_4(%arg0: i32) -> (i32, i32) {
    %c0_i32 = arith.constant 0 : i32
    %c0_i32_0 = arith.constant 0 : i32
    %c0_i32_1 = arith.constant 0 : i32
    return %c0_i32, %c0_i32_0 : i32, i32
  }
  func.func @transform_5(%arg0: i32) -> (i32, i32) {
    %c0_i32 = arith.constant 0 : i32
    %c0_i32_0 = arith.constant 0 : i32
    %c0_i32_1 = arith.constant 0 : i32
    return %c0_i32, %c0_i32_0 : i32, i32
  }
  func.func @transform_6(%arg0: i32) -> (i32, i32) {
    %c0_i32 = arith.constant 0 : i32
    %c0_i32_0 = arith.constant 0 : i32
    %c0_i32_1 = arith.constant 0 : i32
    return %c0_i32, %c0_i32_0 : i32, i32
  }
  func.func @transform_7(%arg0: i32) -> (i32, i32) {
    %c0_i32 = arith.constant 0 : i32
    %c0_i32_0 = arith.constant 0 : i32
    %c0_i32_1 = arith.constant 0 : i32
    return %c0_i32, %c0_i32_0 : i32, i32
  }
  func.func @transform_8(%arg0: i32) -> (i32, i32) {
    %c0_i32 = arith.constant 0 : i32
    %c0_i32_0 = arith.constant 0 : i32
    %c0_i32_1 = arith.constant 0 : i32
    return %c0_i32, %c0_i32_0 : i32, i32
  }
  func.func @transform_9(%arg0: i32) -> (i32, i32) {
    %c0_i32 = arith.constant 0 : i32
    %c0_i32_0 = arith.constant 0 : i32
    return %arg0, %c0_i32 : i32, i32
  }
}

</mosaic_0001>

<bundles_post_ra>
// kernel: generator_forward.1
= control target key start
LH: loop header
LB: loop body
LE: loop exit
PB: predicated region body
PF: predicated region fallthrough
CT: control target
= control target key end

     0   :  { %v7838_v2 = vmov 0   ;;  %s10436_s0 = inlined_call_operand.vmem [shape: bf16[8,128], index: 0, kind: input, shape index: {}]   ;;  %s10437_s1 = inlined_call_operand.vmem [shape: bf16[128,256], index: 1, kind: input, shape index: {}]   ;;  %s10438_s2 = inlined_call_operand.vmem [shape: f32[1,256], index: 2, kind: input, shape index: {}]   ;;  %s10439_s3 = inlined_call_operand.vmem [shape: bf16[256,512], index: 3, kind: input, shape index: {}]   ;;  %s10440_s4 = inlined_call_operand.vmem [shape: f32[1,512], index: 4, kind: input, shape index: {}]   ;;  %s10441_s5 = inlined_call_operand.vmem [shape: bf16[512,1024], index: 5, kind: input, shape index: {}]   ;;  %s10442_s6 = inlined_call_operand.vmem [shape: f32[1,1024], index: 6, kind: input, shape index: {}]   ;;  %s10443_s7 = inlined_call_operand.vmem [shape: bf16[1024,896], index: 7, kind: input, shape index: {}]   ;;  %s10444_s8 = inlined_call_operand.vmem [shape: f32[1,896], index: 8, kind: input, shape index: {}]   ;;  %s10445_s9 = inlined_call_operand.hbm [shape: f32[8,896], index: 9, kind: output, shape index: {}]  }
   0x1   :  { %v7041_v0 = vld [vmem:[%s10437_s1 + $0x74] ss:$8 sps:$4 sm:$0xff]   ;;  %v7043_v1 = vld [vmem:[%s10437_s1 + $0x70] ss:$8 sps:$4 sm:$0xff]   ;;  %175 = vmatprep.mubr.bf16.mxu0 %v7838_v2  ;;  %v7044_v3 = vld [vmem:[%s10437_s1 + $0x64] ss:$8 sps:$4 sm:$0xff]  }
   0x2   :  { %143 = vmatprep.subr.bf16.mxu0 %v7041_v0  ;;  %v7046_v4 = vld [vmem:[%s10437_s1 + $0x60] ss:$8 sps:$4 sm:$0xff]   ;;  %v7047_v5 = vld [vmem:[%s10437_s1 + $0x54] ss:$8 sps:$4 sm:$0xff]   ;;  %v7049_v6 = vld [vmem:[%s10437_s1 + $0x50] ss:$8 sps:$4 sm:$0xff]  }
   0x3   :  { %144 = vmatpush1.bf16.msra.mxu0 %v7043_v1  ;;  %v7050_v7 = vld [vmem:[%s10437_s1 + $0x44] ss:$8 sps:$4 sm:$0xff]   ;;  %v7052_v8 = vld [vmem:[%s10437_s1 + $0x40] ss:$8 sps:$4 sm:$0xff]   ;;  %v7053_v10 = vld [vmem:[%s10437_s1 + $0x34] ss:$8 sps:$4 sm:$0xff]  }
   0x4   :  { %145 = vmatprep.subr.bf16.mxu0 %v7044_v3  ;;  %v7065_v9 = vld [vmem:[%s10439_s3 + $0xe4] ss:$16 sps:$4 sm:$0xff]   ;;  %v7070_v11 = vld [vmem:[%s10439_s3 + $0xe0] ss:$16 sps:$4 sm:$0xff]   ;;  %v7069_v26 = vld [vmem:[%s10439_s3 + $0xec] ss:$16 sps:$4 sm:$0xff]  }
   0x5   :  { %598 = vmatprep.subr.bf16.mxu1 %v7065_v9  ;;  %v7071_v12 = vld [vmem:[%s10439_s3 + $0xc4] ss:$16 sps:$4 sm:$0xff]   ;;  %v7055_v13 = vld [vmem:[%s10437_s1 + $0x30] ss:$8 sps:$4 sm:$0xff]   ;;  %v7058_v17 = vld [vmem:[%s10437_s1 + $0x20] ss:$8 sps:$4 sm:$0xff]  }
   0x6   :  { %v7056_v14 = vld [vmem:[%s10437_s1 + $0x24] ss:$8 sps:$4 sm:$0xff]   ;;  %599 = vmatpush1.bf16.msra.mxu1 %v7070_v11  ;;  %v7076_v15 = vld [vmem:[%s10439_s3 + $0xc0] ss:$16 sps:$4 sm:$0xff]   ;;  %v7059_v18 = vld [vmem:[%s10437_s1 + $0x14] ss:$8 sps:$4 sm:$0xff]  }
   0x7   :  { %146 = vmatpush1.bf16.msra.mxu0 %v7046_v4  ;;  %600 = vmatprep.subr.bf16.mxu1 %v7071_v12  ;;  %v7077_v16 = vld [vmem:[%s10439_s3 + $0xa4] ss:$16 sps:$4 sm:$0xff]   ;;  %v7082_v19 = vld [vmem:[%s10439_s3 + $0xa0] ss:$16 sps:$4 sm:$0xff]   ;;  %v7067_v30 = vld [vmem:[%s10439_s3 + $0xe8] ss:$16 sps:$4 sm:$0xff]  }
   0x8   :  { %147 = vmatprep.subr.bf16.mxu0 %v7047_v5  ;;  %v7083_v20 = vld [vmem:[%s10439_s3 + $0x84] ss:$16 sps:$4 sm:$0xff]   ;;  %v7061_v21 = vld [vmem:[%s10437_s1 + $0x10] ss:$8 sps:$4 sm:$0xff]   ;;  %v7064_v25 = vld [vmem:[%s10437_s1] ss:$8 sps:$4 sm:$0xff]  }
   0x9   :  { %v7062_v22 = vld [vmem:[%s10437_s1 + $0x4] ss:$8 sps:$4 sm:$0xff]   ;;  %v7088_v23 = vld [vmem:[%s10439_s3 + $0x80] ss:$16 sps:$4 sm:$0xff]   ;;  %v7073_v34 = vld [vmem:[%s10439_s3 + $0xc8] ss:$16 sps:$4 sm:$0xff]  }
   0xa   :  { %601 = vmatpush1.bf16.msra.mxu1 %v7076_v15  ;;  %v7089_v24 = vld [vmem:[%s10439_s3 + $0x64] ss:$16 sps:$4 sm:$0xff]   ;;  %v7094_v27 = vld [vmem:[%s10439_s3 + $0x60] ss:$16 sps:$4 sm:$0xff]   ;;  %v7075_v31 = vld [vmem:[%s10439_s3 + $0xcc] ss:$16 sps:$4 sm:$0xff]  }
   0xb   :  { %148 = vmatpush1.bf16.msra.mxu0 %v7049_v6  ;;  %602 = vmatprep.subr.bf16.mxu1 %v7077_v16  ;;  %v7095_v28 = vld [vmem:[%s10439_s3 + $0x44] ss:$16 sps:$4 sm:$0xff]   ;;  %v34_v29 = vld [vmem:[%s10436_s0] sm:$0xf]  ;;  %v7081_v35 = vld [vmem:[%s10439_s3 + $0xac] ss:$16 sps:$4 sm:$0xff]  }
   0xc   :  { %149 = vmatprep.subr.bf16.mxu0 %v7050_v7  ;;  %v7100_v32 = vld [vmem:[%s10439_s3 + $0x40] ss:$16 sps:$4 sm:$0xff]   ;;  %v7101_v33 = vld [vmem:[%s10439_s3 + $0x24] ss:$16 sps:$4 sm:$0xff]   ;;  %v7079_v38 = vld [vmem:[%s10439_s3 + $0xa8] ss:$16 sps:$4 sm:$0xff]  }
   0xd   :  { %v7106_v36 = vld [vmem:[%s10439_s3 + $0x20] ss:$16 sps:$4 sm:$0xff]   ;;  %v7107_v37 = vld [vmem:[%s10439_s3 + $0x4] ss:$16 sps:$4 sm:$0xff]   ;;  %v7087_v39 = vld [vmem:[%s10439_s3 + $0x8c] ss:$16 sps:$4 sm:$0xff]  }
   0xe   :  { %603 = vmatpush1.bf16.msra.mxu1 %v7082_v19  ;;  %v7112_v40 = vld [vmem:[%s10439_s3] ss:$16 sps:$4 sm:$0xff]   ;;  %v7113_v41 = vld [vmem:[%s10439_s3 + $0x1e4] ss:$16 sps:$4 sm:$0xff]   ;;  %v7085_v42 = vld [vmem:[%s10439_s3 + $0x88] ss:$16 sps:$4 sm:$0xff]  }
   0xf   :  { %150 = vmatpush1.bf16.msra.mxu0 %v7052_v8  ;;  %604 = vmatprep.subr.bf16.mxu1 %v7083_v20  ;;  %v7093_v43 = vld [vmem:[%s10439_s3 + $0x6c] ss:$16 sps:$4 sm:$0xff]   ;;  %v7118_v44 = vld [vmem:[%s10439_s3 + $0x1e0] ss:$16 sps:$4 sm:$0xff]   ;;  %v7119_v45 = vld [vmem:[%s10439_s3 + $0x1c4] ss:$16 sps:$4 sm:$0xff]  }
  0x10   :  { %151 = vmatprep.subr.bf16.mxu0 %v7053_v10  ;;  %v7091_v46 = vld [vmem:[%s10439_s3 + $0x68] ss:$16 sps:$4 sm:$0xff]   ;;  %v7099_v47 = vld [vmem:[%s10439_s3 + $0x4c] ss:$16 sps:$4 sm:$0xff]   ;;  %v7124_v48 = vld [vmem:[%s10439_s3 + $0x1c0] ss:$16 sps:$4 sm:$0xff]  }
  0x11   :  { %v7125_v49 = vld [vmem:[%s10439_s3 + $0x1a4] ss:$16 sps:$4 sm:$0xff]   ;;  %v7097_v50 = vld [vmem:[%s10439_s3 + $0x48] ss:$16 sps:$4 sm:$0xff]   ;;  %v7130_v51 = vld [vmem:[%s10439_s3 + $0x1a0] ss:$16 sps:$4 sm:$0xff]  }
  0x12   :  { %605 = vmatpush1.bf16.msra.mxu1 %v7088_v23  ;;  %v7105_v52 = vld [vmem:[%s10439_s3 + $0x2c] ss:$16 sps:$4 sm:$0xff]   ;;  %v7131_v53 = vld [vmem:[%s10439_s3 + $0x184] ss:$16 sps:$4 sm:$0xff]   ;;  %v7103_v54 = vld [vmem:[%s10439_s3 + $0x28] ss:$16 sps:$4 sm:$0xff]  }
  0x13   :  { %152 = vmatpush1.bf16.msra.mxu0 %v7055_v13  ;;  %606 = vmatprep.subr.bf16.mxu1 %v7089_v24  ;;  %v7136_v55 = vld [vmem:[%s10439_s3 + $0x180] ss:$16 sps:$4 sm:$0xff]   ;;  %v7111_v56 = vld [vmem:[%s10439_s3 + $0xc] ss:$16 sps:$4 sm:$0xff]   ;;  %v7137_v57 = vld [vmem:[%s10439_s3 + $0x164] ss:$16 sps:$4 sm:$0xff]  }
  0x14   :  { %153 = vmatprep.subr.bf16.mxu0 %v7056_v14  ;;  %v7109_v58 = vld [vmem:[%s10439_s3 + $0x8] ss:$16 sps:$4 sm:$0xff]   ;;  %v7142_v59 = vld [vmem:[%s10439_s3 + $0x160] ss:$16 sps:$4 sm:$0xff]   ;;  %v7117_v60 = vld [vmem:[%s10439_s3 + $0x1ec] ss:$16 sps:$4 sm:$0xff]  }
  0x15   :  { %v7143_v61 = vld [vmem:[%s10439_s3 + $0x144] ss:$16 sps:$4 sm:$0xff]   ;;  %v7115_v62 = vld [vmem:[%s10439_s3 + $0x1e8] ss:$16 sps:$4 sm:$0xff]   ;;  %v7123_v63 = vld [vmem:[%s10439_s3 + $0x1cc] ss:$16 sps:$4 sm:$0xff]  }
  0x16   :  { %607 = vmatpush1.bf16.msra.mxu1 %v7094_v27  ;;  %v7121_v0 = vld [vmem:[%s10439_s3 + $0x1c8] ss:$16 sps:$4 sm:$0xff]   ;;  %v7129_v1 = vld [vmem:[%s10439_s3 + $0x1ac] ss:$16 sps:$4 sm:$0xff]   ;;  %v7148_v9 = vld [vmem:[%s10439_s3 + $0x140] ss:$16 sps:$4 sm:$0xff]  }
  0x17   :  { %154 = vmatpush1.bf16.msra.mxu0 %v7058_v17  ;;  %608 = vmatprep.subr.bf16.mxu1 %v7095_v28  ;;  %v7127_v2 = vld [vmem:[%s10439_s3 + $0x1a8] ss:$16 sps:$4 sm:$0xff]   ;;  %v7135_v3 = vld [vmem:[%s10439_s3 + $0x18c] ss:$16 sps:$4 sm:$0xff]   ;;  %v7149_v10 = vld [vmem:[%s10439_s3 + $0x124] ss:$16 sps:$4 sm:$0xff]  }
  0x18   :  { %155 = vmatprep.subr.bf16.mxu0 %v7059_v18  ;;  %v7133_v4 = vld [vmem:[%s10439_s3 + $0x188] ss:$16 sps:$4 sm:$0xff]   ;;  %v7141_v5 = vld [vmem:[%s10439_s3 + $0x16c] ss:$16 sps:$4 sm:$0xff]   ;;  %v7154_v13 = vld [vmem:[%s10439_s3 + $0x120] ss:$16 sps:$4 sm:$0xff]  }
  0x19   :  { %v7139_v6 = vld [vmem:[%s10439_s3 + $0x168] ss:$16 sps:$4 sm:$0xff]   ;;  %v7147_v7 = vld [vmem:[%s10439_s3 + $0x14c] ss:$16 sps:$4 sm:$0xff]   ;;  %v7155_v14 = vld [vmem:[%s10439_s3 + $0x104] ss:$16 sps:$4 sm:$0xff]  }
  0x1a   :  { %609 = vmatpush1.bf16.msra.mxu1 %v7100_v32  ;;  %v7145_v8 = vld [vmem:[%s10439_s3 + $0x148] ss:$16 sps:$4 sm:$0xff]   ;;  %v7153_v11 = vld [vmem:[%s10439_s3 + $0x12c] ss:$16 sps:$4 sm:$0xff]   ;;  %v7160_v17 = vld [vmem:[%s10439_s3 + $0x100] ss:$16 sps:$4 sm:$0xff]  }
  0x1b   :  { %156 = vmatpush1.bf16.msra.mxu0 %v7061_v21  ;;  %610 = vmatprep.subr.bf16.mxu1 %v7101_v33  ;;  %v7151_v12 = vld [vmem:[%s10439_s3 + $0x128] ss:$16 sps:$4 sm:$0xff]   ;;  %v7159_v15 = vld [vmem:[%s10439_s3 + $0x10c] ss:$16 sps:$4 sm:$0xff]   ;;  %v752_v18 = vld [vmem:[%s10441_s5 + $0x1c0] sm:$0xff] }
  0x1c   :  { %157 = vmatprep.subr.bf16.mxu0 %v7062_v22  ;;  %v7157_v16 = vld [vmem:[%s10439_s3 + $0x108] ss:$16 sps:$4 sm:$0xff]   ;;  %v756_v19 = vld [vmem:[%s10441_s5 + $0x1e0] sm:$0xff] }
  0x1d   :  { %v880_v20 = vld [vmem:[%s10441_s5 + $0x5c0] sm:$0xff]  ;;  %v6303_v21 = vcombine.low %v752_v18, %v756_v19  ;;  %v6304_v22 = vcombine.high %v752_v18, %v756_v19 }
  0x1e   :  { %611 = vmatpush1.bf16.msra.mxu1 %v7106_v36  ;;  %v884_v23 = vld [vmem:[%s10441_s5 + $0x5e0] sm:$0xff] }
  0x1f   :  { %158 = vmatpush1.bf16.msra.mxu0 %v7064_v25  ;;  %612 = vmatprep.subr.bf16.mxu1 %v7107_v37  ;;  %v6431_v24 = vcombine.low %v880_v20, %v884_v23  ;;  %v6432_v25 = vcombine.high %v880_v20, %v884_v23  ;;  %v51_v28 = vld [vmem:[%s10438_s2] sm:$0x3] }
  0x20   :  { %639 = vmatprep.subr.bf16.mxu0 %v7069_v26  ;;  %v53_v26 = vlaneseq }
  0x22   :  { %176 = vmatmul.mubr.bf16.vlgmr.msra.gmra.mxu0 %v34_v29  ;;  %613 = vmatpush1.bf16.msra.mxu1 %v7112_v40  ;;  %v8145_v27 = vshrl.u32 %v53_v26, 7  ;;  %v748_v40 = vld [vmem:[%s10441_s5 + $0x1a0] sm:$0xff] }
  0x23   :  { %640 = vmatpush1.bf16.msra.mxu0 %v7067_v30  ;;  %614 = vmatprep.subr.bf16.mxu1 %v7113_v41  ;;  %v872_v41 = vld [vmem:[%s10441_s5 + $0x580] sm:$0xff] }
  0x24   :  { %641 = vmatprep.subr.bf16.mxu0 %v7075_v31  ;;  %v8151_v29 = vsub.s32 0, %v8145_v27  ;;  %v8154_v30 = vsub.s32 1, %v8145_v27 }
  0x26   :  { %615 = vmatpush2.bf16.msra.mxu1 %v7118_v44  ;;  %v56_v31 = vrot.slane %v51_v28, %v8151_v29  ;;  %v60_v32 = vrot.slane %v51_v28, %v8154_v30 }
  0x27   :  { %642 = vmatpush1.bf16.msra.mxu0 %v7073_v34  ;;  %616 = vmatprep.subr.bf16.mxu1 %v7119_v45 }
  0x28   :  { %643 = vmatprep.subr.bf16.mxu0 %v7081_v35 }
  0x2a   :  { %617 = vmatpush2.bf16.msra.mxu1 %v7124_v48  ;;  %v736_v48 = vld [vmem:[%s10441_s5 + $0x140] sm:$0xff] }
  0x2b   :  { %644 = vmatpush1.bf16.msra.mxu0 %v7079_v38  ;;  %618 = vmatprep.subr.bf16.mxu1 %v7125_v49  ;;  %v740_v49 = vld [vmem:[%s10441_s5 + $0x160] sm:$0xff] }
  0x2c   :  { %645 = vmatprep.subr.bf16.mxu0 %v7087_v39  ;;  %v744_v39 = vld [vmem:[%s10441_s5 + $0x180] sm:$0xff] }
  0x2e   :  { %619 = vmatpush2.bf16.msra.mxu1 %v7130_v51  ;;  %v868_v51 = vld [vmem:[%s10441_s5 + $0x560] sm:$0xff] }
  0x2f   :  { %646 = vmatpush1.bf16.msra.mxu0 %v7085_v42  ;;  %620 = vmatprep.subr.bf16.mxu1 %v7131_v53  ;;  %v6296_v53 = vcombine.high %v744_v39, %v748_v40 }
  0x30   :  { %647 = vmatprep.subr.bf16.mxu0 %v7093_v43  ;;  %v876_v43 = vld [vmem:[%s10441_s5 + $0x5a0] sm:$0xff] }
  0x32   :  { %621 = vmatpush2.bf16.msra.mxu1 %v7136_v55  ;;  %v6295_v55 = vcombine.low %v744_v39, %v748_v40 }
  0x33   :  { %648 = vmatpush1.bf16.msra.mxu0 %v7091_v46  ;;  %622 = vmatprep.subr.bf16.mxu1 %v7137_v57  ;;  %v728_v57 = vld [vmem:[%s10441_s5 + $0x100] sm:$0xff] }
  0x34   :  { %649 = vmatprep.subr.bf16.mxu0 %v7099_v47 }
  0x36   :  { %623 = vmatpush2.bf16.msra.mxu1 %v7142_v59  ;;  %v856_v59 = vld [vmem:[%s10441_s5 + $0x500] sm:$0xff] }
  0x37   :  { %650 = vmatpush1.bf16.msra.mxu0 %v7097_v50  ;;  %624 = vmatprep.subr.bf16.mxu1 %v7143_v61  ;;  %v864_v50 = vld [vmem:[%s10441_s5 + $0x540] sm:$0xff]  ;;  %v6288_v61 = vcombine.high %v736_v48, %v740_v49 }
  0x38   :  { %651 = vmatprep.subr.bf16.mxu0 %v7105_v52 }
  0x3a   :  { %625 = vmatpush2.bf16.msra.mxu1 %v7148_v9 }
  0x3b   :  { %652 = vmatpush1.bf16.msra.mxu0 %v7103_v54  ;;  %626 = vmatprep.subr.bf16.mxu1 %v7149_v10  ;;  %v6424_v54 = vcombine.high %v872_v41, %v876_v43 }
  0x3c   :  { %653 = vmatprep.subr.bf16.mxu0 %v7111_v56  ;;  %v6423_v56 = vcombine.low %v872_v41, %v876_v43 }
  0x3e   :  { %627 = vmatpush2.bf16.msra.mxu1 %v7154_v13 }
  0x3f   :  { %654 = vmatpush1.bf16.msra.mxu0 %v7109_v58  ;;  %628 = vmatprep.subr.bf16.mxu1 %v7155_v14  ;;  %v732_v58 = vld [vmem:[%s10441_s5 + $0x120] sm:$0xff] }
  0x40   :  { %655 = vmatprep.subr.bf16.mxu0 %v7117_v60  ;;  %v860_v60 = vld [vmem:[%s10441_s5 + $0x520] sm:$0xff] }
  0x42   :  { %629 = vmatpush2.bf16.msra.mxu1 %v7160_v17 }
  0x43   :  { %656 = vmatpush2.bf16.msra.mxu0 %v7115_v62  ;;  %2274 = vmatprep.subr.bf16.mxu1 %v6304_v22  ;;  %v6416_v62 = vcombine.high %v864_v50, %v868_v51 }
  0x44   :  { %657 = vmatprep.subr.bf16.mxu0 %v7123_v63  ;;  %v6287_v63 = vcombine.low %v736_v48, %v740_v49 }
  0x47   :  { %658 = vmatpush2.bf16.msra.mxu0 %v7121_v0  ;;  %v6415_v0 = vcombine.low %v864_v50, %v868_v51 }
  0x48   :  { %659 = vmatprep.subr.bf16.mxu0 %v7129_v1  ;;  %v720_v1 = vld [vmem:[%s10441_s5 + $0xc0] sm:$0xff] }
  0x4b   :  { %660 = vmatpush2.bf16.msra.mxu0 %v7127_v2  ;;  %v724_v2 = vld [vmem:[%s10441_s5 + $0xe0] sm:$0xff] }
  0x4c   :  { %661 = vmatprep.subr.bf16.mxu0 %v7135_v3  ;;  %v848_v3 = vld [vmem:[%s10441_s5 + $0x4c0] sm:$0xff] }
  0x4f   :  { %662 = vmatpush2.bf16.msra.mxu0 %v7133_v4  ;;  %v852_v4 = vld [vmem:[%s10441_s5 + $0x4e0] sm:$0xff] }
  0x50   :  { %663 = vmatprep.subr.bf16.mxu0 %v7141_v5  ;;  %v6280_v5 = vcombine.high %v728_v57, %v732_v58 }
  0x53   :  { %664 = vmatpush2.bf16.msra.mxu0 %v7139_v6  ;;  %v6408_v6 = vcombine.high %v856_v59, %v860_v60 }
  0x54   :  { %665 = vmatprep.subr.bf16.mxu0 %v7147_v7 }
  0x57   :  { %666 = vmatpush2.bf16.msra.mxu0 %v7145_v8 }
  0x58   :  { %667 = vmatprep.subr.bf16.mxu0 %v7153_v11 }
  0x5b   :  { %668 = vmatpush2.bf16.msra.mxu0 %v7151_v12 }
  0x5c   :  { %669 = vmatprep.subr.bf16.mxu0 %v7159_v15 }
  0x5f   :  { %670 = vmatpush2.bf16.msra.mxu0 %v7157_v16 }
  0x60   :  { %2315 = vmatprep.subr.bf16.mxu0 %v6432_v25 }
  0xe2   :  { %v177_v33 = vpop.f32.mrf.mxu0 }
  0xe3   :  { %v178_v34 = vadd.f32 %v177_v33, %v56_v31 }
  0xe4   :  { %v179_v35 = vpop.f32.mrf.mxu0 }
  0xe5   :  { %vm184_vm0 = vcmp.gt.f32.partialorder %v178_v34, 0.0  ;;  %v186_v36 = vmul.f32 0.2, %v178_v34  ;;  %v180_v37 = vadd.f32 %v179_v35, %v60_v32 }
  0xe6   :  { %v181_v38 = vpop.f32.mrf.mxu0 }
  0xe7   :  { %v187_v42 = vmul.f32 0.2, %v180_v37  ;;  %vm185_vm1 = vcmp.gt.f32.partialorder %v180_v37, 0.0  ;;  %v188_v45 = vsel %vm184_vm0, %v178_v34, %v186_v36 }
  0xe8   :  { %v182_v44 = vpop.f32.mrf.mxu0  ;;  %v190_v52 = vpack.c.bf16 %v188_v45, %v188_v45 }
  0xe9   :  { %v189_v46 = vsel %vm185_vm1, %v180_v37, %v187_v42 }
  0xea   :  { %v191_v47 = vpack.c.bf16 %v189_v46, %v189_v46 }
  0xec   :  { %630 = vmatprep.mubr.bf16.mxu1 %v191_v47  ;;  %671 = vmatprep.mubr.bf16.mxu0 %v191_v47 }
  0xed   :  { %631 = vmatmul.mubr.bf16.vlgmr.msra.gmra.mxu1 %v190_v52  ;;  %672 = vmatmul.mubr.bf16.vlgmr.msra.gmra.mxu0 %v190_v52 }
  0xee   :  { %2275 = vmatpush1.bf16.msra.mxu1 %v6303_v21  ;;  %2316 = vmatpush1.bf16.msra.mxu0 %v6431_v24 }
  0xef   :  { %2276 = vmatprep.subr.bf16.mxu1 %v6296_v53  ;;  %2317 = vmatprep.subr.bf16.mxu0 %v6424_v54 }
  0xf2   :  { %2277 = vmatpush1.bf16.msra.mxu1 %v6295_v55  ;;  %2318 = vmatpush1.bf16.msra.mxu0 %v6423_v56 }
  0xf3   :  { %2278 = vmatprep.subr.bf16.mxu1 %v6288_v61  ;;  %2319 = vmatprep.subr.bf16.mxu0 %v6416_v62 }
  0xf4   :  { %14 = vsyncpa [#allocation3], 0  ;;  %v6279_v7 = vcombine.low %v728_v57, %v732_v58  ;;  %v6407_v8 = vcombine.low %v856_v59, %v860_v60  ;;  %v6272_v9 = vcombine.high %v720_v1, %v724_v2  ;;  %v6400_v10 = vcombine.high %v848_v3, %v852_v4  ;;  %v712_v11 = vld [vmem:[%s10441_s5 + $0x80] sm:$0xff] }
  0xf5   :  { %v716_v12 = vld [vmem:[%s10441_s5 + $0xa0] sm:$0xff]  ;;  %v6271_v15 = vcombine.low %v720_v1, %v724_v2  ;;  %v6399_v16 = vcombine.low %v848_v3, %v852_v4 }
  0xf6   :  { %2279 = vmatpush1.bf16.msra.mxu1 %v6287_v63  ;;  %2320 = vmatpush1.bf16.msra.mxu0 %v6415_v0  ;;  %v840_v13 = vld [vmem:[%s10441_s5 + $0x480] sm:$0xff]  ;;  %v6264_v17 = vcombine.high %v712_v11, %v716_v12  ;;  %v6263_v23 = vcombine.low %v712_v11, %v716_v12 }
  0xf7   :  { %2280 = vmatprep.subr.bf16.mxu1 %v6280_v5  ;;  %2321 = vmatprep.subr.bf16.mxu0 %v6408_v6  ;;  %v844_v14 = vld [vmem:[%s10441_s5 + $0x4a0] sm:$0xff] }
  0xf8   :  { %v6392_v18 = vcombine.high %v840_v13, %v844_v14  ;;  %v704_v19 = vld [vmem:[%s10441_s5 + $0x40] sm:$0xff]  ;;  %v6391_v24 = vcombine.low %v840_v13, %v844_v14 }
  0xf9   :  { %v708_v20 = vld [vmem:[%s10441_s5 + $0x60] sm:$0xff] }
  0xfa   :  { %2281 = vmatpush1.bf16.msra.mxu1 %v6279_v7  ;;  %2322 = vmatpush1.bf16.msra.mxu0 %v6407_v8  ;;  %v832_v21 = vld [vmem:[%s10441_s5 + $0x440] sm:$0xff]  ;;  %v6256_v25 = vcombine.high %v704_v19, %v708_v20  ;;  %v6255_v34 = vcombine.low %v704_v19, %v708_v20 }
  0xfb   :  { %2282 = vmatprep.subr.bf16.mxu1 %v6272_v9  ;;  %2323 = vmatprep.subr.bf16.mxu0 %v6400_v10  ;;  %v836_v22 = vld [vmem:[%s10441_s5 + $0x460] sm:$0xff] }
  0xfc   :  { %v6384_v26 = vcombine.high %v832_v21, %v836_v22  ;;  %v696_v28 = vld [vmem:[%s10441_s5] sm:$0xff]  ;;  %v6383_v35 = vcombine.low %v832_v21, %v836_v22 }
  0xfd   :  { %v700_v31 = vld [vmem:[%s10441_s5 + $0x20] sm:$0xff] }
  0xfe   :  { %2283 = vmatpush1.bf16.msra.mxu1 %v6271_v15  ;;  %2324 = vmatpush1.bf16.msra.mxu0 %v6399_v16  ;;  %v824_v32 = vld [vmem:[%s10441_s5 + $0x400] sm:$0xff]  ;;  %v6248_v36 = vcombine.high %v696_v28, %v700_v31  ;;  %v6247_v42 = vcombine.low %v696_v28, %v700_v31 }
  0xff   :  { %2284 = vmatprep.subr.bf16.mxu1 %v6264_v17  ;;  %2325 = vmatprep.subr.bf16.mxu0 %v6392_v18  ;;  %v828_v33 = vld [vmem:[%s10441_s5 + $0x420] sm:$0xff] }
 0x100   :  { %v6376_v37 = vcombine.high %v824_v32, %v828_v33  ;;  %v816_v38 = vld [vmem:[%s10441_s5 + $0x3c0] sm:$0xff]  ;;  %v6375_v43 = vcombine.low %v824_v32, %v828_v33 }
 0x101   :  { %v820_v39 = vld [vmem:[%s10441_s5 + $0x3e0] sm:$0xff] }
 0x102   :  { %2285 = vmatpush1.bf16.msra.mxu1 %v6263_v23  ;;  %2326 = vmatpush1.bf16.msra.mxu0 %v6391_v24  ;;  %v944_v40 = vld [vmem:[%s10441_s5 + $0x7c0] sm:$0xff]  ;;  %v6368_v44 = vcombine.high %v816_v38, %v820_v39  ;;  %v6367_v50 = vcombine.low %v816_v38, %v820_v39 }
 0x103   :  { %2286 = vmatprep.subr.bf16.mxu1 %v6256_v25  ;;  %2327 = vmatprep.subr.bf16.mxu0 %v6384_v26  ;;  %v948_v41 = vld [vmem:[%s10441_s5 + $0x7e0] sm:$0xff] }
 0x104   :  { %v6496_v45 = vcombine.high %v944_v40, %v948_v41  ;;  %v808_v46 = vld [vmem:[%s10441_s5 + $0x380] sm:$0xff]  ;;  %v6495_v51 = vcombine.low %v944_v40, %v948_v41 }
 0x105   :  { %v812_v47 = vld [vmem:[%s10441_s5 + $0x3a0] sm:$0xff] }
 0x106   :  { %2287 = vmatpush1.bf16.msra.mxu1 %v6255_v34  ;;  %2328 = vmatpush1.bf16.msra.mxu0 %v6383_v35  ;;  %v936_v48 = vld [vmem:[%s10441_s5 + $0x780] sm:$0xff]  ;;  %v6360_v52 = vcombine.high %v808_v46, %v812_v47  ;;  %v6359_v58 = vcombine.low %v808_v46, %v812_v47  ;;  %v885_v47 = vld [vmem:[%s10441_s5 + $0x5e8] sm:$0xff] }
 0x107   :  { %2288 = vmatprep.subr.bf16.mxu1 %v6248_v36  ;;  %2329 = vmatprep.subr.bf16.mxu0 %v6376_v37  ;;  %v940_v49 = vld [vmem:[%s10441_s5 + $0x7a0] sm:$0xff] }
 0x108   :  { %v6488_v53 = vcombine.high %v936_v48, %v940_v49  ;;  %v800_v54 = vld [vmem:[%s10441_s5 + $0x340] sm:$0xff]  ;;  %v6487_v59 = vcombine.low %v936_v48, %v940_v49 }
 0x109   :  { %v804_v55 = vld [vmem:[%s10441_s5 + $0x360] sm:$0xff] }
 0x10a   :  { %2289 = vmatpush1.bf16.msra.mxu1 %v6247_v42  ;;  %2330 = vmatpush1.bf16.msra.mxu0 %v6375_v43  ;;  %v928_v56 = vld [vmem:[%s10441_s5 + $0x740] sm:$0xff]  ;;  %v6352_v60 = vcombine.high %v800_v54, %v804_v55  ;;  %v6351_v2 = vcombine.low %v800_v54, %v804_v55  ;;  %v753_v43 = vld [vmem:[%s10441_s5 + $0x1c8] sm:$0xff] }
 0x10b   :  { %2290 = vmatprep.subr.bf16.mxu1 %v6368_v44  ;;  %2331 = vmatprep.subr.bf16.mxu0 %v6496_v45  ;;  %v932_v57 = vld [vmem:[%s10441_s5 + $0x760] sm:$0xff]  ;;  %v757_v44 = vld [vmem:[%s10441_s5 + $0x1e8] sm:$0xff] }
 0x10c   :  { %v6480_v61 = vcombine.high %v928_v56, %v932_v57  ;;  %v792_v62 = vld [vmem:[%s10441_s5 + $0x300] sm:$0xff]  ;;  %v6479_v3 = vcombine.low %v928_v56, %v932_v57  ;;  %v881_v45 = vld [vmem:[%s10441_s5 + $0x5c8] sm:$0xff]  ;;  %v6306_v46 = vcombine.high %v753_v43, %v757_v44  ;;  %v6305_v48 = vcombine.low %v753_v43, %v757_v44 }
 0x10d   :  { %v796_v63 = vld [vmem:[%s10441_s5 + $0x320] sm:$0xff]  ;;  %v6433_v49 = vcombine.low %v881_v45, %v885_v47  ;;  %v721_v43 = vld [vmem:[%s10441_s5 + $0xc8] sm:$0xff] }
 0x10e   :  { %2291 = vmatpush2.bf16.msra.mxu1 %v6367_v50  ;;  %2332 = vmatpush2.bf16.msra.mxu0 %v6495_v51  ;;  %v920_v0 = vld [vmem:[%s10441_s5 + $0x700] sm:$0xff]  ;;  %v6344_v4 = vcombine.high %v792_v62, %v796_v63  ;;  %v6343_v10 = vcombine.low %v792_v62, %v796_v63  ;;  %v6434_v50 = vcombine.high %v881_v45, %v885_v47  ;;  %v8351_v51 = vsub.s32 2, %v8145_v27  ;;  %v725_v44 = vld [vmem:[%s10441_s5 + $0xe8] sm:$0xff] }
 0x10f   :  { %2292 = vmatprep.subr.bf16.mxu1 %v6360_v52  ;;  %2333 = vmatprep.subr.bf16.mxu0 %v6488_v53  ;;  %v924_v1 = vld [vmem:[%s10441_s5 + $0x720] sm:$0xff]  ;;  %v8357_v53 = vsub.s32 3, %v8145_v27  ;;  %v849_v45 = vld [vmem:[%s10441_s5 + $0x4c8] sm:$0xff] }
 0x110   :  { %v6472_v5 = vcombine.high %v920_v0, %v924_v1  ;;  %v784_v6 = vld [vmem:[%s10441_s5 + $0x2c0] sm:$0xff]  ;;  %v6471_v11 = vcombine.low %v920_v0, %v924_v1 }
 0x111   :  { %v788_v7 = vld [vmem:[%s10441_s5 + $0x2e0] sm:$0xff] }
 0x112   :  { %2293 = vmatpush2.bf16.msra.mxu1 %v6359_v58  ;;  %2334 = vmatpush2.bf16.msra.mxu0 %v6487_v59  ;;  %v912_v8 = vld [vmem:[%s10441_s5 + $0x6c0] sm:$0xff]  ;;  %v6336_v12 = vcombine.high %v784_v6, %v788_v7  ;;  %v6335_v18 = vcombine.low %v784_v6, %v788_v7 }
 0x113   :  { %2294 = vmatprep.subr.bf16.mxu1 %v6352_v60  ;;  %2335 = vmatprep.subr.bf16.mxu0 %v6480_v61  ;;  %v916_v9 = vld [vmem:[%s10441_s5 + $0x6e0] sm:$0xff] }
 0x114   :  { %v6464_v13 = vcombine.high %v912_v8, %v916_v9  ;;  %v776_v14 = vld [vmem:[%s10441_s5 + $0x280] sm:$0xff]  ;;  %v6463_v19 = vcombine.low %v912_v8, %v916_v9 }
 0x115   :  { %v780_v15 = vld [vmem:[%s10441_s5 + $0x2a0] sm:$0xff] }
 0x116   :  { %2295 = vmatpush2.bf16.msra.mxu1 %v6351_v2  ;;  %2336 = vmatpush2.bf16.msra.mxu0 %v6479_v3  ;;  %v904_v16 = vld [vmem:[%s10441_s5 + $0x680] sm:$0xff]  ;;  %v6328_v20 = vcombine.high %v776_v14, %v780_v15  ;;  %v6327_v22 = vcombine.low %v776_v14, %v780_v15  ;;  %v749_v14 = vld [vmem:[%s10441_s5 + $0x1a8] sm:$0xff] }
 0x117   :  { %2296 = vmatprep.subr.bf16.mxu1 %v6344_v4  ;;  %2337 = vmatprep.subr.bf16.mxu0 %v6472_v5  ;;  %v908_v17 = vld [vmem:[%s10441_s5 + $0x6a0] sm:$0xff] }
 0x118   :  { %v6456_v21 = vcombine.high %v904_v16, %v908_v17  ;;  %v6455_v23 = vcombine.low %v904_v16, %v908_v17  ;;  %v768_v24 = vld [vmem:[%s10441_s5 + $0x240] sm:$0xff]  ;;  %v873_v17 = vld [vmem:[%s10441_s5 + $0x588] sm:$0xff] }
 0x119   :  { %v772_v25 = vld [vmem:[%s10441_s5 + $0x260] sm:$0xff] }
 0x11a   :  { %2297 = vmatpush2.bf16.msra.mxu1 %v6343_v10  ;;  %2338 = vmatpush2.bf16.msra.mxu0 %v6471_v11  ;;  %v896_v26 = vld [vmem:[%s10441_s5 + $0x640] sm:$0xff]  ;;  %v6320_v28 = vcombine.high %v768_v24, %v772_v25  ;;  %v6319_v32 = vcombine.low %v768_v24, %v772_v25  ;;  %v741_v24 = vld [vmem:[%s10441_s5 + $0x168] sm:$0xff] }
 0x11b   :  { %2298 = vmatprep.subr.bf16.mxu1 %v6336_v12  ;;  %2339 = vmatprep.subr.bf16.mxu0 %v6464_v13  ;;  %v900_v31 = vld [vmem:[%s10441_s5 + $0x660] sm:$0xff]  ;;  %v745_v13 = vld [vmem:[%s10441_s5 + $0x188] sm:$0xff] }
 0x11c   :  { %v6447_v33 = vcombine.low %v896_v26, %v900_v31  ;;  %v6448_v34 = vcombine.high %v896_v26, %v900_v31  ;;  %v760_v35 = vld [vmem:[%s10441_s5 + $0x200] sm:$0xff]  ;;  %v865_v26 = vld [vmem:[%s10441_s5 + $0x548] sm:$0xff]  ;;  %v6297_v31 = vcombine.low %v745_v13, %v749_v14 }
 0x11d   :  { %v764_v36 = vld [vmem:[%s10441_s5 + $0x220] sm:$0xff] }
 0x11e   :  { %2299 = vmatpush2.bf16.msra.mxu1 %v6335_v18  ;;  %2340 = vmatpush2.bf16.msra.mxu0 %v6463_v19  ;;  %v888_v37 = vld [vmem:[%s10441_s5 + $0x600] sm:$0xff]  ;;  %v6312_v38 = vcombine.high %v760_v35, %v764_v36  ;;  %v6311_v40 = vcombine.low %v760_v35, %v764_v36  ;;  %v877_v18 = vld [vmem:[%s10441_s5 + $0x5a8] sm:$0xff] }
 0x11f   :  { %2300 = vmatprep.subr.bf16.mxu1 %v6328_v20  ;;  %2341 = vmatprep.subr.bf16.mxu0 %v6456_v21  ;;  %v892_v39 = vld [vmem:[%s10441_s5 + $0x620] sm:$0xff]  ;;  %v6426_v25 = vcombine.high %v873_v17, %v877_v18  ;;  %v729_v35 = vld [vmem:[%s10441_s5 + $0x108] sm:$0xff] }
 0x120   :  { %v6439_v41 = vcombine.low %v888_v37, %v892_v39  ;;  %v6440_v42 = vcombine.high %v888_v37, %v892_v39  ;;  %v256_v52 = vld [vmem:[%s10440_s4] sm:$0xf]  ;;  %v733_v36 = vld [vmem:[%s10441_s5 + $0x128] sm:$0xff] }
 0x121   :  { %v261_v54 = vrot.slane %v256_v52, %v8151_v29  ;;  %v269_v55 = vrot.slane %v256_v52, %v8351_v51  ;;  %v265_v58 = vrot.slane %v256_v52, %v8154_v30  ;;  %v273_v59 = vrot.slane %v256_v52, %v8357_v53  ;;  %v857_v37 = vld [vmem:[%s10441_s5 + $0x508] sm:$0xff] }
 0x122   :  { %2301 = vmatpush2.bf16.msra.mxu1 %v6327_v22  ;;  %2342 = vmatpush2.bf16.msra.mxu0 %v6455_v23  ;;  %v6298_v22 = vcombine.high %v745_v13, %v749_v14  ;;  %v737_v23 = vld [vmem:[%s10441_s5 + $0x148] sm:$0xff]  ;;  %v6281_v47 = vcombine.low %v729_v35, %v733_v36 }
 0x123   :  { %2302 = vmatprep.subr.bf16.mxu1 %v6320_v28  ;;  %2343 = vmatprep.subr.bf16.mxu0 %v6448_v34  ;;  %v869_v28 = vld [vmem:[%s10441_s5 + $0x568] sm:$0xff]  ;;  %v6289_v39 = vcombine.low %v737_v23, %v741_v24 }
 0x124   :  { %v6418_v34 = vcombine.high %v865_v26, %v869_v28  ;;  %v713_v52 = vld [vmem:[%s10441_s5 + $0x88] sm:$0xff] }
 0x125   :  { %v817_v13 = vld [vmem:[%s10441_s5 + $0x3c8] sm:$0xff] }
 0x126   :  { %2303 = vmatpush2.bf16.msra.mxu1 %v6319_v32  ;;  %2344 = vmatpush2.bf16.msra.mxu0 %v6447_v33  ;;  %v6425_v32 = vcombine.low %v873_v17, %v877_v18  ;;  %v6290_v33 = vcombine.high %v737_v23, %v741_v24  ;;  %v821_v14 = vld [vmem:[%s10441_s5 + $0x3e8] sm:$0xff] }
 0x127   :  { %2304 = vmatprep.subr.bf16.mxu1 %v6312_v38  ;;  %2345 = vmatprep.subr.bf16.mxu0 %v6440_v42  ;;  %v861_v38 = vld [vmem:[%s10441_s5 + $0x528] sm:$0xff]  ;;  %v6370_v23 = vcombine.high %v817_v13, %v821_v14 }
 0x128   :  { %v6410_v42 = vcombine.high %v857_v37, %v861_v38  ;;  %v949_v17 = vld [vmem:[%s10441_s5 + $0x7e8] sm:$0xff] }
 0x12a   :  { %2305 = vmatpush2.bf16.msra.mxu1 %v6311_v40  ;;  %2346 = vmatpush2.bf16.msra.mxu0 %v6439_v41  ;;  %v6417_v40 = vcombine.low %v865_v26, %v869_v28  ;;  %v6282_v41 = vcombine.high %v729_v35, %v733_v36  ;;  %v813_v26 = vld [vmem:[%s10441_s5 + $0x3a8] sm:$0xff] }
 0x12b   :  { %2356 = vmatprep.subr.bf16.mxu1 %v6306_v46  ;;  %2397 = vmatprep.subr.bf16.mxu0 %v6434_v50  ;;  %v853_v46 = vld [vmem:[%s10441_s5 + $0x4e8] sm:$0xff] }
 0x12c   :  { %v6402_v50 = vcombine.high %v849_v45, %v853_v46  ;;  %v937_v28 = vld [vmem:[%s10441_s5 + $0x788] sm:$0xff] }
 0x12d   :  { %v801_v36 = vld [vmem:[%s10441_s5 + $0x348] sm:$0xff] }
 0x1ad   :  { %v632_v56 = vpop.f32.mrf.mxu1  ;;  %v673_v57 = vpop.f32.mrf.mxu0 }
 0x1ae   :  { %v633_v60 = vadd.f32 %v632_v56, %v261_v54  ;;  %v674_v61 = vadd.f32 %v673_v57, %v269_v55  ;;  %v717_v54 = vld [vmem:[%s10441_s5 + $0xa8] sm:$0xff]  ;;  %v6273_v57 = vcombine.low %v721_v43, %v725_v44 }
 0x1af   :  { %v634_v62 = vpop.f32.mrf.mxu1  ;;  %v675_v63 = vpop.f32.mrf.mxu0  ;;  %v841_v55 = vld [vmem:[%s10441_s5 + $0x488] sm:$0xff] }
 0x1b0   :  { %v684_v0 = vmul.f32 0.2, %v633_v60  ;;  %vm680_vm2 = vcmp.gt.f32.partialorder %v633_v60, 0.0  ;;  %v686_v1 = vmul.f32 0.2, %v674_v61  ;;  %v635_v2 = vadd.f32 %v634_v62, %v265_v58  ;;  %v845_v56 = vld [vmem:[%s10441_s5 + $0x4a8] sm:$0xff] }
 0x1b1   :  { %v676_v3 = vadd.f32 %v675_v63, %v273_v59  ;;  %v636_v4 = vpop.f32.mrf.mxu1  ;;  %v677_v5 = vpop.f32.mrf.mxu0  ;;  %vm682_vm3 = vcmp.gt.f32.partialorder %v674_v61, 0.0  ;;  %v6401_v58 = vcombine.low %v849_v45, %v853_v46  ;;  %v6266_v59 = vcombine.high %v713_v52, %v717_v54  ;;  %v709_v62 = vld [vmem:[%s10441_s5 + $0x68] sm:$0xff] }
 0x1b2   :  { %vm681_vm4 = vcmp.gt.f32.partialorder %v635_v2, 0.0  ;;  %v685_v6 = vmul.f32 0.2, %v635_v2  ;;  %v688_v9 = vsel %vm680_vm2, %v633_v60, %v684_v0  ;;  %v690_v11 = vsel %vm682_vm3, %v674_v61, %v686_v1  ;;  %v705_v61 = vld [vmem:[%s10441_s5 + $0x48] sm:$0xff] }
 0x1b3   :  { %v637_v7 = vpop.f32.mrf.mxu1  ;;  %v678_v8 = vpop.f32.mrf.mxu0  ;;  %vm683_vm5 = vcmp.gt.f32.partialorder %v676_v3, 0.0  ;;  %v687_v10 = vmul.f32 0.2, %v676_v3  ;;  %v8377_v19 = vpack.c.bf16 %v688_v9, %v688_v9  ;;  %v8381_v21 = vpack.c.bf16 %v690_v11, %v690_v11  ;;  %v833_v63 = vld [vmem:[%s10441_s5 + $0x448] sm:$0xff] }
 0x1b4   :  { %v689_v12 = vsel %vm681_vm4, %v635_v2, %v685_v6  ;;  %v6394_v60 = vcombine.high %v841_v55, %v845_v56  ;;  %v837_v0 = vld [vmem:[%s10441_s5 + $0x468] sm:$0xff]  ;;  %v6265_v1 = vcombine.low %v713_v52, %v717_v54  ;;  %v6393_v2 = vcombine.low %v841_v55, %v845_v56 }
 0x1b5   :  { %v8369_v15 = vpack.c.bf16 %v689_v12, %v689_v12  ;;  %v691_v16 = vsel %vm683_vm5, %v676_v3, %v687_v10  ;;  %v6258_v3 = vcombine.high %v705_v61, %v709_v62  ;;  %v6386_v4 = vcombine.high %v833_v63, %v837_v0  ;;  %v697_v5 = vld [vmem:[%s10441_s5 + $0x8] sm:$0xff] }
 0x1b6   :  { %v8379_v20 = vpack.c.bf16 %v691_v16, %v691_v16  ;;  %v701_v6 = vld [vmem:[%s10441_s5 + $0x28] sm:$0xff]  ;;  %v6257_v9 = vcombine.low %v705_v61, %v709_v62  ;;  %v6385_v10 = vcombine.low %v833_v63, %v837_v0 }
 0x1b7   :  { %2306 = vmatprep.mubr.bf16.mxu1 %v8369_v15  ;;  %v825_v7 = vld [vmem:[%s10441_s5 + $0x408] sm:$0xff]  ;;  %v6250_v11 = vcombine.high %v697_v5, %v701_v6  ;;  %v6249_v18 = vcombine.low %v697_v5, %v701_v6 }
 0x1b8   :  { %2347 = vmatprep.mubr.bf16.mxu0 %v8379_v20  ;;  %2307 = vmatmul.mubr.bf16.vlgmr.msra.gmra.mxu1 %v8377_v19  ;;  %v829_v8 = vld [vmem:[%s10441_s5 + $0x428] sm:$0xff] }
 0x1b9   :  { %2348 = vmatmul.mubr.bf16.vlgmr.msra.gmra.mxu0 %v8381_v21  ;;  %2357 = vmatpush1.bf16.msra.mxu1 %v6305_v48  ;;  %v6409_v48 = vcombine.low %v857_v37, %v861_v38  ;;  %v6378_v12 = vcombine.high %v825_v7, %v829_v8  ;;  %v945_v16 = vld [vmem:[%s10441_s5 + $0x7c8] sm:$0xff] }
 0x1ba   :  { %2398 = vmatpush1.bf16.msra.mxu0 %v6433_v49  ;;  %2388 = vmatprep.mubr.bf16.mxu1 %v8369_v15  ;;  %v6274_v49 = vcombine.high %v721_v43, %v725_v44  ;;  %v6498_v24 = vcombine.high %v945_v16, %v949_v17  ;;  %v805_v37 = vld [vmem:[%s10441_s5 + $0x368] sm:$0xff] }
 0x1bb   :  { %2429 = vmatprep.mubr.bf16.mxu0 %v8379_v20  ;;  %2358 = vmatprep.subr.bf16.mxu1 %v6298_v22  ;;  %v6377_v22 = vcombine.low %v825_v7, %v829_v8  ;;  %v929_v38 = vld [vmem:[%s10441_s5 + $0x748] sm:$0xff] }
 0x1bc   :  { %2399 = vmatprep.subr.bf16.mxu0 %v6426_v25  ;;  %v809_v25 = vld [vmem:[%s10441_s5 + $0x388] sm:$0xff] }
 0x1bd   :  { %2359 = vmatpush1.bf16.msra.mxu1 %v6297_v31  ;;  %v941_v31 = vld [vmem:[%s10441_s5 + $0x7a8] sm:$0xff] }
 0x1be   :  { %2400 = vmatpush1.bf16.msra.mxu0 %v6425_v32  ;;  %2360 = vmatprep.subr.bf16.mxu1 %v6290_v33  ;;  %v6369_v32 = vcombine.low %v817_v13, %v821_v14  ;;  %v6497_v33 = vcombine.low %v945_v16, %v949_v17  ;;  %v6490_v35 = vcombine.high %v937_v28, %v941_v31  ;;  %v793_v44 = vld [vmem:[%s10441_s5 + $0x308] sm:$0xff] }
 0x1bf   :  { %2401 = vmatprep.subr.bf16.mxu0 %v6418_v34  ;;  %v6362_v34 = vcombine.high %v809_v25, %v813_v26  ;;  %v797_v45 = vld [vmem:[%s10441_s5 + $0x328] sm:$0xff] }
 0x1c0   :  { %v921_v46 = vld [vmem:[%s10441_s5 + $0x708] sm:$0xff] }
 0x1c1   :  { %2361 = vmatpush1.bf16.msra.mxu1 %v6289_v39  ;;  %v933_v39 = vld [vmem:[%s10441_s5 + $0x768] sm:$0xff] }
 0x1c2   :  { %2402 = vmatpush1.bf16.msra.mxu0 %v6417_v40  ;;  %2362 = vmatprep.subr.bf16.mxu1 %v6282_v41  ;;  %v6361_v40 = vcombine.low %v809_v25, %v813_v26  ;;  %v6489_v41 = vcombine.low %v937_v28, %v941_v31  ;;  %v6482_v43 = vcombine.high %v929_v38, %v933_v39  ;;  %v785_v54 = vld [vmem:[%s10441_s5 + $0x2c8] sm:$0xff]  ;;  %v754_v26 = vld [vmem:[%s10441_s5 + $0x1d0] sm:$0xff] }
 0x1c3   :  { %2403 = vmatprep.subr.bf16.mxu0 %v6410_v42  ;;  %v6354_v42 = vcombine.high %v801_v36, %v805_v37  ;;  %v789_v55 = vld [vmem:[%s10441_s5 + $0x2e8] sm:$0xff]  ;;  %v758_v28 = vld [vmem:[%s10441_s5 + $0x1f0] sm:$0xff] }
 0x1c4   :  { %v913_v56 = vld [vmem:[%s10441_s5 + $0x6c8] sm:$0xff]  ;;  %v882_v31 = vld [vmem:[%s10441_s5 + $0x5d0] sm:$0xff] }
 0x1c5   :  { %2363 = vmatpush1.bf16.msra.mxu1 %v6281_v47  ;;  %v925_v47 = vld [vmem:[%s10441_s5 + $0x728] sm:$0xff] }
 0x1c6   :  { %2404 = vmatpush1.bf16.msra.mxu0 %v6409_v48  ;;  %2364 = vmatprep.subr.bf16.mxu1 %v6274_v49  ;;  %v6353_v48 = vcombine.low %v801_v36, %v805_v37  ;;  %v6481_v49 = vcombine.low %v929_v38, %v933_v39  ;;  %v6474_v52 = vcombine.high %v921_v46, %v925_v47  ;;  %v777_v62 = vld [vmem:[%s10441_s5 + $0x288] sm:$0xff]  ;;  %v746_v37 = vld [vmem:[%s10441_s5 + $0x190] sm:$0xff] }
 0x1c7   :  { %2405 = vmatprep.subr.bf16.mxu0 %v6402_v50  ;;  %v6346_v50 = vcombine.high %v793_v44, %v797_v45  ;;  %v781_v63 = vld [vmem:[%s10441_s5 + $0x2a8] sm:$0xff]  ;;  %v750_v38 = vld [vmem:[%s10441_s5 + $0x1b0] sm:$0xff]  ;;  %v6307_v39 = vcombine.low %v754_v26, %v758_v28 }
 0x1c8   :  { %v905_v0 = vld [vmem:[%s10441_s5 + $0x688] sm:$0xff] }
 0x1c9   :  { %2365 = vmatpush1.bf16.msra.mxu1 %v6273_v57  ;;  %v917_v57 = vld [vmem:[%s10441_s5 + $0x6e8] sm:$0xff] }
 0x1ca   :  { %2406 = vmatpush1.bf16.msra.mxu0 %v6401_v58  ;;  %2366 = vmatprep.subr.bf16.mxu1 %v6266_v59  ;;  %v6345_v58 = vcombine.low %v793_v44, %v797_v45  ;;  %v6473_v59 = vcombine.low %v921_v46, %v925_v47  ;;  %v6466_v61 = vcombine.high %v913_v56, %v917_v57  ;;  %v769_v6 = vld [vmem:[%s10441_s5 + $0x248] sm:$0xff]  ;;  %v738_v44 = vld [vmem:[%s10441_s5 + $0x150] sm:$0xff] }
 0x1cb   :  { %2407 = vmatprep.subr.bf16.mxu0 %v6394_v60  ;;  %v6338_v60 = vcombine.high %v785_v54, %v789_v55  ;;  %v773_v7 = vld [vmem:[%s10441_s5 + $0x268] sm:$0xff]  ;;  %v742_v45 = vld [vmem:[%s10441_s5 + $0x170] sm:$0xff] }
 0x1cc   :  { %v897_v8 = vld [vmem:[%s10441_s5 + $0x648] sm:$0xff]  ;;  %v866_v47 = vld [vmem:[%s10441_s5 + $0x550] sm:$0xff] }
 0x1cd   :  { %2367 = vmatpush1.bf16.msra.mxu1 %v6265_v1  ;;  %v909_v1 = vld [vmem:[%s10441_s5 + $0x6a8] sm:$0xff] }
 0x1ce   :  { %2408 = vmatpush1.bf16.msra.mxu0 %v6393_v2  ;;  %2368 = vmatprep.subr.bf16.mxu1 %v6258_v3  ;;  %v6337_v2 = vcombine.low %v785_v54, %v789_v55  ;;  %v6465_v3 = vcombine.low %v913_v56, %v917_v57  ;;  %v6458_v5 = vcombine.high %v905_v0, %v909_v1  ;;  %v761_v14 = vld [vmem:[%s10441_s5 + $0x208] sm:$0xff]  ;;  %v730_v55 = vld [vmem:[%s10441_s5 + $0x110] sm:$0xff] }
 0x1cf   :  { %2409 = vmatprep.subr.bf16.mxu0 %v6386_v4  ;;  %v6330_v4 = vcombine.high %v777_v62, %v781_v63  ;;  %v765_v16 = vld [vmem:[%s10441_s5 + $0x228] sm:$0xff]  ;;  %v734_v56 = vld [vmem:[%s10441_s5 + $0x130] sm:$0xff] }
 0x1d0   :  { %v889_v17 = vld [vmem:[%s10441_s5 + $0x608] sm:$0xff]  ;;  %v858_v57 = vld [vmem:[%s10441_s5 + $0x510] sm:$0xff] }
 0x1d1   :  { %2369 = vmatpush1.bf16.msra.mxu1 %v6257_v9  ;;  %v901_v9 = vld [vmem:[%s10441_s5 + $0x668] sm:$0xff] }
 0x1d2   :  { %2410 = vmatpush1.bf16.msra.mxu0 %v6385_v10  ;;  %2370 = vmatprep.subr.bf16.mxu1 %v6250_v11  ;;  %v6329_v10 = vcombine.low %v777_v62, %v781_v63  ;;  %v6457_v11 = vcombine.low %v905_v0, %v909_v1  ;;  %v6450_v13 = vcombine.high %v897_v8, %v901_v9  ;;  %v722_v63 = vld [vmem:[%s10441_s5 + $0xd0] sm:$0xff] }
 0x1d3   :  { %2411 = vmatprep.subr.bf16.mxu0 %v6378_v12  ;;  %v6322_v12 = vcombine.high %v769_v6, %v773_v7  ;;  %v726_v0 = vld [vmem:[%s10441_s5 + $0xf0] sm:$0xff] }
 0x1d4   :  { %v850_v1 = vld [vmem:[%s10441_s5 + $0x4d0] sm:$0xff] }
 0x1d5   :  { %2371 = vmatpush1.bf16.msra.mxu1 %v6249_v18  ;;  %v893_v18 = vld [vmem:[%s10441_s5 + $0x628] sm:$0xff] }
 0x1d6   :  { %2412 = vmatpush1.bf16.msra.mxu0 %v6377_v22  ;;  %2372 = vmatprep.subr.bf16.mxu1 %v6370_v23  ;;  %v6321_v22 = vcombine.low %v769_v6, %v773_v7  ;;  %v6449_v23 = vcombine.low %v897_v8, %v901_v9  ;;  %v6442_v25 = vcombine.high %v889_v17, %v893_v18  ;;  %v714_v7 = vld [vmem:[%s10441_s5 + $0x90] sm:$0xff] }
 0x1d7   :  { %2413 = vmatprep.subr.bf16.mxu0 %v6498_v24  ;;  %v6314_v24 = vcombine.high %v761_v14, %v765_v16  ;;  %v718_v8 = vld [vmem:[%s10441_s5 + $0xb0] sm:$0xff] }
 0x1d8   :  { %v842_v9 = vld [vmem:[%s10441_s5 + $0x490] sm:$0xff] }
 0x1d9   :  { %2373 = vmatpush2.bf16.msra.mxu1 %v6369_v32  ;;  %v886_v32 = vld [vmem:[%s10441_s5 + $0x5f0] sm:$0xff] }
 0x1da   :  { %2414 = vmatpush2.bf16.msra.mxu0 %v6497_v33  ;;  %2374 = vmatprep.subr.bf16.mxu1 %v6362_v34  ;;  %v6313_v33 = vcombine.low %v761_v14, %v765_v16  ;;  %v6441_v34 = vcombine.low %v889_v17, %v893_v18  ;;  %v6436_v36 = vcombine.high %v882_v31, %v886_v32  ;;  %v706_v16 = vld [vmem:[%s10441_s5 + $0x50] sm:$0xff] }
 0x1db   :  { %2415 = vmatprep.subr.bf16.mxu0 %v6490_v35  ;;  %v6308_v35 = vcombine.high %v754_v26, %v758_v28  ;;  %v710_v17 = vld [vmem:[%s10441_s5 + $0x70] sm:$0xff] }
 0x1dc   :  { %v834_v18 = vld [vmem:[%s10441_s5 + $0x450] sm:$0xff] }
 0x1dd   :  { %2375 = vmatpush2.bf16.msra.mxu1 %v6361_v40  ;;  %v874_v40 = vld [vmem:[%s10441_s5 + $0x590] sm:$0xff] }
 0x1de   :  { %2416 = vmatpush2.bf16.msra.mxu0 %v6489_v41  ;;  %2376 = vmatprep.subr.bf16.mxu1 %v6354_v42  ;;  %v878_v41 = vld [vmem:[%s10441_s5 + $0x5b0] sm:$0xff]  ;;  %v6435_v42 = vcombine.low %v882_v31, %v886_v32 }
 0x1df   :  { %2417 = vmatprep.subr.bf16.mxu0 %v6482_v43  ;;  %v6300_v43 = vcombine.high %v746_v37, %v750_v38  ;;  %v6428_v46 = vcombine.high %v874_v40, %v878_v41  ;;  %v698_v28 = vld [vmem:[%s10441_s5 + $0x10] sm:$0xff] }
 0x1e0   :  { %v702_v31 = vld [vmem:[%s10441_s5 + $0x30] sm:$0xff] }
 0x1e1   :  { %2377 = vmatpush2.bf16.msra.mxu1 %v6353_v48  ;;  %v870_v48 = vld [vmem:[%s10441_s5 + $0x570] sm:$0xff] }
 0x1e2   :  { %2418 = vmatpush2.bf16.msra.mxu0 %v6481_v49  ;;  %2378 = vmatprep.subr.bf16.mxu1 %v6346_v50  ;;  %v6299_v49 = vcombine.low %v746_v37, %v750_v38  ;;  %v6427_v50 = vcombine.low %v874_v40, %v878_v41  ;;  %v6420_v54 = vcombine.high %v866_v47, %v870_v48  ;;  %v826_v32 = vld [vmem:[%s10441_s5 + $0x410] sm:$0xff] }
 0x1e3   :  { %2419 = vmatprep.subr.bf16.mxu0 %v6474_v52  ;;  %v6292_v52 = vcombine.high %v738_v44, %v742_v45  ;;  %v818_v38 = vld [vmem:[%s10441_s5 + $0x3d0] sm:$0xff] }
 0x1e4   :  { %v946_v40 = vld [vmem:[%s10441_s5 + $0x7d0] sm:$0xff] }
 0x1e5   :  { %2379 = vmatpush2.bf16.msra.mxu1 %v6345_v58  ;;  %v862_v58 = vld [vmem:[%s10441_s5 + $0x530] sm:$0xff] }
 0x1e6   :  { %2420 = vmatpush2.bf16.msra.mxu0 %v6473_v59  ;;  %2380 = vmatprep.subr.bf16.mxu1 %v6338_v60  ;;  %v6291_v59 = vcombine.low %v738_v44, %v742_v45  ;;  %v6419_v60 = vcombine.low %v866_v47, %v870_v48  ;;  %v6412_v62 = vcombine.high %v858_v57, %v862_v58  ;;  %v950_v41 = vld [vmem:[%s10441_s5 + $0x7f0] sm:$0xff] }
 0x1e7   :  { %2421 = vmatprep.subr.bf16.mxu0 %v6466_v61  ;;  %v6284_v61 = vcombine.high %v730_v55, %v734_v56  ;;  %v6500_v45 = vcombine.high %v946_v40, %v950_v41  ;;  %v814_v47 = vld [vmem:[%s10441_s5 + $0x3b0] sm:$0xff] }
 0x1e8   :  { %v938_v48 = vld [vmem:[%s10441_s5 + $0x790] sm:$0xff] }
 0x1e9   :  { %2381 = vmatpush2.bf16.msra.mxu1 %v6337_v2  ;;  %v854_v2 = vld [vmem:[%s10441_s5 + $0x4f0] sm:$0xff] }
 0x1ea   :  { %2422 = vmatpush2.bf16.msra.mxu0 %v6465_v3  ;;  %2382 = vmatprep.subr.bf16.mxu1 %v6330_v4  ;;  %v6283_v3 = vcombine.low %v730_v55, %v734_v56  ;;  %v6411_v4 = vcombine.low %v858_v57, %v862_v58  ;;  %v6404_v6 = vcombine.high %v850_v1, %v854_v2  ;;  %v802_v56 = vld [vmem:[%s10441_s5 + $0x350] sm:$0xff] }
 0x1eb   :  { %2423 = vmatprep.subr.bf16.mxu0 %v6458_v5  ;;  %v6276_v5 = vcombine.high %v722_v63, %v726_v0  ;;  %v806_v57 = vld [vmem:[%s10441_s5 + $0x370] sm:$0xff] }
 0x1ec   :  { %v930_v58 = vld [vmem:[%s10441_s5 + $0x750] sm:$0xff] }
 0x1ed   :  { %2383 = vmatpush2.bf16.msra.mxu1 %v6329_v10  ;;  %v846_v10 = vld [vmem:[%s10441_s5 + $0x4b0] sm:$0xff] }
 0x1ee   :  { %2424 = vmatpush2.bf16.msra.mxu0 %v6457_v11  ;;  %2384 = vmatprep.subr.bf16.mxu1 %v6322_v12  ;;  %v6275_v11 = vcombine.low %v722_v63, %v726_v0  ;;  %v6403_v12 = vcombine.low %v850_v1, %v854_v2  ;;  %v6396_v14 = vcombine.high %v842_v9, %v846_v10  ;;  %v794_v0 = vld [vmem:[%s10441_s5 + $0x310] sm:$0xff] }
 0x1ef   :  { %2425 = vmatprep.subr.bf16.mxu0 %v6450_v13  ;;  %v6268_v13 = vcombine.high %v714_v7, %v718_v8  ;;  %v798_v1 = vld [vmem:[%s10441_s5 + $0x330] sm:$0xff] }
 0x1f0   :  { %v922_v2 = vld [vmem:[%s10441_s5 + $0x710] sm:$0xff] }
 0x1f1   :  { %2385 = vmatpush2.bf16.msra.mxu1 %v6321_v22  ;;  %v838_v22 = vld [vmem:[%s10441_s5 + $0x470] sm:$0xff] }
 0x1f2   :  { %2426 = vmatpush2.bf16.msra.mxu0 %v6449_v23  ;;  %2386 = vmatprep.subr.bf16.mxu1 %v6314_v24  ;;  %v6267_v23 = vcombine.low %v714_v7, %v718_v8  ;;  %v6395_v24 = vcombine.low %v842_v9, %v846_v10  ;;  %v6388_v26 = vcombine.high %v834_v18, %v838_v22  ;;  %v786_v8 = vld [vmem:[%s10441_s5 + $0x2d0] sm:$0xff] }
 0x1f3   :  { %2427 = vmatprep.subr.bf16.mxu0 %v6442_v25  ;;  %v6260_v25 = vcombine.high %v706_v16, %v710_v17  ;;  %v790_v9 = vld [vmem:[%s10441_s5 + $0x2f0] sm:$0xff] }
 0x1f4   :  { %v914_v10 = vld [vmem:[%s10441_s5 + $0x6d0] sm:$0xff] }
 0x1f5   :  { %2387 = vmatpush2.bf16.msra.mxu1 %v6313_v33  ;;  %v830_v33 = vld [vmem:[%s10441_s5 + $0x430] sm:$0xff] }
 0x1f6   :  { %2428 = vmatpush2.bf16.msra.mxu0 %v6441_v34  ;;  %2438 = vmatprep.subr.bf16.mxu1 %v6308_v35  ;;  %v6259_v34 = vcombine.low %v706_v16, %v710_v17  ;;  %v6387_v35 = vcombine.low %v834_v18, %v838_v22  ;;  %v6380_v37 = vcombine.high %v826_v32, %v830_v33  ;;  %v778_v17 = vld [vmem:[%s10441_s5 + $0x290] sm:$0xff] }
 0x1f7   :  { %2479 = vmatprep.subr.bf16.mxu0 %v6436_v36  ;;  %v6252_v36 = vcombine.high %v698_v28, %v702_v31  ;;  %v782_v18 = vld [vmem:[%s10441_s5 + $0x2b0] sm:$0xff] }
 0x1f8   :  { %2389 = vmatmul.mubr.bf16.vlgmr.msra.gmra.mxu1 %v8377_v19  ;;  %v906_v22 = vld [vmem:[%s10441_s5 + $0x690] sm:$0xff] }
 0x1f9   :  { %2430 = vmatmul.mubr.bf16.vlgmr.msra.gmra.mxu0 %v8381_v21  ;;  %2439 = vmatpush1.bf16.msra.mxu1 %v6307_v39  ;;  %v822_v39 = vld [vmem:[%s10441_s5 + $0x3f0] sm:$0xff] }
 0x1fa   :  { %2470 = vmatprep.mubr.bf16.mxu1 %v8369_v15  ;;  %2480 = vmatpush1.bf16.msra.mxu0 %v6435_v42  ;;  %v6251_v42 = vcombine.low %v698_v28, %v702_v31  ;;  %v6372_v44 = vcombine.high %v818_v38, %v822_v39  ;;  %v770_v31 = vld [vmem:[%s10441_s5 + $0x250] sm:$0xff] }
 0x1fb   :  { %2511 = vmatprep.mubr.bf16.mxu0 %v8379_v20  ;;  %2440 = vmatprep.subr.bf16.mxu1 %v6300_v43  ;;  %v6379_v43 = vcombine.low %v826_v32, %v830_v33  ;;  %v774_v32 = vld [vmem:[%s10441_s5 + $0x270] sm:$0xff] }
 0x1fc   :  { %2481 = vmatprep.subr.bf16.mxu0 %v6428_v46  ;;  %v810_v46 = vld [vmem:[%s10441_s5 + $0x390] sm:$0xff] }
 0x1fd   :  { %2441 = vmatpush1.bf16.msra.mxu1 %v6299_v49  ;;  %v942_v49 = vld [vmem:[%s10441_s5 + $0x7b0] sm:$0xff] }
 0x1fe   :  { %2482 = vmatpush1.bf16.msra.mxu0 %v6427_v50  ;;  %2442 = vmatprep.subr.bf16.mxu1 %v6292_v52  ;;  %v6371_v50 = vcombine.low %v818_v38, %v822_v39  ;;  %v6499_v52 = vcombine.low %v946_v40, %v950_v41  ;;  %v6492_v55 = vcombine.high %v938_v48, %v942_v49  ;;  %v898_v33 = vld [vmem:[%s10441_s5 + $0x650] sm:$0xff] }
 0x1ff   :  { %2483 = vmatprep.subr.bf16.mxu0 %v6420_v54  ;;  %v6364_v54 = vcombine.high %v810_v46, %v814_v47  ;;  %v762_v39 = vld [vmem:[%s10441_s5 + $0x210] sm:$0xff] }
 0x200   :  { %v766_v40 = vld [vmem:[%s10441_s5 + $0x230] sm:$0xff] }
 0x201   :  { %2443 = vmatpush1.bf16.msra.mxu1 %v6291_v59  ;;  %v934_v59 = vld [vmem:[%s10441_s5 + $0x770] sm:$0xff] }
 0x202   :  { %2484 = vmatpush1.bf16.msra.mxu0 %v6419_v60  ;;  %2444 = vmatprep.subr.bf16.mxu1 %v6284_v61  ;;  %v6363_v60 = vcombine.low %v810_v46, %v814_v47  ;;  %v6491_v61 = vcombine.low %v938_v48, %v942_v49  ;;  %v6484_v63 = vcombine.high %v930_v58, %v934_v59  ;;  %v890_v41 = vld [vmem:[%s10441_s5 + $0x610] sm:$0xff]  ;;  %v755_v47 = vld [vmem:[%s10441_s5 + $0x1d8] sm:$0xff] }
 0x203   :  { %2485 = vmatprep.subr.bf16.mxu0 %v6412_v62  ;;  %v6356_v62 = vcombine.high %v802_v56, %v806_v57  ;;  %v759_v48 = vld [vmem:[%s10441_s5 + $0x1f8] sm:$0xff] }
 0x204   :  { %v883_v49 = vld [vmem:[%s10441_s5 + $0x5d8] sm:$0xff] }
 0x205   :  { %2445 = vmatpush1.bf16.msra.mxu1 %v6283_v3  ;;  %v926_v3 = vld [vmem:[%s10441_s5 + $0x730] sm:$0xff] }
 0x206   :  { %2486 = vmatpush1.bf16.msra.mxu0 %v6411_v4  ;;  %2446 = vmatprep.subr.bf16.mxu1 %v6276_v5  ;;  %v6355_v4 = vcombine.low %v802_v56, %v806_v57  ;;  %v6483_v5 = vcombine.low %v930_v58, %v934_v59  ;;  %v6476_v7 = vcombine.high %v922_v2, %v926_v3  ;;  %v747_v57 = vld [vmem:[%s10441_s5 + $0x198] sm:$0xff] }
 0x207   :  { %2487 = vmatprep.subr.bf16.mxu0 %v6404_v6  ;;  %v6348_v6 = vcombine.high %v794_v0, %v798_v1  ;;  %v751_v58 = vld [vmem:[%s10441_s5 + $0x1b8] sm:$0xff]  ;;  %v6309_v59 = vcombine.low %v755_v47, %v759_v48 }
 0x209   :  { %2447 = vmatpush1.bf16.msra.mxu1 %v6275_v11  ;;  %v918_v11 = vld [vmem:[%s10441_s5 + $0x6f0] sm:$0xff] }
 0x20a   :  { %2488 = vmatpush1.bf16.msra.mxu0 %v6403_v12  ;;  %2448 = vmatprep.subr.bf16.mxu1 %v6268_v13  ;;  %v6347_v12 = vcombine.low %v794_v0, %v798_v1  ;;  %v6475_v13 = vcombine.low %v922_v2, %v926_v3  ;;  %v6468_v16 = vcombine.high %v914_v10, %v918_v11  ;;  %v739_v0 = vld [vmem:[%s10441_s5 + $0x158] sm:$0xff] }
 0x20b   :  { %2489 = vmatprep.subr.bf16.mxu0 %v6396_v14  ;;  %v6340_v14 = vcombine.high %v786_v8, %v790_v9  ;;  %v743_v1 = vld [vmem:[%s10441_s5 + $0x178] sm:$0xff] }
 0x20c   :  { %v867_v3 = vld [vmem:[%s10441_s5 + $0x558] sm:$0xff] }
 0x20d   :  { %2449 = vmatpush1.bf16.msra.mxu1 %v6267_v23  ;;  %v910_v23 = vld [vmem:[%s10441_s5 + $0x6b0] sm:$0xff] }
 0x20e   :  { %2490 = vmatpush1.bf16.msra.mxu0 %v6395_v24  ;;  %2450 = vmatprep.subr.bf16.mxu1 %v6260_v25  ;;  %v6339_v24 = vcombine.low %v786_v8, %v790_v9  ;;  %v6467_v25 = vcombine.low %v914_v10, %v918_v11  ;;  %v6460_v28 = vcombine.high %v906_v22, %v910_v23  ;;  %v731_v9 = vld [vmem:[%s10441_s5 + $0x118] sm:$0xff] }
 0x20f   :  { %2491 = vmatprep.subr.bf16.mxu0 %v6388_v26  ;;  %v6332_v26 = vcombine.high %v778_v17, %v782_v18  ;;  %v735_v10 = vld [vmem:[%s10441_s5 + $0x138] sm:$0xff] }
 0x210   :  { %v863_v11 = vld [vmem:[%s10441_s5 + $0x538] sm:$0xff] }
 0x211   :  { %2451 = vmatpush1.bf16.msra.mxu1 %v6259_v34  ;;  %v902_v34 = vld [vmem:[%s10441_s5 + $0x670] sm:$0xff] }
 0x212   :  { %2492 = vmatpush1.bf16.msra.mxu0 %v6387_v35  ;;  %2452 = vmatprep.subr.bf16.mxu1 %v6252_v36  ;;  %v6331_v35 = vcombine.low %v778_v17, %v782_v18  ;;  %v6459_v36 = vcombine.low %v906_v22, %v910_v23  ;;  %v6452_v38 = vcombine.high %v898_v33, %v902_v34  ;;  %v727_v17 = vld [vmem:[%s10441_s5 + $0xf8] sm:$0xff] }
 0x213   :  { %2493 = vmatprep.subr.bf16.mxu0 %v6380_v37  ;;  %v6324_v37 = vcombine.high %v770_v31, %v774_v32  ;;  %v851_v18 = vld [vmem:[%s10441_s5 + $0x4d8] sm:$0xff]  ;;  %v6285_v23 = vcombine.low %v731_v9, %v735_v10 }
 0x214   :  { %v855_v22 = vld [vmem:[%s10441_s5 + $0x4f8] sm:$0xff] }
 0x215   :  { %2453 = vmatpush1.bf16.msra.mxu1 %v6251_v42  ;;  %v894_v42 = vld [vmem:[%s10441_s5 + $0x630] sm:$0xff] }
 0x216   :  { %2494 = vmatpush1.bf16.msra.mxu0 %v6379_v43  ;;  %2454 = vmatprep.subr.bf16.mxu1 %v6372_v44  ;;  %v6323_v43 = vcombine.low %v770_v31, %v774_v32  ;;  %v6451_v44 = vcombine.low %v898_v33, %v902_v34  ;;  %v6444_v46 = vcombine.high %v890_v41, %v894_v42  ;;  %v719_v31 = vld [vmem:[%s10441_s5 + $0xb8] sm:$0xff] }
 0x217   :  { %2495 = vmatprep.subr.bf16.mxu0 %v6500_v45  ;;  %v6316_v45 = vcombine.high %v762_v39, %v766_v40  ;;  %v843_v32 = vld [vmem:[%s10441_s5 + $0x498] sm:$0xff] }
 0x218   :  { %v847_v33 = vld [vmem:[%s10441_s5 + $0x4b8] sm:$0xff] }
 0x219   :  { %2455 = vmatpush2.bf16.msra.mxu1 %v6371_v50  ;;  %v887_v50 = vld [vmem:[%s10441_s5 + $0x5f8] sm:$0xff] }
 0x21a   :  { %2496 = vmatpush2.bf16.msra.mxu0 %v6499_v52  ;;  %2456 = vmatprep.subr.bf16.mxu1 %v6364_v54  ;;  %v6315_v52 = vcombine.low %v762_v39, %v766_v40  ;;  %v6443_v54 = vcombine.low %v890_v41, %v894_v42  ;;  %v6438_v56 = vcombine.high %v883_v49, %v887_v50  ;;  %v711_v39 = vld [vmem:[%s10441_s5 + $0x78] sm:$0xff] }
 0x21b   :  { %2497 = vmatprep.subr.bf16.mxu0 %v6492_v55  ;;  %v6310_v55 = vcombine.high %v755_v47, %v759_v48  ;;  %v835_v40 = vld [vmem:[%s10441_s5 + $0x458] sm:$0xff] }
 0x21c   :  { %v839_v41 = vld [vmem:[%s10441_s5 + $0x478] sm:$0xff] }
 0x21d   :  { %2457 = vmatpush2.bf16.msra.mxu1 %v6363_v60  ;;  %v875_v60 = vld [vmem:[%s10441_s5 + $0x598] sm:$0xff] }
 0x21e   :  { %2498 = vmatpush2.bf16.msra.mxu0 %v6491_v61  ;;  %2458 = vmatprep.subr.bf16.mxu1 %v6356_v62  ;;  %v879_v61 = vld [vmem:[%s10441_s5 + $0x5b8] sm:$0xff]  ;;  %v6437_v62 = vcombine.low %v883_v49, %v887_v50 }
 0x21f   :  { %2499 = vmatprep.subr.bf16.mxu0 %v6484_v63  ;;  %v6302_v63 = vcombine.high %v747_v57, %v751_v58  ;;  %v6430_v2 = vcombine.high %v875_v60, %v879_v61  ;;  %v703_v47 = vld [vmem:[%s10441_s5 + $0x38] sm:$0xff] }
 0x220   :  { %v827_v48 = vld [vmem:[%s10441_s5 + $0x418] sm:$0xff] }
 0x221   :  { %2459 = vmatpush2.bf16.msra.mxu1 %v6355_v4  ;;  %v871_v4 = vld [vmem:[%s10441_s5 + $0x578] sm:$0xff] }
 0x222   :  { %2500 = vmatpush2.bf16.msra.mxu0 %v6483_v5  ;;  %2460 = vmatprep.subr.bf16.mxu1 %v6348_v6  ;;  %v6301_v5 = vcombine.low %v747_v57, %v751_v58  ;;  %v6429_v6 = vcombine.low %v875_v60, %v879_v61  ;;  %v6422_v8 = vcombine.high %v867_v3, %v871_v4  ;;  %v831_v49 = vld [vmem:[%s10441_s5 + $0x438] sm:$0xff] }
 0x223   :  { %2501 = vmatprep.subr.bf16.mxu0 %v6476_v7  ;;  %v6294_v7 = vcombine.high %v739_v0, %v743_v1  ;;  %v823_v57 = vld [vmem:[%s10441_s5 + $0x3f8] sm:$0xff]  ;;  %v6381_v61 = vcombine.low %v827_v48, %v831_v49 }
 0x224   :  { %v947_v58 = vld [vmem:[%s10441_s5 + $0x7d8] sm:$0xff] }
 0x225   :  { %2461 = vmatpush2.bf16.msra.mxu1 %v6347_v12  ;;  %v6421_v12 = vcombine.low %v867_v3, %v871_v4  ;;  %v943_v3 = vld [vmem:[%s10441_s5 + $0x7b8] sm:$0xff] }
 0x226   :  { %2502 = vmatpush2.bf16.msra.mxu0 %v6475_v13  ;;  %2462 = vmatprep.subr.bf16.mxu1 %v6340_v14  ;;  %v6286_v13 = vcombine.high %v731_v9, %v735_v10  ;;  %v807_v9 = vld [vmem:[%s10441_s5 + $0x378] sm:$0xff] }
 0x227   :  { %2503 = vmatprep.subr.bf16.mxu0 %v6468_v16  ;;  %v723_v16 = vld [vmem:[%s10441_s5 + $0xd8] sm:$0xff] }
 0x228   :  { %v6277_v34 = vcombine.low %v723_v16, %v727_v17  ;;  %v931_v10 = vld [vmem:[%s10441_s5 + $0x758] sm:$0xff] }
 0x229   :  { %2463 = vmatpush2.bf16.msra.mxu1 %v6339_v24 }
 0x22a   :  { %2504 = vmatpush2.bf16.msra.mxu0 %v6467_v25  ;;  %2464 = vmatprep.subr.bf16.mxu1 %v6332_v26  ;;  %v6278_v25 = vcombine.high %v723_v16, %v727_v17  ;;  %v6406_v26 = vcombine.high %v851_v18, %v855_v22  ;;  %v799_v16 = vld [vmem:[%s10441_s5 + $0x338] sm:$0xff] }
 0x22b   :  { %2505 = vmatprep.subr.bf16.mxu0 %v6460_v28  ;;  %v715_v28 = vld [vmem:[%s10441_s5 + $0x98] sm:$0xff] }
 0x22c   :  { %v6269_v42 = vcombine.low %v715_v28, %v719_v31  ;;  %v923_v17 = vld [vmem:[%s10441_s5 + $0x718] sm:$0xff] }
 0x22d   :  { %2465 = vmatpush2.bf16.msra.mxu1 %v6331_v35  ;;  %v6405_v35 = vcombine.low %v851_v18, %v855_v22  ;;  %v927_v18 = vld [vmem:[%s10441_s5 + $0x738] sm:$0xff] }
 0x22e   :  { %2506 = vmatpush2.bf16.msra.mxu0 %v6459_v36  ;;  %2466 = vmatprep.subr.bf16.mxu1 %v6324_v37  ;;  %v6270_v36 = vcombine.high %v715_v28, %v719_v31  ;;  %v6398_v37 = vcombine.high %v843_v32, %v847_v33  ;;  %v791_v28 = vld [vmem:[%s10441_s5 + $0x2f8] sm:$0xff] }
 0x22f   :  { %2507 = vmatprep.subr.bf16.mxu0 %v6452_v38  ;;  %v707_v38 = vld [vmem:[%s10441_s5 + $0x58] sm:$0xff] }
 0x230   :  { %v6261_v50 = vcombine.low %v707_v38, %v711_v39  ;;  %v915_v31 = vld [vmem:[%s10441_s5 + $0x6d8] sm:$0xff] }
 0x231   :  { %2467 = vmatpush2.bf16.msra.mxu1 %v6323_v43  ;;  %v6397_v43 = vcombine.low %v843_v32, %v847_v33  ;;  %v919_v32 = vld [vmem:[%s10441_s5 + $0x6f8] sm:$0xff] }
 0x232   :  { %2508 = vmatpush2.bf16.msra.mxu0 %v6451_v44  ;;  %2468 = vmatprep.subr.bf16.mxu1 %v6316_v45  ;;  %v6262_v44 = vcombine.high %v707_v38, %v711_v39  ;;  %v6390_v45 = vcombine.high %v835_v40, %v839_v41  ;;  %v783_v38 = vld [vmem:[%s10441_s5 + $0x2b8] sm:$0xff] }
 0x233   :  { %2509 = vmatprep.subr.bf16.mxu0 %v6444_v46  ;;  %v699_v46 = vld [vmem:[%s10441_s5 + $0x18] sm:$0xff] }
 0x234   :  { %v6253_v60 = vcombine.low %v699_v46, %v703_v47  ;;  %v907_v39 = vld [vmem:[%s10441_s5 + $0x698] sm:$0xff] }
 0x235   :  { %2469 = vmatpush2.bf16.msra.mxu1 %v6315_v52  ;;  %v6389_v52 = vcombine.low %v835_v40, %v839_v41  ;;  %v911_v40 = vld [vmem:[%s10441_s5 + $0x6b8] sm:$0xff] }
 0x236   :  { %2510 = vmatpush2.bf16.msra.mxu0 %v6443_v54  ;;  %2520 = vmatprep.subr.bf16.mxu1 %v6310_v55  ;;  %v6254_v54 = vcombine.high %v699_v46, %v703_v47  ;;  %v6382_v55 = vcombine.high %v827_v48, %v831_v49  ;;  %v775_v46 = vld [vmem:[%s10441_s5 + $0x278] sm:$0xff] }
 0x237   :  { %2561 = vmatprep.subr.bf16.mxu0 %v6438_v56  ;;  %v819_v56 = vld [vmem:[%s10441_s5 + $0x3d8] sm:$0xff] }
 0x238   :  { %2471 = vmatmul.mubr.bf16.vlgmr.msra.gmra.mxu1 %v8377_v19  ;;  %v6373_v4 = vcombine.low %v819_v56, %v823_v57  ;;  %v899_v47 = vld [vmem:[%s10441_s5 + $0x658] sm:$0xff] }
 0x239   :  { %2512 = vmatmul.mubr.bf16.vlgmr.msra.gmra.mxu0 %v8381_v21  ;;  %2521 = vmatpush1.bf16.msra.mxu1 %v6309_v59  ;;  %v951_v59 = vld [vmem:[%s10441_s5 + $0x7f8] sm:$0xff] }
 0x23a   :  { %2552 = vmatprep.mubr.bf16.mxu1 %v8369_v15  ;;  %2562 = vmatpush1.bf16.msra.mxu0 %v6437_v62  ;;  %v859_v15 = vld [vmem:[%s10441_s5 + $0x518] sm:$0xff]  ;;  %v6374_v62 = vcombine.high %v819_v56, %v823_v57 }
 0x23b   :  { %2593 = vmatprep.mubr.bf16.mxu0 %v8379_v20  ;;  %2522 = vmatprep.subr.bf16.mxu1 %v6302_v63  ;;  %v6293_v20 = vcombine.low %v739_v0, %v743_v1  ;;  %v6414_v14 = vcombine.high %v859_v15, %v863_v11  ;;  %v6413_v24 = vcombine.low %v859_v15, %v863_v11  ;;  %v811_v0 = vld [vmem:[%s10441_s5 + $0x398] sm:$0xff] }
 0x23c   :  { %2563 = vmatprep.subr.bf16.mxu0 %v6430_v2  ;;  %v6502_v63 = vcombine.high %v947_v58, %v951_v59  ;;  %v815_v1 = vld [vmem:[%s10441_s5 + $0x3b8] sm:$0xff] }
 0x23d   :  { %2523 = vmatpush1.bf16.msra.mxu1 %v6301_v5  ;;  %v939_v2 = vld [vmem:[%s10441_s5 + $0x798] sm:$0xff]  ;;  %v6501_v5 = vcombine.low %v947_v58, %v951_v59  ;;  %v6365_v11 = vcombine.low %v811_v0, %v815_v1 }
 0x23e   :  { %2564 = vmatpush1.bf16.msra.mxu0 %v6429_v6  ;;  %2524 = vmatprep.subr.bf16.mxu1 %v6294_v7  ;;  %v6366_v6 = vcombine.high %v811_v0, %v815_v1  ;;  %v6494_v7 = vcombine.high %v939_v2, %v943_v3  ;;  %v935_v15 = vld [vmem:[%s10441_s5 + $0x778] sm:$0xff]  ;;  %v7163_v1 = vld [vmem:[%s10443_s7 + $0x18c] ss:$28 sps:$4 sm:$0xff]  }
 0x23f   :  { %2565 = vmatprep.subr.bf16.mxu0 %v6422_v8  ;;  %v803_v8 = vld [vmem:[%s10441_s5 + $0x358] sm:$0xff] }
 0x240   :  { %v6357_v22 = vcombine.low %v803_v8, %v807_v9  ;;  %v903_v48 = vld [vmem:[%s10441_s5 + $0x678] sm:$0xff] }
 0x241   :  { %2525 = vmatpush1.bf16.msra.mxu1 %v6293_v20  ;;  %v6493_v20 = vcombine.low %v939_v2, %v943_v3  ;;  %v767_v56 = vld [vmem:[%s10441_s5 + $0x238] sm:$0xff]  ;;  %v7175_v2 = vld [vmem:[%s10443_s7 + $0x50c] ss:$28 sps:$4 sm:$0xff]  }
 0x242   :  { %2566 = vmatpush1.bf16.msra.mxu0 %v6421_v12  ;;  %2526 = vmatprep.subr.bf16.mxu1 %v6286_v13  ;;  %v6358_v12 = vcombine.high %v803_v8, %v807_v9  ;;  %v6486_v13 = vcombine.high %v931_v10, %v935_v15  ;;  %v891_v57 = vld [vmem:[%s10441_s5 + $0x618] sm:$0xff]  ;;  %v7161_v3 = vld [vmem:[%s10443_s7 + $0x188] ss:$28 sps:$4 sm:$0xff]   ;;  %v7181_v8 = vld [vmem:[%s10443_s7 + $0x4d4] ss:$28 sps:$4 sm:$0xff]  }
 0x243   :  { %2567 = vmatprep.subr.bf16.mxu0 %v6414_v14  ;;  %v795_v14 = vld [vmem:[%s10441_s5 + $0x318] sm:$0xff] }
 0x244   :  { %v6349_v33 = vcombine.low %v795_v14, %v799_v16  ;;  %v895_v58 = vld [vmem:[%s10441_s5 + $0x638] sm:$0xff] }
 0x245   :  { %2527 = vmatpush1.bf16.msra.mxu1 %v6285_v23  ;;  %v6485_v23 = vcombine.low %v931_v10, %v935_v15  ;;  %v6445_v0 = vcombine.low %v891_v57, %v895_v58  ;;  %v7164_v15 = vld [vmem:[%s10443_s7 + $0x150] ss:$28 sps:$4 sm:$0xff]  }
 0x246   :  { %2568 = vmatpush1.bf16.msra.mxu0 %v6413_v24  ;;  %2528 = vmatprep.subr.bf16.mxu1 %v6278_v25  ;;  %v6350_v24 = vcombine.high %v795_v14, %v799_v16  ;;  %v6478_v25 = vcombine.high %v923_v17, %v927_v18 }
 0x247   :  { %2569 = vmatprep.subr.bf16.mxu0 %v6406_v26  ;;  %v787_v26 = vld [vmem:[%s10441_s5 + $0x2d8] sm:$0xff] }
 0x248   :  { %v6341_v41 = vcombine.low %v787_v26, %v791_v28 }
 0x249   :  { %2529 = vmatpush1.bf16.msra.mxu1 %v6277_v34  ;;  %v6477_v34 = vcombine.low %v923_v17, %v927_v18  ;;  %v7167_v18 = vld [vmem:[%s10443_s7 + $0x118] ss:$28 sps:$4 sm:$0xff]  }
 0x24a   :  { %2570 = vmatpush1.bf16.msra.mxu0 %v6405_v35  ;;  %2530 = vmatprep.subr.bf16.mxu1 %v6270_v36  ;;  %v6342_v35 = vcombine.high %v787_v26, %v791_v28  ;;  %v6470_v36 = vcombine.high %v915_v31, %v919_v32  ;;  %v7193_v28 = vld [vmem:[%s10443_s7 + $0x464] ss:$28 sps:$4 sm:$0xff]  }
 0x24b   :  { %2571 = vmatprep.subr.bf16.mxu0 %v6398_v37  ;;  %v779_v37 = vld [vmem:[%s10441_s5 + $0x298] sm:$0xff] }
 0x24c   :  { %v6333_v49 = vcombine.low %v779_v37, %v783_v38 }
 0x24d   :  { %2531 = vmatpush1.bf16.msra.mxu1 %v6269_v42  ;;  %v6469_v42 = vcombine.low %v915_v31, %v919_v32  ;;  %v7170_v32 = vld [vmem:[%s10443_s7 + $0xe0] ss:$28 sps:$4 sm:$0xff]  }
 0x24e   :  { %2572 = vmatpush1.bf16.msra.mxu0 %v6397_v43  ;;  %2532 = vmatprep.subr.bf16.mxu1 %v6262_v44  ;;  %v6334_v43 = vcombine.high %v779_v37, %v783_v38  ;;  %v6462_v44 = vcombine.high %v907_v39, %v911_v40  ;;  %v7176_v37 = vld [vmem:[%s10443_s7 + $0xa8] ss:$28 sps:$4 sm:$0xff]   ;;  %v7184_v38 = vld [vmem:[%s10443_s7 + $0x74] ss:$28 sps:$4 sm:$0xff]  }
 0x24f   :  { %2573 = vmatprep.subr.bf16.mxu0 %v6390_v45  ;;  %v771_v45 = vld [vmem:[%s10441_s5 + $0x258] sm:$0xff] }
 0x250   :  { %v6325_v59 = vcombine.low %v771_v45, %v775_v46 }
 0x251   :  { %2533 = vmatpush1.bf16.msra.mxu1 %v6261_v50  ;;  %v6461_v50 = vcombine.low %v907_v39, %v911_v40  ;;  %v7197_v39 = vld [vmem:[%s10443_s7 + $0x428] ss:$28 sps:$4 sm:$0xff]   ;;  %v7205_v40 = vld [vmem:[%s10443_s7 + $0x3f4] ss:$28 sps:$4 sm:$0xff]  }
 0x252   :  { %2574 = vmatpush1.bf16.msra.mxu0 %v6389_v52  ;;  %2534 = vmatprep.subr.bf16.mxu1 %v6254_v54  ;;  %v6326_v52 = vcombine.high %v771_v45, %v775_v46  ;;  %v6454_v54 = vcombine.high %v899_v47, %v903_v48  ;;  %v7188_v45 = vld [vmem:[%s10443_s7 + $0x38] ss:$28 sps:$4 sm:$0xff]   ;;  %v7196_v46 = vld [vmem:[%s10443_s7 + $0x4] ss:$28 sps:$4 sm:$0xff]  }
 0x253   :  { %2575 = vmatprep.subr.bf16.mxu0 %v6382_v55  ;;  %v763_v55 = vld [vmem:[%s10441_s5 + $0x218] sm:$0xff] }
 0x255   :  { %2535 = vmatpush1.bf16.msra.mxu1 %v6253_v60  ;;  %v6453_v60 = vcombine.low %v899_v47, %v903_v48  ;;  %v7209_v47 = vld [vmem:[%s10443_s7 + $0x3b8] ss:$28 sps:$4 sm:$0xff]   ;;  %v7217_v48 = vld [vmem:[%s10443_s7 + $0x384] ss:$28 sps:$4 sm:$0xff]  }
 0x256   :  { %2576 = vmatpush1.bf16.msra.mxu0 %v6381_v61  ;;  %2536 = vmatprep.subr.bf16.mxu1 %v6374_v62  ;;  %v6318_v61 = vcombine.high %v763_v55, %v767_v56  ;;  %v6446_v62 = vcombine.high %v891_v57, %v895_v58  ;;  %v7221_v57 = vld [vmem:[%s10443_s7 + $0x6c8] ss:$28 sps:$4 sm:$0xff]   ;;  %v7229_v58 = vld [vmem:[%s10443_s7 + $0x694] ss:$28 sps:$4 sm:$0xff]  }
 0x257   :  { %2577 = vmatprep.subr.bf16.mxu0 %v6502_v63  ;;  %v6317_v63 = vcombine.low %v763_v55, %v767_v56  ;;  %v7200_v55 = vld [vmem:[%s10443_s7 + $0x348] ss:$28 sps:$4 sm:$0xff]   ;;  %v7208_v56 = vld [vmem:[%s10443_s7 + $0x314] ss:$28 sps:$4 sm:$0xff]  }
 0x259   :  { %2537 = vmatpush2.bf16.msra.mxu1 %v6373_v4  ;;  %v8961_v4 = vld [vmem:[%s10442_s6] sm:$0xff] }
 0x25a   :  { %2578 = vmatpush2.bf16.msra.mxu0 %v6501_v5  ;;  %2538 = vmatprep.subr.bf16.mxu1 %v6366_v6  ;;  %v7166_v5 = vld [vmem:[%s10443_s7 + $0x154] ss:$28 sps:$4 sm:$0xff]   ;;  %v7173_v6 = vld [vmem:[%s10443_s7 + $0x508] ss:$28 sps:$4 sm:$0xff]  }
 0x25b   :  { %2579 = vmatprep.subr.bf16.mxu0 %v6494_v7  ;;  %v961_v7 = vrot.slane %v8961_v4, %v8154_v30 }
 0x25d   :  { %2539 = vmatpush2.bf16.msra.mxu1 %v6365_v11 }
 0x25e   :  { %2580 = vmatpush2.bf16.msra.mxu0 %v6493_v20  ;;  %2540 = vmatprep.subr.bf16.mxu1 %v6358_v12  ;;  %v7169_v20 = vld [vmem:[%s10443_s7 + $0x11c] ss:$28 sps:$4 sm:$0xff]  }
 0x25f   :  { %2581 = vmatprep.subr.bf16.mxu0 %v6486_v13  ;;  %v7187_v13 = vld [vmem:[%s10443_s7 + $0x49c] ss:$28 sps:$4 sm:$0xff]  }
 0x261   :  { %2541 = vmatpush2.bf16.msra.mxu1 %v6357_v22 }
 0x262   :  { %2582 = vmatpush2.bf16.msra.mxu0 %v6485_v23  ;;  %2542 = vmatprep.subr.bf16.mxu1 %v6350_v24  ;;  %v7172_v23 = vld [vmem:[%s10443_s7 + $0xe4] ss:$28 sps:$4 sm:$0xff]   ;;  %v7185_v24 = vld [vmem:[%s10443_s7 + $0x498] ss:$28 sps:$4 sm:$0xff]  }
 0x263   :  { %2583 = vmatprep.subr.bf16.mxu0 %v6478_v25 }
 0x265   :  { %2543 = vmatpush2.bf16.msra.mxu1 %v6349_v33 }
 0x266   :  { %2584 = vmatpush2.bf16.msra.mxu0 %v6477_v34  ;;  %2544 = vmatprep.subr.bf16.mxu1 %v6342_v35  ;;  %v7178_v34 = vld [vmem:[%s10443_s7 + $0xac] ss:$28 sps:$4 sm:$0xff]   ;;  %v7191_v35 = vld [vmem:[%s10443_s7 + $0x460] ss:$28 sps:$4 sm:$0xff]  }
 0x267   :  { %2585 = vmatprep.subr.bf16.mxu0 %v6470_v36  ;;  %v7199_v36 = vld [vmem:[%s10443_s7 + $0x42c] ss:$28 sps:$4 sm:$0xff]  }
 0x269   :  { %2545 = vmatpush2.bf16.msra.mxu1 %v6341_v41  ;;  %v7182_v41 = vld [vmem:[%s10443_s7 + $0x70] ss:$28 sps:$4 sm:$0xff]  }
 0x26a   :  { %2586 = vmatpush2.bf16.msra.mxu0 %v6469_v42  ;;  %2546 = vmatprep.subr.bf16.mxu1 %v6334_v43  ;;  %v7190_v42 = vld [vmem:[%s10443_s7 + $0x3c] ss:$28 sps:$4 sm:$0xff]   ;;  %v7203_v43 = vld [vmem:[%s10443_s7 + $0x3f0] ss:$28 sps:$4 sm:$0xff]  }
 0x26b   :  { %2587 = vmatprep.subr.bf16.mxu0 %v6462_v44  ;;  %v7211_v44 = vld [vmem:[%s10443_s7 + $0x3bc] ss:$28 sps:$4 sm:$0xff]  }
 0x26d   :  { %2547 = vmatpush2.bf16.msra.mxu1 %v6333_v49  ;;  %v7194_v49 = vld [vmem:[%s10443_s7] ss:$28 sps:$4 sm:$0xff]  }
 0x26e   :  { %2588 = vmatpush2.bf16.msra.mxu0 %v6461_v50  ;;  %2548 = vmatprep.subr.bf16.mxu1 %v6326_v52  ;;  %v7202_v50 = vld [vmem:[%s10443_s7 + $0x34c] ss:$28 sps:$4 sm:$0xff]   ;;  %v7215_v52 = vld [vmem:[%s10443_s7 + $0x380] ss:$28 sps:$4 sm:$0xff]  }
 0x26f   :  { %2589 = vmatprep.subr.bf16.mxu0 %v6454_v54  ;;  %v7223_v54 = vld [vmem:[%s10443_s7 + $0x6cc] ss:$28 sps:$4 sm:$0xff]  }
 0x271   :  { %2549 = vmatpush2.bf16.msra.mxu1 %v6325_v59  ;;  %v7206_v59 = vld [vmem:[%s10443_s7 + $0x310] ss:$28 sps:$4 sm:$0xff]  }
 0x272   :  { %2590 = vmatpush2.bf16.msra.mxu0 %v6453_v60  ;;  %2550 = vmatprep.subr.bf16.mxu1 %v6318_v61  ;;  %v7214_v60 = vld [vmem:[%s10443_s7 + $0x2dc] ss:$28 sps:$4 sm:$0xff]   ;;  %v7227_v61 = vld [vmem:[%s10443_s7 + $0x690] ss:$28 sps:$4 sm:$0xff]  }
 0x273   :  { %2591 = vmatprep.subr.bf16.mxu0 %v6446_v62  ;;  %v7235_v62 = vld [vmem:[%s10443_s7 + $0x65c] ss:$28 sps:$4 sm:$0xff]  }
 0x275   :  { %2551 = vmatpush2.bf16.msra.mxu1 %v6317_v63  ;;  %v7212_v63 = vld [vmem:[%s10443_s7 + $0x2d8] ss:$28 sps:$4 sm:$0xff]  }
 0x276   :  { %2592 = vmatpush2.bf16.msra.mxu0 %v6445_v0  ;;  %5487 = vmatprep.subr.bf16.mxu1 %v7163_v1  ;;  %v7220_v0 = vld [vmem:[%s10443_s7 + $0x2a4] ss:$28 sps:$4 sm:$0xff]   ;;  %v7233_v1 = vld [vmem:[%s10443_s7 + $0x658] ss:$28 sps:$4 sm:$0xff]  }
 0x277   :  { %5528 = vmatprep.subr.bf16.mxu0 %v7175_v2  ;;  %v7241_v2 = vld [vmem:[%s10443_s7 + $0x624] ss:$28 sps:$4 sm:$0xff]  }
 0x278   :  { %2553 = vmatmul.mubr.bf16.vlgmr.msra.gmra.mxu1 %v8377_v19  ;;  %v8975_v9 = vpop.f32.mrf.mxu1  ;;  %v7179_v19 = vld [vmem:[%s10443_s7 + $0x4d0] ss:$28 sps:$4 sm:$0xff]  }
 0x279   :  { %2594 = vmatmul.mubr.bf16.vlgmr.msra.gmra.mxu0 %v8381_v21  ;;  %v8978_v10 = vpop.f32.mrf.mxu0  ;;  %5488 = vmatpush1.bf16.msra.mxu1 %v7161_v3  ;;  %v7218_v3 = vld [vmem:[%s10443_s7 + $0x2a0] ss:$28 sps:$4 sm:$0xff]  }
 0x27a   :  { %v2310_v11 = vpop.f32.mrf.mxu1  ;;  %5489 = vmatprep.subr.bf16.mxu1 %v7166_v5  ;;  %5529 = vmatpush1.bf16.msra.mxu0 %v7173_v6  ;;  %v7226_v5 = vld [vmem:[%s10443_s7 + $0x26c] ss:$28 sps:$4 sm:$0xff]   ;;  %v7239_v6 = vld [vmem:[%s10443_s7 + $0x620] ss:$28 sps:$4 sm:$0xff]  }
 0x27b   :  { %v2311_v12 = vadd.f32 %v2310_v11, %v961_v7  ;;  %v2351_v21 = vpop.f32.mrf.mxu0  ;;  %5530 = vmatprep.subr.bf16.mxu0 %v7181_v8  ;;  %v957_v7 = vrot.slane %v8961_v4, %v8151_v29  ;;  %v7247_v8 = vld [vmem:[%s10443_s7 + $0x5ec] ss:$28 sps:$4 sm:$0xff]   ;;  %v7232_v11 = vld [vmem:[%s10443_s7 + $0x234] ss:$28 sps:$4 sm:$0xff]  }
 0x27c   :  { %v2312_v14 = vpop.f32.mrf.mxu1 }
 0x27d   :  { %v2352_v16 = vadd.f32 %v2351_v21, %v2311_v12  ;;  %v2353_v17 = vpop.f32.mrf.mxu0  ;;  %5490 = vmatpush1.bf16.msra.mxu1 %v7164_v15  ;;  %v7224_v15 = vld [vmem:[%s10443_s7 + $0x268] ss:$28 sps:$4 sm:$0xff]   ;;  %v7250_v12 = vld [vmem:[%s10443_s7 + $0x5b4] ss:$28 sps:$4 sm:$0xff]  }
 0x27e   :  { %v2313_v22 = vpop.f32.mrf.mxu1  ;;  %5491 = vmatprep.subr.bf16.mxu1 %v7169_v20  ;;  %5531 = vmatpush1.bf16.msra.mxu0 %v7179_v19  ;;  %v7245_v20 = vld [vmem:[%s10443_s7 + $0x5e8] ss:$28 sps:$4 sm:$0xff]   ;;  %v2309_v19 = vadd.f32 %v8975_v9, %v957_v7  ;;  %v7230_v21 = vld [vmem:[%s10443_s7 + $0x230] ss:$28 sps:$4 sm:$0xff]   ;;  %v7236_v17 = vld [vmem:[%s10443_s7 + $0x1f8] ss:$28 sps:$4 sm:$0xff]  }
 0x27f   :  { %vm2603_vm6 = vcmp.gt.f32.partialorder %v2352_v16, 0.0  ;;  %v2611_v25 = vmul.f32 0.2, %v2352_v16  ;;  %v2354_v26 = vpop.f32.mrf.mxu0  ;;  %5532 = vmatprep.subr.bf16.mxu0 %v7187_v13  ;;  %v7238_v13 = vld [vmem:[%s10443_s7 + $0x1fc] ss:$28 sps:$4 sm:$0xff]  }
 0x280   :  { %v7248_v9 = vld [vmem:[%s10443_s7 + $0x5b0] ss:$28 sps:$4 sm:$0xff]   ;;  %v2350_v14 = vadd.f32 %v8978_v10, %v2309_v19  ;;  %v7251_v10 = vld [vmem:[%s10443_s7 + $0x578] ss:$28 sps:$4 sm:$0xff]   ;;  %v7280_v19 = vld [vmem:[%s10443_s7 + $0x704] ss:$28 sps:$4 sm:$0xff]  }
 0x281   :  { %v2619_v31 = vsel %vm2603_vm6, %v2352_v16, %v2611_v25  ;;  %5492 = vmatpush1.bf16.msra.mxu1 %v7167_v18  ;;  %v7253_v16 = vld [vmem:[%s10443_s7 + $0x57c] ss:$28 sps:$4 sm:$0xff]   ;;  %v7244_v18 = vld [vmem:[%s10443_s7 + $0x1c4] ss:$28 sps:$4 sm:$0xff]   ;;  %v7259_v26 = vld [vmem:[%s10443_s7 + $0x88c] ss:$28 sps:$4 sm:$0xff]  }
 0x282   :  { %v9007_v33 = vpack.c.bf16 %v2619_v31, %v2619_v31  ;;  %5493 = vmatprep.subr.bf16.mxu1 %v7172_v23  ;;  %5533 = vmatpush1.bf16.msra.mxu0 %v7185_v24  ;;  %v2610_v22 = vmul.f32 0.2, %v2350_v14  ;;  %v7256_v23 = vld [vmem:[%s10443_s7 + $0x544] ss:$28 sps:$4 sm:$0xff]   ;;  %vm2602_vm7 = vcmp.gt.f32.partialorder %v2350_v14, 0.0 }
 0x283   :  { %5534 = vmatprep.subr.bf16.mxu0 %v7193_v28  ;;  %v7242_v24 = vld [vmem:[%s10443_s7 + $0x1c0] ss:$28 sps:$4 sm:$0xff]   ;;  %v7307_v31 = vld [vmem:[%s10443_s7 + $0xc0c] ss:$28 sps:$4 sm:$0xff]  }
 0x284   :  { %5519 = vmatprep.mubr.bf16.mxu1 %v9007_v33  ;;  %v7254_v25 = vld [vmem:[%s10443_s7 + $0x540] ss:$28 sps:$4 sm:$0xff]   ;;  %v2618_v28 = vsel %vm2602_vm7, %v2350_v14, %v2610_v22  ;;  %v7272_v7 = vld [vmem:[%s10443_s7 + $0x770] ss:$28 sps:$4 sm:$0xff]   ;;  %v7329_v14 = vld [vmem:[%s10443_s7 + $0xb28] ss:$28 sps:$4 sm:$0xff]  }
 0x285   :  { %5494 = vmatpush1.bf16.msra.mxu1 %v7170_v32  ;;  %v965_v32 = vrot.slane %v8961_v4, %v8351_v51  ;;  %v7343_v22 = vld [vmem:[%s10443_s7 + $0xabc] ss:$28 sps:$4 sm:$0xff]  }
 0x286   :  { %5495 = vmatprep.subr.bf16.mxu1 %v7178_v34  ;;  %5535 = vmatpush1.bf16.msra.mxu0 %v7191_v35  ;;  %v7257_v34 = vld [vmem:[%s10443_s7 + $0x888] ss:$28 sps:$4 sm:$0xff]   ;;  %v9172_v35 = vpack.c.bf16 %v2618_v28, %v2618_v28  ;;  %v7287_v28 = vld [vmem:[%s10443_s7 + $0x9d8] ss:$28 sps:$4 sm:$0xff]  }
 0x287   :  { %5536 = vmatprep.subr.bf16.mxu0 %v7199_v36  ;;  %v7262_v36 = vld [vmem:[%s10443_s7 + $0x854] ss:$28 sps:$4 sm:$0xff]  }
 0x289   :  { %5496 = vmatpush1.bf16.msra.mxu1 %v7176_v37  ;;  %v969_v37 = vrot.slane %v8961_v4, %v8357_v53 }
 0x28a   :  { %5497 = vmatprep.subr.bf16.mxu1 %v7184_v38  ;;  %5537 = vmatpush1.bf16.msra.mxu0 %v7197_v39 }
 0x28b   :  { %5538 = vmatprep.subr.bf16.mxu0 %v7205_v40 }
 0x28d   :  { %5498 = vmatpush1.bf16.msra.mxu1 %v7182_v41  ;;  %v7260_v41 = vld [vmem:[%s10443_s7 + $0x850] ss:$28 sps:$4 sm:$0xff]  }
 0x28e   :  { %5499 = vmatprep.subr.bf16.mxu1 %v7190_v42  ;;  %5539 = vmatpush1.bf16.msra.mxu0 %v7203_v43  ;;  %v7265_v43 = vld [vmem:[%s10443_s7 + $0x81c] ss:$28 sps:$4 sm:$0xff]  }
 0x28f   :  { %5540 = vmatprep.subr.bf16.mxu0 %v7211_v44 }
 0x291   :  { %5500 = vmatpush1.bf16.msra.mxu1 %v7188_v45 }
 0x292   :  { %5501 = vmatprep.subr.bf16.mxu1 %v7196_v46  ;;  %5541 = vmatpush1.bf16.msra.mxu0 %v7209_v47 }
 0x293   :  { %5542 = vmatprep.subr.bf16.mxu0 %v7217_v48 }
 0x295   :  { %5502 = vmatpush1.bf16.msra.mxu1 %v7194_v49 }
 0x296   :  { %5503 = vmatprep.subr.bf16.mxu1 %v7202_v50  ;;  %5543 = vmatpush1.bf16.msra.mxu0 %v7215_v52  ;;  %v7263_v52 = vld [vmem:[%s10443_s7 + $0x818] ss:$28 sps:$4 sm:$0xff]  }
 0x297   :  { %5544 = vmatprep.subr.bf16.mxu0 %v7223_v54 }
 0x299   :  { %5504 = vmatpush2.bf16.msra.mxu1 %v7200_v55  ;;  %v7268_v55 = vld [vmem:[%s10443_s7 + $0x7e4] ss:$28 sps:$4 sm:$0xff]  }
 0x29a   :  { %5505 = vmatprep.subr.bf16.mxu1 %v7208_v56  ;;  %5545 = vmatpush2.bf16.msra.mxu0 %v7221_v57 }
 0x29b   :  { %5546 = vmatprep.subr.bf16.mxu0 %v7229_v58 }
 0x29d   :  { %5506 = vmatpush2.bf16.msra.mxu1 %v7206_v59 }
 0x29e   :  { %5507 = vmatprep.subr.bf16.mxu1 %v7214_v60  ;;  %5547 = vmatpush2.bf16.msra.mxu0 %v7227_v61  ;;  %v7266_v60 = vld [vmem:[%s10443_s7 + $0x7e0] ss:$28 sps:$4 sm:$0xff]  }
 0x29f   :  { %5548 = vmatprep.subr.bf16.mxu0 %v7235_v62  ;;  %v7271_v62 = vld [vmem:[%s10443_s7 + $0x7ac] ss:$28 sps:$4 sm:$0xff]  }
 0x2a1   :  { %5508 = vmatpush2.bf16.msra.mxu1 %v7212_v63  ;;  %v7305_v63 = vld [vmem:[%s10443_s7 + $0xc08] ss:$28 sps:$4 sm:$0xff]  }
 0x2a2   :  { %5509 = vmatprep.subr.bf16.mxu1 %v7220_v0  ;;  %5549 = vmatpush2.bf16.msra.mxu0 %v7233_v1  ;;  %v7313_v1 = vld [vmem:[%s10443_s7 + $0xbd4] ss:$28 sps:$4 sm:$0xff]  }
 0x2a3   :  { %5550 = vmatprep.subr.bf16.mxu0 %v7241_v2  ;;  %v7269_v2 = vld [vmem:[%s10443_s7 + $0x7a8] ss:$28 sps:$4 sm:$0xff]  }
 0x2a5   :  { %5510 = vmatpush2.bf16.msra.mxu1 %v7218_v3  ;;  %v7274_v3 = vld [vmem:[%s10443_s7 + $0x774] ss:$28 sps:$4 sm:$0xff]  }
 0x2a6   :  { %5511 = vmatprep.subr.bf16.mxu1 %v7226_v5  ;;  %5551 = vmatpush2.bf16.msra.mxu0 %v7239_v6  ;;  %v7311_v5 = vld [vmem:[%s10443_s7 + $0xbd0] ss:$28 sps:$4 sm:$0xff]   ;;  %v7319_v6 = vld [vmem:[%s10443_s7 + $0xb9c] ss:$28 sps:$4 sm:$0xff]  }
 0x2a7   :  { %5552 = vmatprep.subr.bf16.mxu0 %v7247_v8  ;;  %v7277_v8 = vld [vmem:[%s10443_s7 + $0x73c] ss:$28 sps:$4 sm:$0xff]  }
 0x2a9   :  { %5512 = vmatpush2.bf16.msra.mxu1 %v7224_v15  ;;  %v7317_v15 = vld [vmem:[%s10443_s7 + $0xb98] ss:$28 sps:$4 sm:$0xff]  }
 0x2aa   :  { %5513 = vmatprep.subr.bf16.mxu1 %v7232_v11  ;;  %5553 = vmatpush2.bf16.msra.mxu0 %v7245_v20  ;;  %v7325_v11 = vld [vmem:[%s10443_s7 + $0xb64] ss:$28 sps:$4 sm:$0xff]   ;;  %v7275_v20 = vld [vmem:[%s10443_s7 + $0x738] ss:$28 sps:$4 sm:$0xff]  }
 0x2ab   :  { %5554 = vmatprep.subr.bf16.mxu0 %v7250_v12  ;;  %v7323_v12 = vld [vmem:[%s10443_s7 + $0xb60] ss:$28 sps:$4 sm:$0xff]  }
 0x2ad   :  { %5514 = vmatpush2.bf16.msra.mxu1 %v7230_v21  ;;  %v7331_v21 = vld [vmem:[%s10443_s7 + $0xb2c] ss:$28 sps:$4 sm:$0xff]  }
 0x2ae   :  { %5515 = vmatprep.subr.bf16.mxu1 %v7238_v13  ;;  %5555 = vmatpush2.bf16.msra.mxu0 %v7248_v9  ;;  %v7278_v13 = vld [vmem:[%s10443_s7 + $0x700] ss:$28 sps:$4 sm:$0xff]   ;;  %v7283_v9 = vld [vmem:[%s10443_s7 + $0xa4c] ss:$28 sps:$4 sm:$0xff]  }
 0x2af   :  { %5556 = vmatprep.subr.bf16.mxu0 %v7253_v16  ;;  %v7337_v16 = vld [vmem:[%s10443_s7 + $0xaf4] ss:$28 sps:$4 sm:$0xff]  }
 0x2b1   :  { %5516 = vmatpush2.bf16.msra.mxu1 %v7236_v17  ;;  %v7281_v17 = vld [vmem:[%s10443_s7 + $0xa48] ss:$28 sps:$4 sm:$0xff]  }
 0x2b2   :  { %5517 = vmatprep.subr.bf16.mxu1 %v7244_v18  ;;  %5557 = vmatpush2.bf16.msra.mxu0 %v7251_v10  ;;  %v7286_v18 = vld [vmem:[%s10443_s7 + $0xa14] ss:$28 sps:$4 sm:$0xff]  }
 0x2b3   :  { %5558 = vmatprep.subr.bf16.mxu0 %v7256_v23  ;;  %v7335_v10 = vld [vmem:[%s10443_s7 + $0xaf0] ss:$28 sps:$4 sm:$0xff]  }
 0x2b4   :  { %v7284_v23 = vld [vmem:[%s10443_s7 + $0xa10] ss:$28 sps:$4 sm:$0xff]  }
 0x2b5   :  { %5518 = vmatpush2.bf16.msra.mxu1 %v7242_v24  ;;  %v7289_v24 = vld [vmem:[%s10443_s7 + $0x9dc] ss:$28 sps:$4 sm:$0xff]  }
 0x2b6   :  { %5559 = vmatpush2.bf16.msra.mxu0 %v7254_v25  ;;  %5569 = vmatprep.subr.bf16.mxu1 %v7259_v26  ;;  %v7341_v25 = vld [vmem:[%s10443_s7 + $0xab8] ss:$28 sps:$4 sm:$0xff]   ;;  %v7349_v26 = vld [vmem:[%s10443_s7 + $0xa84] ss:$28 sps:$4 sm:$0xff]  }
 0x2b7   :  { %5610 = vmatprep.subr.bf16.mxu0 %v7307_v31  ;;  %v7292_v31 = vld [vmem:[%s10443_s7 + $0x9a4] ss:$28 sps:$4 sm:$0xff]  }
 0x2b8   :  { %v2390_v38 = vpop.f32.mrf.mxu1  ;;  %5520 = vmatmul.mubr.bf16.vlgmr.msra.gmra.mxu1 %v9172_v35 }
 0x2b9   :  { %v2391_v39 = vadd.f32 %v2390_v38, %v965_v32  ;;  %v2431_v40 = vpop.f32.mrf.mxu0  ;;  %5570 = vmatpush1.bf16.msra.mxu1 %v7257_v34  ;;  %v7347_v32 = vld [vmem:[%s10443_s7 + $0xa80] ss:$28 sps:$4 sm:$0xff]   ;;  %v7355_v34 = vld [vmem:[%s10443_s7 + $0xdcc] ss:$28 sps:$4 sm:$0xff]  }
 0x2ba   :  { %v2392_v42 = vpop.f32.mrf.mxu1  ;;  %5571 = vmatprep.subr.bf16.mxu1 %v7262_v36  ;;  %v7290_v36 = vld [vmem:[%s10443_s7 + $0x9a0] ss:$28 sps:$4 sm:$0xff]   ;;  %v7353_v38 = vld [vmem:[%s10443_s7 + $0xdc8] ss:$28 sps:$4 sm:$0xff]  }
 0x2bb   :  { %v2432_v44 = vadd.f32 %v2431_v40, %v2391_v39  ;;  %v2393_v45 = vadd.f32 %v2392_v42, %v969_v37  ;;  %v2433_v46 = vpop.f32.mrf.mxu0  ;;  %v7295_v37 = vld [vmem:[%s10443_s7 + $0x96c] ss:$28 sps:$4 sm:$0xff]   ;;  %v7361_v39 = vld [vmem:[%s10443_s7 + $0xd94] ss:$28 sps:$4 sm:$0xff]  }
 0x2bc   :  { %v2394_v47 = vpop.f32.mrf.mxu1  ;;  %v7293_v40 = vld [vmem:[%s10443_s7 + $0x968] ss:$28 sps:$4 sm:$0xff]   ;;  %v7359_v42 = vld [vmem:[%s10443_s7 + $0xd90] ss:$28 sps:$4 sm:$0xff]  }
 0x2bd   :  { %vm2604_vm8 = vcmp.gt.f32.partialorder %v2432_v44, 0.0  ;;  %v2612_v48 = vmul.f32 0.2, %v2432_v44  ;;  %v2434_v49 = vadd.f32 %v2433_v46, %v2393_v45  ;;  %v2435_v50 = vpop.f32.mrf.mxu0  ;;  %5572 = vmatpush1.bf16.msra.mxu1 %v7260_v41  ;;  %v7298_v41 = vld [vmem:[%s10443_s7 + $0x934] ss:$28 sps:$4 sm:$0xff]  }
 0x2be   :  { %v2395_v54 = vpop.f32.mrf.mxu1  ;;  %5573 = vmatprep.subr.bf16.mxu1 %v7265_v43  ;;  %v7367_v43 = vld [vmem:[%s10443_s7 + $0xd5c] ss:$28 sps:$4 sm:$0xff]   ;;  %v7373_v47 = vld [vmem:[%s10443_s7 + $0xd24] ss:$28 sps:$4 sm:$0xff]  }
 0x2bf   :  { %vm2605_vm9 = vcmp.gt.f32.partialorder %v2434_v49, 0.0  ;;  %v2613_v56 = vmul.f32 0.2, %v2434_v49  ;;  %v2436_v57 = vpop.f32.mrf.mxu0  ;;  %v2620_v58 = vsel %vm2604_vm8, %v2432_v44, %v2612_v48  ;;  %v7296_v44 = vld [vmem:[%s10443_s7 + $0x930] ss:$28 sps:$4 sm:$0xff]   ;;  %v972_v54 = vsub.s32 4, %v8145_v27 }
 0x2c0   :  { %v9203_v0 = vpack.c.bf16 %v2620_v58, %v2620_v58  ;;  %v7301_v45 = vld [vmem:[%s10443_s7 + $0x8fc] ss:$28 sps:$4 sm:$0xff]   ;;  %v7377_v57 = vld [vmem:[%s10443_s7 + $0xce8] ss:$28 sps:$4 sm:$0xff]   ;;  %v976_v58 = vsub.s32 5, %v8145_v27 }
 0x2c1   :  { %v2621_v59 = vsel %vm2605_vm9, %v2434_v49, %v2613_v56  ;;  %5574 = vmatpush1.bf16.msra.mxu1 %v7263_v52  ;;  %v7365_v46 = vld [vmem:[%s10443_s7 + $0xd58] ss:$28 sps:$4 sm:$0xff]   ;;  %v7304_v49 = vld [vmem:[%s10443_s7 + $0x8c4] ss:$28 sps:$4 sm:$0xff]   ;;  %v7379_v52 = vld [vmem:[%s10443_s7 + $0xcec] ss:$28 sps:$4 sm:$0xff]  }
 0x2c2   :  { %v9195_v61 = vpack.c.bf16 %v2621_v59, %v2621_v59  ;;  %5575 = vmatprep.subr.bf16.mxu1 %v7268_v55  ;;  %v7299_v48 = vld [vmem:[%s10443_s7 + $0x8f8] ss:$28 sps:$4 sm:$0xff]   ;;  %v7371_v50 = vld [vmem:[%s10443_s7 + $0xd20] ss:$28 sps:$4 sm:$0xff]  }
 0x2c3   :  { %v7302_v55 = vld [vmem:[%s10443_s7 + $0x8c0] ss:$28 sps:$4 sm:$0xff]   ;;  %v7310_v56 = vld [vmem:[%s10443_s7 + $0x194] ss:$28 sps:$4 sm:$0xff]  }
 0x2c4   :  { %5560 = vmatprep.mubr.bf16.mxu0 %v9195_v61  ;;  %v7385_v59 = vld [vmem:[%s10443_s7 + $0xcb4] ss:$28 sps:$4 sm:$0xff]  }
 0x2c5   :  { %5561 = vmatmul.mubr.bf16.vlgmr.msra.gmra.mxu0 %v9203_v0  ;;  %5576 = vmatpush1.bf16.msra.mxu1 %v7266_v60  ;;  %v973_v60 = vrot.slane %v8961_v4, %v972_v54 }
 0x2c6   :  { %5577 = vmatprep.subr.bf16.mxu1 %v7271_v62  ;;  %5611 = vmatpush1.bf16.msra.mxu0 %v7305_v63  ;;  %v7383_v62 = vld [vmem:[%s10443_s7 + $0xcb0] ss:$28 sps:$4 sm:$0xff]   ;;  %v977_v63 = vrot.slane %v8961_v4, %v976_v58 }
 0x2c7   :  { %5612 = vmatprep.subr.bf16.mxu0 %v7313_v1  ;;  %v7391_v1 = vld [vmem:[%s10443_s7 + $0xc7c] ss:$28 sps:$4 sm:$0xff]  }
 0x2c9   :  { %5578 = vmatpush1.bf16.msra.mxu1 %v7269_v2 }
 0x2ca   :  { %5579 = vmatprep.subr.bf16.mxu1 %v7274_v3  ;;  %5613 = vmatpush1.bf16.msra.mxu0 %v7311_v5 }
 0x2cb   :  { %5614 = vmatprep.subr.bf16.mxu0 %v7319_v6 }
 0x2cd   :  { %5580 = vmatpush1.bf16.msra.mxu1 %v7272_v7  ;;  %v7389_v7 = vld [vmem:[%s10443_s7 + $0xc78] ss:$28 sps:$4 sm:$0xff]  }
 0x2ce   :  { %5581 = vmatprep.subr.bf16.mxu1 %v7277_v8  ;;  %5615 = vmatpush1.bf16.msra.mxu0 %v7317_v15 }
 0x2cf   :  { %5616 = vmatprep.subr.bf16.mxu0 %v7325_v11 }
 0x2d1   :  { %5582 = vmatpush1.bf16.msra.mxu1 %v7275_v20  ;;  %v7397_v20 = vld [vmem:[%s10443_s7 + $0xc44] ss:$28 sps:$4 sm:$0xff]  }
 0x2d2   :  { %5583 = vmatprep.subr.bf16.mxu1 %v7280_v19  ;;  %5617 = vmatpush1.bf16.msra.mxu0 %v7323_v12 }
 0x2d3   :  { %5618 = vmatprep.subr.bf16.mxu0 %v7331_v21 }
 0x2d5   :  { %5584 = vmatpush1.bf16.msra.mxu1 %v7278_v13 }
 0x2d6   :  { %5585 = vmatprep.subr.bf16.mxu1 %v7283_v9  ;;  %5619 = vmatpush1.bf16.msra.mxu0 %v7329_v14  ;;  %v7395_v14 = vld [vmem:[%s10443_s7 + $0xc40] ss:$28 sps:$4 sm:$0xff]  }
 0x2d7   :  { %5620 = vmatprep.subr.bf16.mxu0 %v7337_v16 }
 0x2d9   :  { %5586 = vmatpush2.bf16.msra.mxu1 %v7281_v17 }
 0x2da   :  { %5587 = vmatprep.subr.bf16.mxu1 %v7286_v18  ;;  %5621 = vmatpush1.bf16.msra.mxu0 %v7335_v10  ;;  %v7403_v18 = vld [vmem:[%s10443_s7 + $0x514] ss:$28 sps:$4 sm:$0xff]  }
 0x2db   :  { %5622 = vmatprep.subr.bf16.mxu0 %v7343_v22 }
 0x2dd   :  { %5588 = vmatpush2.bf16.msra.mxu1 %v7284_v23 }
 0x2de   :  { %5589 = vmatprep.subr.bf16.mxu1 %v7289_v24  ;;  %5623 = vmatpush1.bf16.msra.mxu0 %v7341_v25  ;;  %v7308_v24 = vld [vmem:[%s10443_s7 + $0x190] ss:$28 sps:$4 sm:$0xff]  }
 0x2df   :  { %5624 = vmatprep.subr.bf16.mxu0 %v7349_v26  ;;  %v7316_v26 = vld [vmem:[%s10443_s7 + $0x15c] ss:$28 sps:$4 sm:$0xff]  }
 0x2e1   :  { %5590 = vmatpush2.bf16.msra.mxu1 %v7287_v28  ;;  %v7314_v28 = vld [vmem:[%s10443_s7 + $0x158] ss:$28 sps:$4 sm:$0xff]  }
 0x2e2   :  { %5591 = vmatprep.subr.bf16.mxu1 %v7292_v31  ;;  %5625 = vmatpush1.bf16.msra.mxu0 %v7347_v32  ;;  %v7322_v31 = vld [vmem:[%s10443_s7 + $0x124] ss:$28 sps:$4 sm:$0xff]  }
 0x2e3   :  { %5626 = vmatprep.subr.bf16.mxu0 %v7355_v34  ;;  %v7320_v32 = vld [vmem:[%s10443_s7 + $0x120] ss:$28 sps:$4 sm:$0xff]   ;;  %v7328_v34 = vld [vmem:[%s10443_s7 + $0xec] ss:$28 sps:$4 sm:$0xff]  }
 0x2e5   :  { %5592 = vmatpush2.bf16.msra.mxu1 %v7290_v36  ;;  %v7326_v36 = vld [vmem:[%s10443_s7 + $0xe8] ss:$28 sps:$4 sm:$0xff]  }
 0x2e6   :  { %5593 = vmatprep.subr.bf16.mxu1 %v7295_v37  ;;  %5627 = vmatpush2.bf16.msra.mxu0 %v7353_v38  ;;  %v7334_v37 = vld [vmem:[%s10443_s7 + $0xb4] ss:$28 sps:$4 sm:$0xff]  }
 0x2e7   :  { %5628 = vmatprep.subr.bf16.mxu0 %v7361_v39  ;;  %v7332_v38 = vld [vmem:[%s10443_s7 + $0xb0] ss:$28 sps:$4 sm:$0xff]   ;;  %v7340_v39 = vld [vmem:[%s10443_s7 + $0x7c] ss:$28 sps:$4 sm:$0xff]  }
 0x2e9   :  { %5594 = vmatpush2.bf16.msra.mxu1 %v7293_v40  ;;  %v7338_v40 = vld [vmem:[%s10443_s7 + $0x78] ss:$28 sps:$4 sm:$0xff]  }
 0x2ea   :  { %5595 = vmatprep.subr.bf16.mxu1 %v7298_v41  ;;  %5629 = vmatpush2.bf16.msra.mxu0 %v7359_v42  ;;  %v7346_v41 = vld [vmem:[%s10443_s7 + $0x44] ss:$28 sps:$4 sm:$0xff]  }
 0x2eb   :  { %5630 = vmatprep.subr.bf16.mxu0 %v7367_v43  ;;  %v7344_v42 = vld [vmem:[%s10443_s7 + $0x40] ss:$28 sps:$4 sm:$0xff]   ;;  %v7352_v43 = vld [vmem:[%s10443_s7 + $0xc] ss:$28 sps:$4 sm:$0xff]  }
 0x2ed   :  { %5596 = vmatpush2.bf16.msra.mxu1 %v7296_v44  ;;  %v7350_v44 = vld [vmem:[%s10443_s7 + $0x8] ss:$28 sps:$4 sm:$0xff]  }
 0x2ee   :  { %5597 = vmatprep.subr.bf16.mxu1 %v7301_v45  ;;  %5631 = vmatpush2.bf16.msra.mxu0 %v7365_v46  ;;  %v7358_v45 = vld [vmem:[%s10443_s7 + $0x354] ss:$28 sps:$4 sm:$0xff]  }
 0x2ef   :  { %5632 = vmatprep.subr.bf16.mxu0 %v7373_v47  ;;  %v7356_v46 = vld [vmem:[%s10443_s7 + $0x350] ss:$28 sps:$4 sm:$0xff]   ;;  %v7364_v47 = vld [vmem:[%s10443_s7 + $0x31c] ss:$28 sps:$4 sm:$0xff]  }
 0x2f1   :  { %5598 = vmatpush2.bf16.msra.mxu1 %v7299_v48  ;;  %v7362_v48 = vld [vmem:[%s10443_s7 + $0x318] ss:$28 sps:$4 sm:$0xff]  }
 0x2f2   :  { %5599 = vmatprep.subr.bf16.mxu1 %v7304_v49  ;;  %5633 = vmatpush2.bf16.msra.mxu0 %v7371_v50  ;;  %v7370_v49 = vld [vmem:[%s10443_s7 + $0x2e4] ss:$28 sps:$4 sm:$0xff]  }
 0x2f3   :  { %5634 = vmatprep.subr.bf16.mxu0 %v7379_v52  ;;  %v7368_v50 = vld [vmem:[%s10443_s7 + $0x2e0] ss:$28 sps:$4 sm:$0xff]   ;;  %v7376_v52 = vld [vmem:[%s10443_s7 + $0x2ac] ss:$28 sps:$4 sm:$0xff]  }
 0x2f5   :  { %5600 = vmatpush2.bf16.msra.mxu1 %v7302_v55  ;;  %v7374_v55 = vld [vmem:[%s10443_s7 + $0x2a8] ss:$28 sps:$4 sm:$0xff]  }
 0x2f6   :  { %5651 = vmatprep.subr.bf16.mxu1 %v7310_v56  ;;  %5635 = vmatpush2.bf16.msra.mxu0 %v7377_v57  ;;  %v7382_v56 = vld [vmem:[%s10443_s7 + $0x274] ss:$28 sps:$4 sm:$0xff]   ;;  %v980_v57 = vsub.s32 6, %v8145_v27 }
 0x2f7   :  { %5636 = vmatprep.subr.bf16.mxu0 %v7385_v59  ;;  %v7380_v59 = vld [vmem:[%s10443_s7 + $0x270] ss:$28 sps:$4 sm:$0xff]  }
 0x2f8   :  { %v2472_v2 = vpop.f32.mrf.mxu1 }
 0x2f9   :  { %v2473_v3 = vadd.f32 %v2472_v2, %v973_v60  ;;  %v2513_v5 = vpop.f32.mrf.mxu0  ;;  %v7388_v60 = vld [vmem:[%s10443_s7 + $0x23c] ss:$28 sps:$4 sm:$0xff]  }
 0x2fa   :  { %v2474_v6 = vpop.f32.mrf.mxu1  ;;  %5637 = vmatpush2.bf16.msra.mxu0 %v7383_v62  ;;  %v984_v62 = vsub.s32 7, %v8145_v27 }
 0x2fb   :  { %v2514_v8 = vadd.f32 %v2513_v5, %v2473_v3  ;;  %v2475_v15 = vadd.f32 %v2474_v6, %v977_v63  ;;  %v2515_v11 = vpop.f32.mrf.mxu0  ;;  %5638 = vmatprep.subr.bf16.mxu0 %v7391_v1  ;;  %v981_v63 = vrot.slane %v8961_v4, %v980_v57  ;;  %v7386_v1 = vld [vmem:[%s10443_s7 + $0x238] ss:$28 sps:$4 sm:$0xff]   ;;  %v7394_v3 = vld [vmem:[%s10443_s7 + $0x204] ss:$28 sps:$4 sm:$0xff]  }
 0x2fc   :  { %v2476_v19 = vpop.f32.mrf.mxu1  ;;  %v985_v2 = vrot.slane %v8961_v4, %v984_v62  ;;  %v7400_v4 = vld [vmem:[%s10443_s7 + $0x1cc] ss:$28 sps:$4 sm:$0xff]   ;;  %v7442_v62 = vld [vmem:[%s10443_s7 + $0x744] ss:$28 sps:$4 sm:$0xff]  }
 0x2fd   :  { %vm2606_vm10 = vcmp.gt.f32.partialorder %v2514_v8, 0.0  ;;  %v2614_v12 = vmul.f32 0.2, %v2514_v8  ;;  %v2516_v21 = vadd.f32 %v2515_v11, %v2475_v15  ;;  %v2517_v13 = vpop.f32.mrf.mxu0  ;;  %v7392_v15 = vld [vmem:[%s10443_s7 + $0x200] ss:$28 sps:$4 sm:$0xff]  }
 0x2fe   :  { %v2477_v9 = vpop.f32.mrf.mxu1  ;;  %5639 = vmatpush2.bf16.msra.mxu0 %v7389_v7 }
 0x2ff   :  { %vm2607_vm11 = vcmp.gt.f32.partialorder %v2516_v21, 0.0  ;;  %v2615_v16 = vmul.f32 0.2, %v2516_v21  ;;  %v2518_v17 = vpop.f32.mrf.mxu0  ;;  %5640 = vmatprep.subr.bf16.mxu0 %v7397_v20  ;;  %v2622_v10 = vsel %vm2606_vm10, %v2514_v8, %v2614_v12 }
 0x300   :  { %v9385_v25 = vpack.c.bf16 %v2622_v10, %v2622_v10  ;;  %v7406_v10 = vld [vmem:[%s10443_s7 + $0x894] ss:$28 sps:$4 sm:$0xff]  }
 0x301   :  { %v2623_v22 = vsel %vm2607_vm11, %v2516_v21, %v2615_v16  ;;  %v7398_v16 = vld [vmem:[%s10443_s7 + $0x1c8] ss:$28 sps:$4 sm:$0xff]  }
 0x302   :  { %v9380_v23 = vpack.c.bf16 %v2623_v22, %v2623_v22  ;;  %5641 = vmatpush2.bf16.msra.mxu0 %v7395_v14 }
 0x303   :  { %5692 = vmatprep.subr.bf16.mxu0 %v7403_v18 }
 0x304   :  { %5601 = vmatprep.mubr.bf16.mxu1 %v9380_v23 }
 0x305   :  { %5602 = vmatmul.mubr.bf16.vlgmr.msra.gmra.mxu1 %v9385_v25 }
 0x306   :  { %5652 = vmatpush1.bf16.msra.mxu1 %v7308_v24  ;;  %5683 = vmatprep.mubr.bf16.mxu1 %v9007_v33 }
 0x307   :  { %5653 = vmatprep.subr.bf16.mxu1 %v7316_v26 }
 0x30a   :  { %5654 = vmatpush1.bf16.msra.mxu1 %v7314_v28  ;;  %v7401_v28 = vld [vmem:[%s10443_s7 + $0x510] ss:$28 sps:$4 sm:$0xff]  }
 0x30b   :  { %5655 = vmatprep.subr.bf16.mxu1 %v7322_v31  ;;  %v7404_v31 = vld [vmem:[%s10443_s7 + $0x890] ss:$28 sps:$4 sm:$0xff]  }
 0x30e   :  { %5656 = vmatpush1.bf16.msra.mxu1 %v7320_v32 }
 0x30f   :  { %5657 = vmatprep.subr.bf16.mxu1 %v7328_v34  ;;  %v7409_v34 = vld [vmem:[%s10443_s7 + $0x4dc] ss:$28 sps:$4 sm:$0xff]  }
 0x312   :  { %5658 = vmatpush1.bf16.msra.mxu1 %v7326_v36  ;;  %v7412_v36 = vld [vmem:[%s10443_s7 + $0x85c] ss:$28 sps:$4 sm:$0xff]  }
 0x313   :  { %5659 = vmatprep.subr.bf16.mxu1 %v7334_v37  ;;  %v7407_v37 = vld [vmem:[%s10443_s7 + $0x4d8] ss:$28 sps:$4 sm:$0xff]  }
 0x316   :  { %5660 = vmatpush1.bf16.msra.mxu1 %v7332_v38  ;;  %v7410_v38 = vld [vmem:[%s10443_s7 + $0x858] ss:$28 sps:$4 sm:$0xff]  }
 0x317   :  { %5661 = vmatprep.subr.bf16.mxu1 %v7340_v39  ;;  %v7415_v39 = vld [vmem:[%s10443_s7 + $0x4a4] ss:$28 sps:$4 sm:$0xff]  }
 0x31a   :  { %5662 = vmatpush1.bf16.msra.mxu1 %v7338_v40  ;;  %v7418_v40 = vld [vmem:[%s10443_s7 + $0x824] ss:$28 sps:$4 sm:$0xff]  }
 0x31b   :  { %5663 = vmatprep.subr.bf16.mxu1 %v7346_v41  ;;  %v7413_v41 = vld [vmem:[%s10443_s7 + $0x4a0] ss:$28 sps:$4 sm:$0xff]  }
 0x31e   :  { %5664 = vmatpush1.bf16.msra.mxu1 %v7344_v42  ;;  %v7416_v42 = vld [vmem:[%s10443_s7 + $0x820] ss:$28 sps:$4 sm:$0xff]  }
 0x31f   :  { %5665 = vmatprep.subr.bf16.mxu1 %v7352_v43  ;;  %v7421_v43 = vld [vmem:[%s10443_s7 + $0x46c] ss:$28 sps:$4 sm:$0xff]  }
 0x322   :  { %5666 = vmatpush1.bf16.msra.mxu1 %v7350_v44  ;;  %v7424_v44 = vld [vmem:[%s10443_s7 + $0x7ec] ss:$28 sps:$4 sm:$0xff]  }
 0x323   :  { %5667 = vmatprep.subr.bf16.mxu1 %v7358_v45  ;;  %v7419_v45 = vld [vmem:[%s10443_s7 + $0x468] ss:$28 sps:$4 sm:$0xff]  }
 0x326   :  { %5668 = vmatpush2.bf16.msra.mxu1 %v7356_v46  ;;  %v7422_v46 = vld [vmem:[%s10443_s7 + $0x7e8] ss:$28 sps:$4 sm:$0xff]  }
 0x327   :  { %5669 = vmatprep.subr.bf16.mxu1 %v7364_v47  ;;  %v7427_v47 = vld [vmem:[%s10443_s7 + $0x434] ss:$28 sps:$4 sm:$0xff]  }
 0x32a   :  { %5670 = vmatpush2.bf16.msra.mxu1 %v7362_v48  ;;  %v7430_v48 = vld [vmem:[%s10443_s7 + $0x7b4] ss:$28 sps:$4 sm:$0xff]  }
 0x32b   :  { %5671 = vmatprep.subr.bf16.mxu1 %v7370_v49  ;;  %v7425_v49 = vld [vmem:[%s10443_s7 + $0x430] ss:$28 sps:$4 sm:$0xff]  }
 0x32e   :  { %5672 = vmatpush2.bf16.msra.mxu1 %v7368_v50  ;;  %v7428_v50 = vld [vmem:[%s10443_s7 + $0x7b0] ss:$28 sps:$4 sm:$0xff]  }
 0x32f   :  { %5673 = vmatprep.subr.bf16.mxu1 %v7376_v52  ;;  %v7433_v52 = vld [vmem:[%s10443_s7 + $0x3fc] ss:$28 sps:$4 sm:$0xff]  }
 0x332   :  { %5674 = vmatpush2.bf16.msra.mxu1 %v7374_v55  ;;  %v7436_v55 = vld [vmem:[%s10443_s7 + $0x77c] ss:$28 sps:$4 sm:$0xff]  }
 0x333   :  { %5675 = vmatprep.subr.bf16.mxu1 %v7382_v56  ;;  %v7431_v56 = vld [vmem:[%s10443_s7 + $0x3f8] ss:$28 sps:$4 sm:$0xff]  }
 0x336   :  { %5676 = vmatpush2.bf16.msra.mxu1 %v7380_v59  ;;  %v7434_v59 = vld [vmem:[%s10443_s7 + $0x778] ss:$28 sps:$4 sm:$0xff]  }
 0x337   :  { %5677 = vmatprep.subr.bf16.mxu1 %v7388_v60  ;;  %v7439_v60 = vld [vmem:[%s10443_s7 + $0x3c4] ss:$28 sps:$4 sm:$0xff]  }
 0x338   :  { %v2554_v5 = vpop.f32.mrf.mxu1 }
 0x339   :  { %v2555_v6 = vadd.f32 %v2554_v5, %v981_v63  ;;  %v2595_v7 = vpop.f32.mrf.mxu0  ;;  %v7437_v63 = vld [vmem:[%s10443_s7 + $0x3c0] ss:$28 sps:$4 sm:$0xff]   ;;  %v7443_v5 = vld [vmem:[%s10443_s7 + $0x388] ss:$28 sps:$4 sm:$0xff]  }
 0x33a   :  { %5678 = vmatpush2.bf16.msra.mxu1 %v7386_v1  ;;  %v2556_v8 = vpop.f32.mrf.mxu1  ;;  %v7440_v1 = vld [vmem:[%s10443_s7 + $0x740] ss:$28 sps:$4 sm:$0xff]  }
 0x33b   :  { %v2596_v11 = vadd.f32 %v2595_v7, %v2555_v6  ;;  %v2557_v20 = vadd.f32 %v2556_v8, %v985_v2  ;;  %v2597_v19 = vpop.f32.mrf.mxu0  ;;  %5679 = vmatprep.subr.bf16.mxu1 %v7394_v3  ;;  %v7445_v2 = vld [vmem:[%s10443_s7 + $0x38c] ss:$28 sps:$4 sm:$0xff]   ;;  %v7451_v7 = vld [vmem:[%s10443_s7 + $0x6d4] ss:$28 sps:$4 sm:$0xff]  }
 0x33c   :  { %v2558_v12 = vpop.f32.mrf.mxu1  ;;  %v7448_v3 = vld [vmem:[%s10443_s7 + $0x70c] ss:$28 sps:$4 sm:$0xff]   ;;  %v7454_v8 = vld [vmem:[%s10443_s7 + $0xa54] ss:$28 sps:$4 sm:$0xff]  }
 0x33d   :  { %vm2608_vm12 = vcmp.gt.f32.partialorder %v2596_v11, 0.0  ;;  %v2616_v21 = vmul.f32 0.2, %v2596_v11  ;;  %v2598_v13 = vadd.f32 %v2597_v19, %v2557_v20  ;;  %v2599_v9 = vpop.f32.mrf.mxu0  ;;  %v7446_v6 = vld [vmem:[%s10443_s7 + $0x708] ss:$28 sps:$4 sm:$0xff]  }
 0x33e   :  { %5680 = vmatpush2.bf16.msra.mxu1 %v7392_v15  ;;  %v2559_v14 = vpop.f32.mrf.mxu1  ;;  %v7449_v15 = vld [vmem:[%s10443_s7 + $0x6d0] ss:$28 sps:$4 sm:$0xff]   ;;  %v7457_v20 = vld [vmem:[%s10443_s7 + $0x69c] ss:$28 sps:$4 sm:$0xff]  }
 0x33f   :  { %vm2609_vm13 = vcmp.gt.f32.partialorder %v2598_v13, 0.0  ;;  %v2617_v17 = vmul.f32 0.2, %v2598_v13  ;;  %v2600_v18 = vpop.f32.mrf.mxu0  ;;  %5681 = vmatprep.subr.bf16.mxu1 %v7400_v4  ;;  %v2624_v22 = vsel %vm2608_vm12, %v2596_v11, %v2616_v21  ;;  %v7452_v11 = vld [vmem:[%s10443_s7 + $0xa50] ss:$28 sps:$4 sm:$0xff]  }
 0x340   :  { %v9497_v32 = vpack.c.bf16 %v2624_v22, %v2624_v22  ;;  %v7460_v19 = vld [vmem:[%s10443_s7 + $0xa1c] ss:$28 sps:$4 sm:$0xff]   ;;  %v7463_v21 = vld [vmem:[%s10443_s7 + $0x664] ss:$28 sps:$4 sm:$0xff]   ;;  %v7475_v22 = vld [vmem:[%s10443_s7 + $0x5f4] ss:$28 sps:$4 sm:$0xff]  }
 0x341   :  { %v2625_v24 = vsel %vm2609_vm13, %v2598_v13, %v2617_v17  ;;  %v7455_v4 = vld [vmem:[%s10443_s7 + $0x698] ss:$28 sps:$4 sm:$0xff]   ;;  %v7466_v13 = vld [vmem:[%s10443_s7 + $0x9e4] ss:$28 sps:$4 sm:$0xff]   ;;  %v7472_v17 = vld [vmem:[%s10443_s7 + $0x9ac] ss:$28 sps:$4 sm:$0xff]  }
 0x342   :  { %v9489_v26 = vpack.c.bf16 %v2625_v24, %v2625_v24  ;;  %5682 = vmatpush2.bf16.msra.mxu1 %v7398_v16  ;;  %v7458_v12 = vld [vmem:[%s10443_s7 + $0xa18] ss:$28 sps:$4 sm:$0xff]   ;;  %v7461_v9 = vld [vmem:[%s10443_s7 + $0x660] ss:$28 sps:$4 sm:$0xff]   ;;  %v7469_v16 = vld [vmem:[%s10443_s7 + $0x62c] ss:$28 sps:$4 sm:$0xff]  }
 0x343   :  { %5733 = vmatprep.subr.bf16.mxu1 %v7406_v10  ;;  %v7464_v14 = vld [vmem:[%s10443_s7 + $0x9e0] ss:$28 sps:$4 sm:$0xff]   ;;  %v7467_v18 = vld [vmem:[%s10443_s7 + $0x628] ss:$28 sps:$4 sm:$0xff]   ;;  %v7478_v24 = vld [vmem:[%s10443_s7 + $0x974] ss:$28 sps:$4 sm:$0xff]  }
 0x344   :  { %5642 = vmatprep.mubr.bf16.mxu0 %v9489_v26  ;;  %v7470_v10 = vld [vmem:[%s10443_s7 + $0x9a8] ss:$28 sps:$4 sm:$0xff]  }
 0x345   :  { %5684 = vmatmul.mubr.bf16.vlgmr.msra.gmra.mxu1 %v9172_v35  ;;  %5643 = vmatmul.mubr.bf16.vlgmr.msra.gmra.mxu0 %v9497_v32 }
 0x346   :  { %5693 = vmatpush1.bf16.msra.mxu0 %v7401_v28  ;;  %5734 = vmatpush1.bf16.msra.mxu1 %v7404_v31  ;;  %v7473_v28 = vld [vmem:[%s10443_s7 + $0x5f0] ss:$28 sps:$4 sm:$0xff]  }
 0x347   :  { %5765 = vmatprep.mubr.bf16.mxu1 %v9380_v23  ;;  %5724 = vmatprep.mubr.bf16.mxu0 %v9195_v61  ;;  %v7476_v31 = vld [vmem:[%s10443_s7 + $0x970] ss:$28 sps:$4 sm:$0xff]  }
 0x348   :  { %5694 = vmatprep.subr.bf16.mxu0 %v7409_v34  ;;  %5735 = vmatprep.subr.bf16.mxu1 %v7412_v36  ;;  %v7481_v34 = vld [vmem:[%s10443_s7 + $0x5bc] ss:$28 sps:$4 sm:$0xff]  }
 0x349   :  { %v7484_v36 = vld [vmem:[%s10443_s7 + $0x93c] ss:$28 sps:$4 sm:$0xff]  }
 0x34a   :  { %5695 = vmatpush1.bf16.msra.mxu0 %v7407_v37  ;;  %5736 = vmatpush1.bf16.msra.mxu1 %v7410_v38  ;;  %v7479_v37 = vld [vmem:[%s10443_s7 + $0x5b8] ss:$28 sps:$4 sm:$0xff]  }
 0x34b   :  { %5696 = vmatprep.subr.bf16.mxu0 %v7415_v39  ;;  %5737 = vmatprep.subr.bf16.mxu1 %v7418_v40  ;;  %v7482_v38 = vld [vmem:[%s10443_s7 + $0x938] ss:$28 sps:$4 sm:$0xff]   ;;  %v7487_v39 = vld [vmem:[%s10443_s7 + $0x584] ss:$28 sps:$4 sm:$0xff]  }
 0x34c   :  { %v7490_v40 = vld [vmem:[%s10443_s7 + $0x904] ss:$28 sps:$4 sm:$0xff]  }
 0x34e   :  { %5697 = vmatpush1.bf16.msra.mxu0 %v7413_v41  ;;  %5738 = vmatpush1.bf16.msra.mxu1 %v7416_v42 }
 0x34f   :  { %5698 = vmatprep.subr.bf16.mxu0 %v7421_v43  ;;  %5739 = vmatprep.subr.bf16.mxu1 %v7424_v44  ;;  %v7485_v43 = vld [vmem:[%s10443_s7 + $0x580] ss:$28 sps:$4 sm:$0xff]  }
 0x350   :  { %v7488_v44 = vld [vmem:[%s10443_s7 + $0x900] ss:$28 sps:$4 sm:$0xff]  }
 0x352   :  { %5699 = vmatpush1.bf16.msra.mxu0 %v7419_v45  ;;  %5740 = vmatpush1.bf16.msra.mxu1 %v7422_v46  ;;  %v7493_v45 = vld [vmem:[%s10443_s7 + $0x54c] ss:$28 sps:$4 sm:$0xff]  }
 0x353   :  { %5700 = vmatprep.subr.bf16.mxu0 %v7427_v47  ;;  %5741 = vmatprep.subr.bf16.mxu1 %v7430_v48  ;;  %v7496_v46 = vld [vmem:[%s10443_s7 + $0x8cc] ss:$28 sps:$4 sm:$0xff]   ;;  %v9681_v48 = vld [vmem:[%s10444_s8] sm:$0xff] }
 0x356   :  { %5701 = vmatpush1.bf16.msra.mxu0 %v7425_v49  ;;  %5742 = vmatpush1.bf16.msra.mxu1 %v7428_v50  ;;  %v7491_v50 = vld [vmem:[%s10443_s7 + $0x548] ss:$28 sps:$4 sm:$0xff]  }
 0x357   :  { %5702 = vmatprep.subr.bf16.mxu0 %v7433_v52  ;;  %5743 = vmatprep.subr.bf16.mxu1 %v7436_v55  ;;  %v7494_v52 = vld [vmem:[%s10443_s7 + $0x8c8] ss:$28 sps:$4 sm:$0xff]   ;;  %v7499_v55 = vld [vmem:[%s10443_s7 + $0xc14] ss:$28 sps:$4 sm:$0xff]  }
 0x35a   :  { %5703 = vmatpush1.bf16.msra.mxu0 %v7431_v56  ;;  %5744 = vmatpush1.bf16.msra.mxu1 %v7434_v59  ;;  %v7502_v56 = vld [vmem:[%s10443_s7 + $0x19c] ss:$28 sps:$4 sm:$0xff]   ;;  %v3151_v59 = vrot.slane %v9681_v48, %v8151_v29 }
 0x35b   :  { %5704 = vmatprep.subr.bf16.mxu0 %v7439_v60  ;;  %5745 = vmatprep.subr.bf16.mxu1 %v7442_v62  ;;  %v3155_v60 = vrot.slane %v9681_v48, %v8154_v30  ;;  %v7497_v62 = vld [vmem:[%s10443_s7 + $0xc10] ss:$28 sps:$4 sm:$0xff]   ;;  %v7505_v29 = vld [vmem:[%s10443_s7 + $0xbdc] ss:$28 sps:$4 sm:$0xff]   ;;  %v7508_v30 = vld [vmem:[%s10443_s7 + $0x164] ss:$28 sps:$4 sm:$0xff]  }
 0x35e   :  { %5705 = vmatpush1.bf16.msra.mxu0 %v7437_v63  ;;  %5746 = vmatpush1.bf16.msra.mxu1 %v7440_v1  ;;  %v7500_v63 = vld [vmem:[%s10443_s7 + $0x198] ss:$28 sps:$4 sm:$0xff]  }
 0x35f   :  { %5706 = vmatprep.subr.bf16.mxu0 %v7445_v2  ;;  %5747 = vmatprep.subr.bf16.mxu1 %v7448_v3 }
 0x362   :  { %5707 = vmatpush1.bf16.msra.mxu0 %v7443_v5  ;;  %5748 = vmatpush1.bf16.msra.mxu1 %v7446_v6  ;;  %v7503_v6 = vld [vmem:[%s10443_s7 + $0xbd8] ss:$28 sps:$4 sm:$0xff]  }
 0x363   :  { %5708 = vmatprep.subr.bf16.mxu0 %v7451_v7  ;;  %5749 = vmatprep.subr.bf16.mxu1 %v7454_v8  ;;  %v7506_v8 = vld [vmem:[%s10443_s7 + $0x160] ss:$28 sps:$4 sm:$0xff]  }
 0x366   :  { %5709 = vmatpush2.bf16.msra.mxu0 %v7449_v15  ;;  %5750 = vmatpush2.bf16.msra.mxu1 %v7452_v11  ;;  %v7511_v15 = vld [vmem:[%s10443_s7 + $0xba4] ss:$28 sps:$4 sm:$0xff]  }
 0x367   :  { %5710 = vmatprep.subr.bf16.mxu0 %v7457_v20  ;;  %5751 = vmatprep.subr.bf16.mxu1 %v7460_v19  ;;  %v7514_v20 = vld [vmem:[%s10443_s7 + $0x12c] ss:$28 sps:$4 sm:$0xff]  }
 0x36a   :  { %5711 = vmatpush2.bf16.msra.mxu0 %v7455_v4  ;;  %5752 = vmatpush2.bf16.msra.mxu1 %v7458_v12  ;;  %v7509_v4 = vld [vmem:[%s10443_s7 + $0xba0] ss:$28 sps:$4 sm:$0xff]  }
 0x36b   :  { %5712 = vmatprep.subr.bf16.mxu0 %v7463_v21  ;;  %5753 = vmatprep.subr.bf16.mxu1 %v7466_v13  ;;  %v7512_v21 = vld [vmem:[%s10443_s7 + $0x128] ss:$28 sps:$4 sm:$0xff]  }
 0x36c   :  { %v7517_v13 = vld [vmem:[%s10443_s7 + $0xb6c] ss:$28 sps:$4 sm:$0xff]  }
 0x36e   :  { %5713 = vmatpush2.bf16.msra.mxu0 %v7461_v9  ;;  %5754 = vmatpush2.bf16.msra.mxu1 %v7464_v14  ;;  %v7520_v9 = vld [vmem:[%s10443_s7 + $0xf4] ss:$28 sps:$4 sm:$0xff]   ;;  %v7515_v14 = vld [vmem:[%s10443_s7 + $0xb68] ss:$28 sps:$4 sm:$0xff]  }
 0x36f   :  { %5714 = vmatprep.subr.bf16.mxu0 %v7469_v16  ;;  %5755 = vmatprep.subr.bf16.mxu1 %v7472_v17  ;;  %v7518_v16 = vld [vmem:[%s10443_s7 + $0xf0] ss:$28 sps:$4 sm:$0xff]  }
 0x370   :  { %v7523_v17 = vld [vmem:[%s10443_s7 + $0xb34] ss:$28 sps:$4 sm:$0xff]  }
 0x372   :  { %5715 = vmatpush2.bf16.msra.mxu0 %v7467_v18  ;;  %5756 = vmatpush2.bf16.msra.mxu1 %v7470_v10  ;;  %v7526_v18 = vld [vmem:[%s10443_s7 + $0xbc] ss:$28 sps:$4 sm:$0xff]   ;;  %v7521_v10 = vld [vmem:[%s10443_s7 + $0xb30] ss:$28 sps:$4 sm:$0xff]  }
 0x373   :  { %5716 = vmatprep.subr.bf16.mxu0 %v7475_v22  ;;  %5757 = vmatprep.subr.bf16.mxu1 %v7478_v24  ;;  %v7524_v22 = vld [vmem:[%s10443_s7 + $0xb8] ss:$28 sps:$4 sm:$0xff]  }
 0x374   :  { %v7529_v24 = vld [vmem:[%s10443_s7 + $0xafc] ss:$28 sps:$4 sm:$0xff]  }
 0x376   :  { %5717 = vmatpush2.bf16.msra.mxu0 %v7473_v28  ;;  %5758 = vmatpush2.bf16.msra.mxu1 %v7476_v31  ;;  %v7532_v28 = vld [vmem:[%s10443_s7 + $0x84] ss:$28 sps:$4 sm:$0xff]   ;;  %v7527_v31 = vld [vmem:[%s10443_s7 + $0xaf8] ss:$28 sps:$4 sm:$0xff]  }
 0x377   :  { %5718 = vmatprep.subr.bf16.mxu0 %v7481_v34  ;;  %5759 = vmatprep.subr.bf16.mxu1 %v7484_v36  ;;  %v7530_v34 = vld [vmem:[%s10443_s7 + $0x80] ss:$28 sps:$4 sm:$0xff]  }
 0x378   :  { %v5521_v41 = vpop.f32.mrf.mxu1  ;;  %v7535_v36 = vld [vmem:[%s10443_s7 + $0xac4] ss:$28 sps:$4 sm:$0xff]  }
 0x379   :  { %v5522_v1 = vadd.f32 %v5521_v41, %v3151_v59  ;;  %v7544_v41 = vld [vmem:[%s10443_s7 + $0x14] ss:$28 sps:$4 sm:$0xff]   ;;  %v7562_v59 = vld [vmem:[%s10443_s7 + $0x2ec] ss:$28 sps:$4 sm:$0xff]  }
 0x37a   :  { %5719 = vmatpush2.bf16.msra.mxu0 %v7479_v37  ;;  %5760 = vmatpush2.bf16.msra.mxu1 %v7482_v38  ;;  %v5523_v42 = vpop.f32.mrf.mxu1  ;;  %v7538_v37 = vld [vmem:[%s10443_s7 + $0x4c] ss:$28 sps:$4 sm:$0xff]   ;;  %v7533_v38 = vld [vmem:[%s10443_s7 + $0xac0] ss:$28 sps:$4 sm:$0xff]  }
 0x37b   :  { %5720 = vmatprep.subr.bf16.mxu0 %v7487_v39  ;;  %5761 = vmatprep.subr.bf16.mxu1 %v7490_v40  ;;  %v5524_v3 = vadd.f32 %v5523_v42, %v3155_v60  ;;  %v7536_v39 = vld [vmem:[%s10443_s7 + $0x48] ss:$28 sps:$4 sm:$0xff]   ;;  %v7557_v60 = vld [vmem:[%s10443_s7 + $0xd60] ss:$28 sps:$4 sm:$0xff]  }
 0x37c   :  { %v5525_v47 = vpop.f32.mrf.mxu1  ;;  %v7541_v40 = vld [vmem:[%s10443_s7 + $0xa8c] ss:$28 sps:$4 sm:$0xff]  }
 0x37d   :  { %v7539_v42 = vld [vmem:[%s10443_s7 + $0xa88] ss:$28 sps:$4 sm:$0xff]   ;;  %v7548_v47 = vld [vmem:[%s10443_s7 + $0x358] ss:$28 sps:$4 sm:$0xff]  }
 0x37e   :  { %5721 = vmatpush2.bf16.msra.mxu0 %v7485_v43  ;;  %5762 = vmatpush2.bf16.msra.mxu1 %v7488_v44  ;;  %v5526_v49 = vpop.f32.mrf.mxu1  ;;  %v7542_v43 = vld [vmem:[%s10443_s7 + $0x10] ss:$28 sps:$4 sm:$0xff]  }
 0x37f   :  { %5722 = vmatprep.subr.bf16.mxu0 %v7493_v45  ;;  %5763 = vmatprep.subr.bf16.mxu1 %v7496_v46  ;;  %v7547_v44 = vld [vmem:[%s10443_s7 + $0xdd4] ss:$28 sps:$4 sm:$0xff]   ;;  %v7550_v45 = vld [vmem:[%s10443_s7 + $0x35c] ss:$28 sps:$4 sm:$0xff]  }
 0x380   :  { %v7545_v46 = vld [vmem:[%s10443_s7 + $0xdd0] ss:$28 sps:$4 sm:$0xff]   ;;  %v7553_v49 = vld [vmem:[%s10443_s7 + $0xd9c] ss:$28 sps:$4 sm:$0xff]  }
 0x382   :  { %5723 = vmatpush2.bf16.msra.mxu0 %v7491_v50  ;;  %5764 = vmatpush2.bf16.msra.mxu1 %v7494_v52  ;;  %v7556_v50 = vld [vmem:[%s10443_s7 + $0x324] ss:$28 sps:$4 sm:$0xff]   ;;  %v7551_v52 = vld [vmem:[%s10443_s7 + $0xd98] ss:$28 sps:$4 sm:$0xff]  }
 0x383   :  { %5774 = vmatprep.subr.bf16.mxu0 %v7499_v55  ;;  %5815 = vmatprep.subr.bf16.mxu1 %v7502_v56  ;;  %v7554_v55 = vld [vmem:[%s10443_s7 + $0x320] ss:$28 sps:$4 sm:$0xff]  }
 0x384   :  { %v7559_v56 = vld [vmem:[%s10443_s7 + $0xd64] ss:$28 sps:$4 sm:$0xff]  }
 0x385   :  { %5725 = vmatmul.mubr.bf16.vlgmr.msra.gmra.mxu0 %v9203_v0  ;;  %5766 = vmatmul.mubr.bf16.vlgmr.msra.gmra.mxu1 %v9385_v25  ;;  %v5562_v2 = vpop.f32.mrf.mxu0 }
 0x386   :  { %v9713_v5 = vadd.f32 %v5562_v2, %v5522_v1  ;;  %5775 = vmatpush1.bf16.msra.mxu0 %v7497_v62  ;;  %5806 = vmatprep.mubr.bf16.mxu0 %v9489_v26  ;;  %v7560_v62 = vld [vmem:[%s10443_s7 + $0x2e8] ss:$28 sps:$4 sm:$0xff]   ;;  %v7568_v1 = vld [vmem:[%s10443_s7 + $0x2b4] ss:$28 sps:$4 sm:$0xff]  }
 0x387   :  { %5816 = vmatpush1.bf16.msra.mxu1 %v7500_v63  ;;  %5847 = vmatprep.mubr.bf16.mxu1 %v9007_v33  ;;  %v5564_v7 = vpop.f32.mrf.mxu0  ;;  %v7565_v63 = vld [vmem:[%s10443_s7 + $0xd2c] ss:$28 sps:$4 sm:$0xff]   ;;  %v7571_v2 = vld [vmem:[%s10443_s7 + $0xcf4] ss:$28 sps:$4 sm:$0xff]  }
 0x388   :  { %v9726_v11 = vadd.f32 %v5564_v7, %v5524_v3  ;;  %5776 = vmatprep.subr.bf16.mxu0 %v7505_v29  ;;  %5817 = vmatprep.subr.bf16.mxu1 %v7508_v30  ;;  %v7563_v29 = vld [vmem:[%s10443_s7 + $0xd28] ss:$28 sps:$4 sm:$0xff]   ;;  %v7566_v30 = vld [vmem:[%s10443_s7 + $0x2b0] ss:$28 sps:$4 sm:$0xff]   ;;  %v7574_v3 = vld [vmem:[%s10443_s7 + $0x27c] ss:$28 sps:$4 sm:$0xff]  }
 0x389   :  { %v5566_v19 = vpop.f32.mrf.mxu0  ;;  %v7572_v7 = vld [vmem:[%s10443_s7 + $0x278] ss:$28 sps:$4 sm:$0xff]  }
 0x38a   :  { %5777 = vmatpush1.bf16.msra.mxu0 %v7503_v6  ;;  %v7569_v6 = vld [vmem:[%s10443_s7 + $0xcf0] ss:$28 sps:$4 sm:$0xff]   ;;  %v7578_v19 = vld [vmem:[%s10443_s7 + $0x240] ss:$28 sps:$4 sm:$0xff]  }
 0x38b   :  { %5818 = vmatpush1.bf16.msra.mxu1 %v7506_v8  ;;  %v5567_v12 = vpop.f32.mrf.mxu0  ;;  %5778 = vmatprep.subr.bf16.mxu0 %v7511_v15  ;;  %v7577_v8 = vld [vmem:[%s10443_s7 + $0xcbc] ss:$28 sps:$4 sm:$0xff]   ;;  %v7580_v15 = vld [vmem:[%s10443_s7 + $0x244] ss:$28 sps:$4 sm:$0xff]  }
 0x38c   :  { %5819 = vmatprep.subr.bf16.mxu1 %v7514_v20  ;;  %v7575_v20 = vld [vmem:[%s10443_s7 + $0xcb8] ss:$28 sps:$4 sm:$0xff]   ;;  %v7586_v12 = vld [vmem:[%s10443_s7 + $0x20c] ss:$28 sps:$4 sm:$0xff]  }
 0x38e   :  { %5779 = vmatpush1.bf16.msra.mxu0 %v7509_v4  ;;  %v7583_v4 = vld [vmem:[%s10443_s7 + $0xc84] ss:$28 sps:$4 sm:$0xff]  }
 0x38f   :  { %5820 = vmatpush1.bf16.msra.mxu1 %v7512_v21  ;;  %5780 = vmatprep.subr.bf16.mxu0 %v7517_v13  ;;  %v7581_v21 = vld [vmem:[%s10443_s7 + $0xc80] ss:$28 sps:$4 sm:$0xff]   ;;  %v7584_v13 = vld [vmem:[%s10443_s7 + $0x208] ss:$28 sps:$4 sm:$0xff]  }
 0x390   :  { %5821 = vmatprep.subr.bf16.mxu1 %v7520_v9  ;;  %v7589_v9 = vld [vmem:[%s10443_s7 + $0xc4c] ss:$28 sps:$4 sm:$0xff]  }
 0x392   :  { %5781 = vmatpush1.bf16.msra.mxu0 %v7515_v14  ;;  %v7592_v14 = vld [vmem:[%s10443_s7 + $0x1d4] ss:$28 sps:$4 sm:$0xff]  }
 0x393   :  { %5822 = vmatpush1.bf16.msra.mxu1 %v7518_v16  ;;  %5782 = vmatprep.subr.bf16.mxu0 %v7523_v17  ;;  %v7587_v16 = vld [vmem:[%s10443_s7 + $0xc48] ss:$28 sps:$4 sm:$0xff]   ;;  %v7590_v17 = vld [vmem:[%s10443_s7 + $0x1d0] ss:$28 sps:$4 sm:$0xff]  }
 0x394   :  { %5823 = vmatprep.subr.bf16.mxu1 %v7526_v18  ;;  %v7595_v18 = vld [vmem:[%s10443_s7 + $0x51c] ss:$28 sps:$4 sm:$0xff]  }
 0x396   :  { %5783 = vmatpush1.bf16.msra.mxu0 %v7521_v10  ;;  %v7598_v10 = vld [vmem:[%s10443_s7 + $0x89c] ss:$28 sps:$4 sm:$0xff]  }
 0x397   :  { %5824 = vmatpush1.bf16.msra.mxu1 %v7524_v22  ;;  %5784 = vmatprep.subr.bf16.mxu0 %v7529_v24  ;;  %v7593_v22 = vld [vmem:[%s10443_s7 + $0x518] ss:$28 sps:$4 sm:$0xff]  }
 0x398   :  { %5825 = vmatprep.subr.bf16.mxu1 %v7532_v28  ;;  %v7596_v24 = vld [vmem:[%s10443_s7 + $0x898] ss:$28 sps:$4 sm:$0xff]   ;;  %v7601_v28 = vld [vmem:[%s10443_s7 + $0x4e4] ss:$28 sps:$4 sm:$0xff]  }
 0x39a   :  { %5785 = vmatpush1.bf16.msra.mxu0 %v7527_v31 }
 0x39b   :  { %5826 = vmatpush1.bf16.msra.mxu1 %v7530_v34  ;;  %5786 = vmatprep.subr.bf16.mxu0 %v7535_v36  ;;  %v7604_v34 = vld [vmem:[%s10443_s7 + $0x864] ss:$28 sps:$4 sm:$0xff]  }
 0x39c   :  { %5827 = vmatprep.subr.bf16.mxu1 %v7538_v37  ;;  %v7599_v36 = vld [vmem:[%s10443_s7 + $0x4e0] ss:$28 sps:$4 sm:$0xff]  }
 0x39e   :  { %5787 = vmatpush1.bf16.msra.mxu0 %v7533_v38  ;;  %v7602_v38 = vld [vmem:[%s10443_s7 + $0x860] ss:$28 sps:$4 sm:$0xff]  }
 0x39f   :  { %5828 = vmatpush1.bf16.msra.mxu1 %v7536_v39  ;;  %5788 = vmatprep.subr.bf16.mxu0 %v7541_v40  ;;  %v7607_v39 = vld [vmem:[%s10443_s7 + $0x4ac] ss:$28 sps:$4 sm:$0xff]  }
 0x3a0   :  { %5829 = vmatprep.subr.bf16.mxu1 %v7544_v41  ;;  %v7610_v40 = vld [vmem:[%s10443_s7 + $0x82c] ss:$28 sps:$4 sm:$0xff]  }
 0x3a2   :  { %5789 = vmatpush1.bf16.msra.mxu0 %v7539_v42  ;;  %v7605_v42 = vld [vmem:[%s10443_s7 + $0x4a8] ss:$28 sps:$4 sm:$0xff]  }
 0x3a3   :  { %5830 = vmatpush1.bf16.msra.mxu1 %v7542_v43  ;;  %5790 = vmatprep.subr.bf16.mxu0 %v7547_v44  ;;  %v7608_v44 = vld [vmem:[%s10443_s7 + $0x828] ss:$28 sps:$4 sm:$0xff]  }
 0x3a4   :  { %5831 = vmatprep.subr.bf16.mxu1 %v7550_v45  ;;  %v7613_v45 = vld [vmem:[%s10443_s7 + $0x474] ss:$28 sps:$4 sm:$0xff]  }
 0x3a6   :  { %5791 = vmatpush2.bf16.msra.mxu0 %v7545_v46  ;;  %v7616_v46 = vld [vmem:[%s10443_s7 + $0x7f4] ss:$28 sps:$4 sm:$0xff]  }
 0x3a7   :  { %5832 = vmatpush2.bf16.msra.mxu1 %v7548_v47  ;;  %5792 = vmatprep.subr.bf16.mxu0 %v7553_v49  ;;  %v7611_v47 = vld [vmem:[%s10443_s7 + $0x470] ss:$28 sps:$4 sm:$0xff]  }
 0x3a8   :  { %5833 = vmatprep.subr.bf16.mxu1 %v7556_v50  ;;  %v7614_v49 = vld [vmem:[%s10443_s7 + $0x7f0] ss:$28 sps:$4 sm:$0xff]   ;;  %v7619_v50 = vld [vmem:[%s10443_s7 + $0x43c] ss:$28 sps:$4 sm:$0xff]  }
 0x3aa   :  { %5793 = vmatpush2.bf16.msra.mxu0 %v7551_v52  ;;  %v7622_v52 = vld [vmem:[%s10443_s7 + $0x7bc] ss:$28 sps:$4 sm:$0xff]  }
 0x3ab   :  { %5834 = vmatpush2.bf16.msra.mxu1 %v7554_v55  ;;  %5794 = vmatprep.subr.bf16.mxu0 %v7559_v56  ;;  %v7617_v55 = vld [vmem:[%s10443_s7 + $0x438] ss:$28 sps:$4 sm:$0xff]  }
 0x3ac   :  { %5835 = vmatprep.subr.bf16.mxu1 %v7562_v59  ;;  %v7620_v56 = vld [vmem:[%s10443_s7 + $0x7b8] ss:$28 sps:$4 sm:$0xff]   ;;  %v7625_v59 = vld [vmem:[%s10443_s7 + $0x404] ss:$28 sps:$4 sm:$0xff]  }
 0x3ae   :  { %5795 = vmatpush2.bf16.msra.mxu0 %v7557_v60  ;;  %v7628_v60 = vld [vmem:[%s10443_s7 + $0x784] ss:$28 sps:$4 sm:$0xff]  }
 0x3af   :  { %5836 = vmatpush2.bf16.msra.mxu1 %v7560_v62  ;;  %5796 = vmatprep.subr.bf16.mxu0 %v7565_v63  ;;  %v7623_v62 = vld [vmem:[%s10443_s7 + $0x400] ss:$28 sps:$4 sm:$0xff]  }
 0x3b0   :  { %5837 = vmatprep.subr.bf16.mxu1 %v7568_v1  ;;  %v7626_v63 = vld [vmem:[%s10443_s7 + $0x780] ss:$28 sps:$4 sm:$0xff]   ;;  %v7631_v1 = vld [vmem:[%s10443_s7 + $0x3cc] ss:$28 sps:$4 sm:$0xff]  }
 0x3b2   :  { %5797 = vmatpush2.bf16.msra.mxu0 %v7563_v29  ;;  %v7634_v29 = vld [vmem:[%s10443_s7 + $0x74c] ss:$28 sps:$4 sm:$0xff]  }
 0x3b3   :  { %5838 = vmatpush2.bf16.msra.mxu1 %v7566_v30  ;;  %5798 = vmatprep.subr.bf16.mxu0 %v7571_v2  ;;  %v7629_v30 = vld [vmem:[%s10443_s7 + $0x3c8] ss:$28 sps:$4 sm:$0xff]  }
 0x3b4   :  { %5839 = vmatprep.subr.bf16.mxu1 %v7574_v3  ;;  %v7632_v2 = vld [vmem:[%s10443_s7 + $0x748] ss:$28 sps:$4 sm:$0xff]   ;;  %v7637_v3 = vld [vmem:[%s10443_s7 + $0x394] ss:$28 sps:$4 sm:$0xff]  }
 0x3b6   :  { %5799 = vmatpush2.bf16.msra.mxu0 %v7569_v6  ;;  %v7640_v6 = vld [vmem:[%s10443_s7 + $0x714] ss:$28 sps:$4 sm:$0xff]  }
 0x3b7   :  { %5840 = vmatpush2.bf16.msra.mxu1 %v7572_v7  ;;  %5800 = vmatprep.subr.bf16.mxu0 %v7577_v8  ;;  %v7635_v7 = vld [vmem:[%s10443_s7 + $0x390] ss:$28 sps:$4 sm:$0xff]  }
 0x3b8   :  { %5841 = vmatprep.subr.bf16.mxu1 %v7580_v15  ;;  %v7638_v8 = vld [vmem:[%s10443_s7 + $0x710] ss:$28 sps:$4 sm:$0xff]   ;;  %v7643_v15 = vld [vmem:[%s10443_s7 + $0x6dc] ss:$28 sps:$4 sm:$0xff]  }
 0x3ba   :  { %5801 = vmatpush2.bf16.msra.mxu0 %v7575_v20  ;;  %v7646_v20 = vld [vmem:[%s10443_s7 + $0xa5c] ss:$28 sps:$4 sm:$0xff]  }
 0x3bb   :  { %5842 = vmatpush2.bf16.msra.mxu1 %v7578_v19  ;;  %5802 = vmatprep.subr.bf16.mxu0 %v7583_v4  ;;  %v7641_v19 = vld [vmem:[%s10443_s7 + $0x6d8] ss:$28 sps:$4 sm:$0xff]  }
 0x3bc   :  { %5843 = vmatprep.subr.bf16.mxu1 %v7586_v12  ;;  %v7644_v4 = vld [vmem:[%s10443_s7 + $0xa58] ss:$28 sps:$4 sm:$0xff]   ;;  %v7649_v12 = vld [vmem:[%s10443_s7 + $0x6a4] ss:$28 sps:$4 sm:$0xff]  }
 0x3be   :  { %5803 = vmatpush2.bf16.msra.mxu0 %v7581_v21  ;;  %v7652_v21 = vld [vmem:[%s10443_s7 + $0xa24] ss:$28 sps:$4 sm:$0xff]  }
 0x3bf   :  { %5844 = vmatpush2.bf16.msra.mxu1 %v7584_v13  ;;  %5804 = vmatprep.subr.bf16.mxu0 %v7589_v9  ;;  %v7647_v13 = vld [vmem:[%s10443_s7 + $0x6a0] ss:$28 sps:$4 sm:$0xff]  }
 0x3c0   :  { %5845 = vmatprep.subr.bf16.mxu1 %v7592_v14  ;;  %v7650_v9 = vld [vmem:[%s10443_s7 + $0xa20] ss:$28 sps:$4 sm:$0xff]   ;;  %v7655_v14 = vld [vmem:[%s10443_s7 + $0x66c] ss:$28 sps:$4 sm:$0xff]  }
 0x3c2   :  { %5805 = vmatpush2.bf16.msra.mxu0 %v7587_v16  ;;  %v7658_v16 = vld [vmem:[%s10443_s7 + $0x9ec] ss:$28 sps:$4 sm:$0xff]  }
 0x3c3   :  { %5846 = vmatpush2.bf16.msra.mxu1 %v7590_v17  ;;  %5856 = vmatprep.subr.bf16.mxu0 %v7595_v18  ;;  %v7653_v17 = vld [vmem:[%s10443_s7 + $0x668] ss:$28 sps:$4 sm:$0xff]  }
 0x3c4   :  { %5897 = vmatprep.subr.bf16.mxu1 %v7598_v10  ;;  %v7656_v18 = vld [vmem:[%s10443_s7 + $0x9e8] ss:$28 sps:$4 sm:$0xff]   ;;  %v7661_v10 = vld [vmem:[%s10443_s7 + $0x634] ss:$28 sps:$4 sm:$0xff]  }
 0x3c5   :  { %5807 = vmatmul.mubr.bf16.vlgmr.msra.gmra.mxu0 %v9497_v32  ;;  %v9909_v31 = vpop.f32.mrf.mxu1 }
 0x3c6   :  { %5848 = vmatmul.mubr.bf16.vlgmr.msra.gmra.mxu1 %v9172_v35  ;;  %5857 = vmatpush1.bf16.msra.mxu0 %v7593_v22  ;;  %v7664_v22 = vld [vmem:[%s10443_s7 + $0x9b4] ss:$28 sps:$4 sm:$0xff]  }
 0x3c7   :  { %5888 = vmatprep.mubr.bf16.mxu0 %v9195_v61  ;;  %5898 = vmatpush1.bf16.msra.mxu1 %v7596_v24  ;;  %v9919_v37 = vpop.f32.mrf.mxu1  ;;  %v7659_v24 = vld [vmem:[%s10443_s7 + $0x630] ss:$28 sps:$4 sm:$0xff]  }
 0x3c8   :  { %5929 = vmatprep.mubr.bf16.mxu1 %v9380_v23  ;;  %5858 = vmatprep.subr.bf16.mxu0 %v7601_v28  ;;  %v7662_v28 = vld [vmem:[%s10443_s7 + $0x9b0] ss:$28 sps:$4 sm:$0xff]  }
 0x3c9   :  { %5899 = vmatprep.subr.bf16.mxu1 %v7604_v34  ;;  %v5607_v41 = vpop.f32.mrf.mxu1  ;;  %v7667_v34 = vld [vmem:[%s10443_s7 + $0x5fc] ss:$28 sps:$4 sm:$0xff]  }
 0x3ca   :  { %5859 = vmatpush1.bf16.msra.mxu0 %v7599_v36  ;;  %v7670_v36 = vld [vmem:[%s10443_s7 + $0x97c] ss:$28 sps:$4 sm:$0xff]   ;;  %v7676_v41 = vld [vmem:[%s10443_s7 + $0x944] ss:$28 sps:$4 sm:$0xff]  }
 0x3cb   :  { %5900 = vmatpush1.bf16.msra.mxu1 %v7602_v38  ;;  %v5608_v43 = vpop.f32.mrf.mxu1  ;;  %5860 = vmatprep.subr.bf16.mxu0 %v7607_v39  ;;  %v7665_v38 = vld [vmem:[%s10443_s7 + $0x5f8] ss:$28 sps:$4 sm:$0xff]  }
 0x3cc   :  { %5901 = vmatprep.subr.bf16.mxu1 %v7610_v40  ;;  %v7668_v39 = vld [vmem:[%s10443_s7 + $0x978] ss:$28 sps:$4 sm:$0xff]   ;;  %v7673_v40 = vld [vmem:[%s10443_s7 + $0x5c4] ss:$28 sps:$4 sm:$0xff]  }
 0x3cd   :  { %v7674_v43 = vld [vmem:[%s10443_s7 + $0x940] ss:$28 sps:$4 sm:$0xff]  }
 0x3ce   :  { %5861 = vmatpush1.bf16.msra.mxu0 %v7605_v42  ;;  %v7671_v42 = vld [vmem:[%s10443_s7 + $0x5c0] ss:$28 sps:$4 sm:$0xff]  }
 0x3cf   :  { %5902 = vmatpush1.bf16.msra.mxu1 %v7608_v44  ;;  %5862 = vmatprep.subr.bf16.mxu0 %v7613_v45  ;;  %v7679_v44 = vld [vmem:[%s10443_s7 + $0x58c] ss:$28 sps:$4 sm:$0xff]  }
 0x3d0   :  { %5903 = vmatprep.subr.bf16.mxu1 %v7616_v46  ;;  %v7682_v45 = vld [vmem:[%s10443_s7 + $0x90c] ss:$28 sps:$4 sm:$0xff]  }
 0x3d1   :  { %v7677_v46 = vld [vmem:[%s10443_s7 + $0x588] ss:$28 sps:$4 sm:$0xff]  }
 0x3d2   :  { %5863 = vmatpush1.bf16.msra.mxu0 %v7611_v47  ;;  %v7680_v47 = vld [vmem:[%s10443_s7 + $0x908] ss:$28 sps:$4 sm:$0xff]  }
 0x3d3   :  { %5904 = vmatpush1.bf16.msra.mxu1 %v7614_v49  ;;  %5864 = vmatprep.subr.bf16.mxu0 %v7619_v50  ;;  %v7685_v49 = vld [vmem:[%s10443_s7 + $0x554] ss:$28 sps:$4 sm:$0xff]  }
 0x3d4   :  { %5905 = vmatprep.subr.bf16.mxu1 %v7622_v52  ;;  %v7688_v50 = vld [vmem:[%s10443_s7 + $0x8d4] ss:$28 sps:$4 sm:$0xff]  }
 0x3d5   :  { %v7683_v52 = vld [vmem:[%s10443_s7 + $0x550] ss:$28 sps:$4 sm:$0xff]  }
 0x3d6   :  { %5865 = vmatpush1.bf16.msra.mxu0 %v7617_v55  ;;  %v7686_v55 = vld [vmem:[%s10443_s7 + $0x8d0] ss:$28 sps:$4 sm:$0xff]  }
 0x3d7   :  { %5906 = vmatpush1.bf16.msra.mxu1 %v7620_v56  ;;  %5866 = vmatprep.subr.bf16.mxu0 %v7625_v59  ;;  %v7691_v56 = vld [vmem:[%s10443_s7 + $0xc1c] ss:$28 sps:$4 sm:$0xff]  }
 0x3d8   :  { %5907 = vmatprep.subr.bf16.mxu1 %v7628_v60  ;;  %v7692_v59 = vld [vmem:[%s10443_s7 + $0x360] ss:$28 sps:$4 sm:$0xff]   ;;  %v7689_v60 = vld [vmem:[%s10443_s7 + $0xc18] ss:$28 sps:$4 sm:$0xff]  }
 0x3da   :  { %5867 = vmatpush1.bf16.msra.mxu0 %v7623_v62  ;;  %v7693_v62 = vld [vmem:[%s10443_s7 + $0x1a0] ss:$28 sps:$4 sm:$0xff]  }
 0x3db   :  { %5908 = vmatpush1.bf16.msra.mxu1 %v7626_v63  ;;  %5868 = vmatprep.subr.bf16.mxu0 %v7631_v1  ;;  %v5604_v63 = vadd.f32 %v9909_v31, %v9713_v5  ;;  %v7696_v1 = vld [vmem:[%s10443_s7 + $0xbe4] ss:$28 sps:$4 sm:$0xff]  }
 0x3dc   :  { %5909 = vmatprep.subr.bf16.mxu1 %v7634_v29  ;;  %v7694_v31 = vld [vmem:[%s10443_s7 + $0xbe0] ss:$28 sps:$4 sm:$0xff]  }
 0x3de   :  { %5869 = vmatpush1.bf16.msra.mxu0 %v7629_v30 }
 0x3df   :  { %5910 = vmatpush1.bf16.msra.mxu1 %v7632_v2  ;;  %5870 = vmatprep.subr.bf16.mxu0 %v7637_v3  ;;  %v7697_v2 = vld [vmem:[%s10443_s7 + $0x328] ss:$28 sps:$4 sm:$0xff]   ;;  %v5606_v3 = vadd.f32 %v9919_v37, %v9726_v11 }
 0x3e0   :  { %5911 = vmatprep.subr.bf16.mxu1 %v7640_v6  ;;  %v7701_v11 = vld [vmem:[%s10443_s7 + $0xbac] ss:$28 sps:$4 sm:$0xff]  }
 0x3e2   :  { %5871 = vmatpush1.bf16.msra.mxu0 %v7635_v7 }
 0x3e3   :  { %5912 = vmatpush1.bf16.msra.mxu1 %v7638_v8  ;;  %5872 = vmatprep.subr.bf16.mxu0 %v7643_v15  ;;  %v7698_v8 = vld [vmem:[%s10443_s7 + $0x168] ss:$28 sps:$4 sm:$0xff]   ;;  %v7702_v15 = vld [vmem:[%s10443_s7 + $0x2f0] ss:$28 sps:$4 sm:$0xff]  }
 0x3e4   :  { %5913 = vmatprep.subr.bf16.mxu1 %v7646_v20 }
 0x3e6   :  { %5873 = vmatpush2.bf16.msra.mxu0 %v7641_v19 }
 0x3e7   :  { %5914 = vmatpush2.bf16.msra.mxu1 %v7644_v4  ;;  %5874 = vmatprep.subr.bf16.mxu0 %v7649_v12  ;;  %v7699_v4 = vld [vmem:[%s10443_s7 + $0xba8] ss:$28 sps:$4 sm:$0xff]  }
 0x3e8   :  { %5915 = vmatprep.subr.bf16.mxu1 %v7652_v21 }
 0x3ea   :  { %5875 = vmatpush2.bf16.msra.mxu0 %v7647_v13  ;;  %v7706_v13 = vld [vmem:[%s10443_s7 + $0xb74] ss:$28 sps:$4 sm:$0xff]  }
 0x3eb   :  { %5916 = vmatpush2.bf16.msra.mxu1 %v7650_v9  ;;  %5876 = vmatprep.subr.bf16.mxu0 %v7655_v14  ;;  %v7707_v9 = vld [vmem:[%s10443_s7 + $0x2b8] ss:$28 sps:$4 sm:$0xff]   ;;  %v7704_v14 = vld [vmem:[%s10443_s7 + $0xb70] ss:$28 sps:$4 sm:$0xff]  }
 0x3ec   :  { %5917 = vmatprep.subr.bf16.mxu1 %v7658_v16  ;;  %v7708_v16 = vld [vmem:[%s10443_s7 + $0xf8] ss:$28 sps:$4 sm:$0xff]  }
 0x3ee   :  { %5877 = vmatpush2.bf16.msra.mxu0 %v7653_v17  ;;  %v7711_v17 = vld [vmem:[%s10443_s7 + $0xb3c] ss:$28 sps:$4 sm:$0xff]  }
 0x3ef   :  { %5918 = vmatpush2.bf16.msra.mxu1 %v7656_v18  ;;  %5878 = vmatprep.subr.bf16.mxu0 %v7661_v10  ;;  %v7712_v18 = vld [vmem:[%s10443_s7 + $0x280] ss:$28 sps:$4 sm:$0xff]   ;;  %v7709_v10 = vld [vmem:[%s10443_s7 + $0xb38] ss:$28 sps:$4 sm:$0xff]  }
 0x3f0   :  { %5919 = vmatprep.subr.bf16.mxu1 %v7664_v22  ;;  %v7713_v22 = vld [vmem:[%s10443_s7 + $0xc0] ss:$28 sps:$4 sm:$0xff]  }
 0x3f2   :  { %5879 = vmatpush2.bf16.msra.mxu0 %v7659_v24  ;;  %v7716_v24 = vld [vmem:[%s10443_s7 + $0xb04] ss:$28 sps:$4 sm:$0xff]  }
 0x3f3   :  { %5920 = vmatpush2.bf16.msra.mxu1 %v7662_v28  ;;  %5880 = vmatprep.subr.bf16.mxu0 %v7667_v34  ;;  %v7717_v28 = vld [vmem:[%s10443_s7 + $0x248] ss:$28 sps:$4 sm:$0xff]  }
 0x3f4   :  { %5921 = vmatprep.subr.bf16.mxu1 %v7670_v36  ;;  %v7714_v36 = vld [vmem:[%s10443_s7 + $0xb00] ss:$28 sps:$4 sm:$0xff]  }
 0x3f6   :  { %5881 = vmatpush2.bf16.msra.mxu0 %v7665_v38 }
 0x3f7   :  { %5922 = vmatpush2.bf16.msra.mxu1 %v7668_v39  ;;  %5882 = vmatprep.subr.bf16.mxu0 %v7673_v40  ;;  %v7718_v39 = vld [vmem:[%s10443_s7 + $0x88] ss:$28 sps:$4 sm:$0xff]  }
 0x3f8   :  { %5923 = vmatprep.subr.bf16.mxu1 %v7676_v41  ;;  %v7721_v40 = vld [vmem:[%s10443_s7 + $0xacc] ss:$28 sps:$4 sm:$0xff]  }
 0x3f9   :  { %v7722_v41 = vld [vmem:[%s10443_s7 + $0x210] ss:$28 sps:$4 sm:$0xff]  }
 0x3fa   :  { %5883 = vmatpush2.bf16.msra.mxu0 %v7671_v42  ;;  %v7719_v42 = vld [vmem:[%s10443_s7 + $0xac8] ss:$28 sps:$4 sm:$0xff]  }
 0x3fb   :  { %5924 = vmatpush2.bf16.msra.mxu1 %v7674_v43  ;;  %5884 = vmatprep.subr.bf16.mxu0 %v7679_v44  ;;  %v7723_v43 = vld [vmem:[%s10443_s7 + $0x50] ss:$28 sps:$4 sm:$0xff]  }
 0x3fc   :  { %5925 = vmatprep.subr.bf16.mxu1 %v7682_v45  ;;  %v7726_v44 = vld [vmem:[%s10443_s7 + $0xa94] ss:$28 sps:$4 sm:$0xff]  }
 0x3fd   :  { %v7727_v45 = vld [vmem:[%s10443_s7 + $0x1d8] ss:$28 sps:$4 sm:$0xff]  }
 0x3fe   :  { %5885 = vmatpush2.bf16.msra.mxu0 %v7677_v46  ;;  %v7724_v46 = vld [vmem:[%s10443_s7 + $0xa90] ss:$28 sps:$4 sm:$0xff]  }
 0x3ff   :  { %5926 = vmatpush2.bf16.msra.mxu1 %v7680_v47  ;;  %5886 = vmatprep.subr.bf16.mxu0 %v7685_v49  ;;  %v7728_v47 = vld [vmem:[%s10443_s7 + $0x18] ss:$28 sps:$4 sm:$0xff]  }
 0x400   :  { %5927 = vmatprep.subr.bf16.mxu1 %v7688_v50  ;;  %v7731_v49 = vld [vmem:[%s10443_s7 + $0xddc] ss:$28 sps:$4 sm:$0xff]  }
 0x401   :  { %v7732_v50 = vld [vmem:[%s10443_s7 + $0xa60] ss:$28 sps:$4 sm:$0xff]  }
 0x402   :  { %5887 = vmatpush2.bf16.msra.mxu0 %v7683_v52  ;;  %v7729_v52 = vld [vmem:[%s10443_s7 + $0xdd8] ss:$28 sps:$4 sm:$0xff]  }
 0x403   :  { %5928 = vmatpush2.bf16.msra.mxu1 %v7686_v55  ;;  %5938 = vmatprep.subr.bf16.mxu0 %v7691_v56  ;;  %v7733_v55 = vld [vmem:[%s10443_s7 + $0x8a0] ss:$28 sps:$4 sm:$0xff]  }
 0x404   :  { %6951 = vmatprep.subr.bf16.mxu1 %v7692_v59  ;;  %v7736_v56 = vld [vmem:[%s10443_s7 + $0xda4] ss:$28 sps:$4 sm:$0xff]  }
 0x405   :  { %v10110_v29 = vpop.f32.mrf.mxu1  ;;  %5889 = vmatmul.mubr.bf16.vlgmr.msra.gmra.mxu0 %v9203_v0  ;;  %v5644_v30 = vpop.f32.mrf.mxu0  ;;  %v7737_v59 = vld [vmem:[%s10443_s7 + $0xa28] ss:$28 sps:$4 sm:$0xff]  }
 0x406   :  { %5930 = vmatmul.mubr.bf16.vlgmr.msra.gmra.mxu1 %v9385_v25  ;;  %v5645_v5 = vadd.f32 %v5644_v30, %v5604_v63  ;;  %5939 = vmatpush1.bf16.msra.mxu0 %v7689_v60  ;;  %v7734_v60 = vld [vmem:[%s10443_s7 + $0xda0] ss:$28 sps:$4 sm:$0xff]   ;;  %v7741_v63 = vld [vmem:[%s10443_s7 + $0xd6c] ss:$28 sps:$4 sm:$0xff]   ;;  %v7746_v30 = vld [vmem:[%s10443_s7 + $0xd34] ss:$28 sps:$4 sm:$0xff]  }
 0x407   :  { %5970 = vmatprep.mubr.bf16.mxu0 %v9489_v26  ;;  %6952 = vmatpush3.bf16.msra.mxu1 %v7693_v62  ;;  %v10123_v6 = vpop.f32.mrf.mxu1  ;;  %v5646_v7 = vpop.f32.mrf.mxu0  ;;  %v7738_v62 = vld [vmem:[%s10443_s7 + $0x868] ss:$28 sps:$4 sm:$0xff]  }
 0x408   :  { %7801 = vtanh.f32 %v5645_v5  ;;  %6011 = vmatprep.mubr.bf16.mxu1 %v9007_v33  ;;  %v5647_v37 = vadd.f32 %v5646_v7, %v5606_v3  ;;  %5940 = vmatprep.subr.bf16.mxu0 %v7696_v1  ;;  %v7703_v33 = vld [vmem:[%s10443_s7 + $0x130] ss:$28 sps:$4 sm:$0xff]   ;;  %v7739_v1 = vld [vmem:[%s10443_s7 + $0xd68] ss:$28 sps:$4 sm:$0xff]   ;;  %v7748_v5 = vld [vmem:[%s10443_s7 + $0x7f8] ss:$28 sps:$4 sm:$0xff]  }
 0x409   :  { %v5689_v20 = vpop.f32.mrf.mxu1  ;;  %6953 = vmatprep.subr.bf16.mxu1 %v7697_v2  ;;  %v5648_v19 = vpop.f32.mrf.mxu0  ;;  %v7747_v2 = vld [vmem:[%s10443_s7 + $0x9b8] ss:$28 sps:$4 sm:$0xff]   ;;  %v7744_v3 = vld [vmem:[%s10443_s7 + $0xd30] ss:$28 sps:$4 sm:$0xff]   ;;  %v7752_v7 = vld [vmem:[%s10443_s7 + $0x980] ss:$28 sps:$4 sm:$0xff]  }
 0x40a   :  { %7803 = vtanh.f32 %v5647_v37  ;;  %5941 = vmatpush1.bf16.msra.mxu0 %v7694_v31  ;;  %v7751_v31 = vld [vmem:[%s10443_s7 + $0xcfc] ss:$28 sps:$4 sm:$0xff]   ;;  %v7756_v37 = vld [vmem:[%s10443_s7 + $0xcc4] ss:$28 sps:$4 sm:$0xff]  }
 0x40b   :  { %6954 = vmatpush3.bf16.msra.mxu1 %v7698_v8  ;;  %v5690_v12 = vpop.f32.mrf.mxu1  ;;  %v5649_v21 = vpop.f32.mrf.mxu0  ;;  %5942 = vmatprep.subr.bf16.mxu0 %v7701_v11  ;;  %v7749_v8 = vld [vmem:[%s10443_s7 + $0xcf8] ss:$28 sps:$4 sm:$0xff]   ;;  %v7753_v11 = vld [vmem:[%s10443_s7 + $0x7c0] ss:$28 sps:$4 sm:$0xff]   ;;  %v7758_v19 = vld [vmem:[%s10443_s7 + $0x788] ss:$28 sps:$4 sm:$0xff]  }
 0x40c   :  { %6955 = vmatprep.subr.bf16.mxu1 %v7702_v15  ;;  %v7757_v15 = vld [vmem:[%s10443_s7 + $0x948] ss:$28 sps:$4 sm:$0xff]   ;;  %v7754_v20 = vld [vmem:[%s10443_s7 + $0xcc0] ss:$28 sps:$4 sm:$0xff]   ;;  %v7762_v12 = vld [vmem:[%s10443_s7 + $0x910] ss:$28 sps:$4 sm:$0xff]  }
 0x40d   :  { %v7759_v21 = vld [vmem:[%s10443_s7 + $0xc88] ss:$28 sps:$4 sm:$0xff]  }
 0x40e   :  { %5943 = vmatpush1.bf16.msra.mxu0 %v7699_v4  ;;  %v7761_v4 = vld [vmem:[%s10443_s7 + $0xc8c] ss:$28 sps:$4 sm:$0xff]  }
 0x40f   :  { %6956 = vmatpush3.bf16.msra.mxu1 %v7703_v33  ;;  %5944 = vmatprep.subr.bf16.mxu0 %v7706_v13  ;;  %v7763_v33 = vld [vmem:[%s10443_s7 + $0x750] ss:$28 sps:$4 sm:$0xff]  }
 0x410   :  { %6957 = vmatprep.subr.bf16.mxu1 %v7707_v9  ;;  %v7766_v13 = vld [vmem:[%s10443_s7 + $0xc54] ss:$28 sps:$4 sm:$0xff]  }
 0x411   :  { %v7767_v9 = vld [vmem:[%s10443_s7 + $0x8d8] ss:$28 sps:$4 sm:$0xff]  }
 0x412   :  { %5945 = vmatpush1.bf16.msra.mxu0 %v7704_v14  ;;  %v7764_v14 = vld [vmem:[%s10443_s7 + $0xc50] ss:$28 sps:$4 sm:$0xff]  }
 0x413   :  { %6958 = vmatpush3.bf16.msra.mxu1 %v7708_v16  ;;  %5946 = vmatprep.subr.bf16.mxu0 %v7711_v17  ;;  %v7768_v16 = vld [vmem:[%s10443_s7 + $0x718] ss:$28 sps:$4 sm:$0xff]   ;;  %v7769_v17 = vld [vmem:[%s10443_s7 + $0x6e0] ss:$28 sps:$4 sm:$0xff]  }
 0x414   :  { %6959 = vmatprep.subr.bf16.mxu1 %v7712_v18  ;;  %v7770_v18 = vld [vmem:[%s10443_s7 + $0x520] ss:$28 sps:$4 sm:$0xff]  }
 0x415   :  { %v7802_v34 = vpop.eup %7801 }
 0x416   :  { %6146 = vst [vmem:[#allocation2] sm:$0xff] %v7802_v34  ;;  %5947 = vmatpush1.bf16.msra.mxu0 %v7709_v10  ;;  %v7771_v10 = vld [vmem:[%s10443_s7 + $0x6a8] ss:$28 sps:$4 sm:$0xff]  }
 0x417   :  { %v7804_v38 = vpop.eup %7803  ;;  %6960 = vmatpush3.bf16.msra.mxu1 %v7713_v22  ;;  %5948 = vmatprep.subr.bf16.mxu0 %v7716_v24 }
 0x418   :  { %6147 = vst [vmem:[#allocation2 + $0x8] sm:$0xff] %v7804_v38  ;;  %6961 = vmatprep.subr.bf16.mxu1 %v7717_v28  ;;  %v7772_v28 = vld [vmem:[%s10443_s7 + $0x4e8] ss:$28 sps:$4 sm:$0xff]   ;;  %v7773_v38 = vld [vmem:[%s10443_s7 + $0x670] ss:$28 sps:$4 sm:$0xff]  }
 0x41a   :  { %5949 = vmatpush1.bf16.msra.mxu0 %v7714_v36 }
 0x41b   :  { %6962 = vmatpush3.bf16.msra.mxu1 %v7718_v39  ;;  %5950 = vmatprep.subr.bf16.mxu0 %v7721_v40 }
 0x41c   :  { %6963 = vmatprep.subr.bf16.mxu1 %v7722_v41 }
 0x41e   :  { %5951 = vmatpush1.bf16.msra.mxu0 %v7719_v42 }
 0x41f   :  { %6964 = vmatpush3.bf16.msra.mxu1 %v7723_v43  ;;  %5952 = vmatprep.subr.bf16.mxu0 %v7726_v44  ;;  %v7776_v43 = vld [vmem:[%s10443_s7 + $0x478] ss:$28 sps:$4 sm:$0xff]   ;;  %v7777_v44 = vld [vmem:[%s10443_s7 + $0x600] ss:$28 sps:$4 sm:$0xff]  }
 0x420   :  { %6965 = vmatprep.subr.bf16.mxu1 %v7727_v45  ;;  %v7778_v45 = vld [vmem:[%s10443_s7 + $0x440] ss:$28 sps:$4 sm:$0xff]  }
 0x422   :  { %5953 = vmatpush1.bf16.msra.mxu0 %v7724_v46  ;;  %v7779_v46 = vld [vmem:[%s10443_s7 + $0x5c8] ss:$28 sps:$4 sm:$0xff]  }
 0x423   :  { %6966 = vmatpush3.bf16.msra.mxu1 %v7728_v47  ;;  %5954 = vmatprep.subr.bf16.mxu0 %v7731_v49  ;;  %v7780_v47 = vld [vmem:[%s10443_s7 + $0x408] ss:$28 sps:$4 sm:$0xff]   ;;  %v7781_v49 = vld [vmem:[%s10443_s7 + $0x590] ss:$28 sps:$4 sm:$0xff]  }
 0x424   :  { %6995 = vmatprep.subr.bf16.mxu1 %v7732_v50  ;;  %v7782_v50 = vld [vmem:[%s10443_s7 + $0x3d0] ss:$28 sps:$4 sm:$0xff]  }
 0x426   :  { %6012 = vmatmul.mubr.bf16.vlgmr.msra.gmra.mxu1 %v9172_v35  ;;  %5955 = vmatpush2.bf16.msra.mxu0 %v7729_v52  ;;  %v7742_v35 = vld [vmem:[%s10443_s7 + $0x9f0] ss:$28 sps:$4 sm:$0xff]   ;;  %v7783_v52 = vld [vmem:[%s10443_s7 + $0x558] ss:$28 sps:$4 sm:$0xff]  }
 0x427   :  { %6996 = vmatpush3.bf16.msra.mxu1 %v7733_v55  ;;  %6091 = vmatprep.mubr.bf16.mxu1 %v9380_v23  ;;  %v7743_v23 = vld [vmem:[%s10443_s7 + $0x830] ss:$28 sps:$4 sm:$0xff]   ;;  %v7784_v55 = vld [vmem:[%s10443_s7 + $0x398] ss:$28 sps:$4 sm:$0xff]  }
 0x428   :  { %5956 = vmatprep.subr.bf16.mxu0 %v7736_v56  ;;  %6997 = vmatprep.subr.bf16.mxu1 %v7737_v59  ;;  %v7785_v56 = vld [vmem:[%s10443_s7 + $0xde0] ss:$28 sps:$4 sm:$0xff]  }
 0x429   :  { %v7786_v59 = vld [vmem:[%s10443_s7 + $0xc20] ss:$28 sps:$4 sm:$0xff]  }
 0x42a   :  { %5957 = vmatpush2.bf16.msra.mxu0 %v7734_v60  ;;  %v7787_v60 = vld [vmem:[%s10443_s7 + $0xda8] ss:$28 sps:$4 sm:$0xff]  }
 0x42b   :  { %6998 = vmatpush3.bf16.msra.mxu1 %v7738_v62  ;;  %5958 = vmatprep.subr.bf16.mxu0 %v7741_v63  ;;  %v7788_v62 = vld [vmem:[%s10443_s7 + $0xbe8] ss:$28 sps:$4 sm:$0xff]   ;;  %v7789_v63 = vld [vmem:[%s10443_s7 + $0xd70] ss:$28 sps:$4 sm:$0xff]  }
 0x42c   :  { %6999 = vmatprep.subr.bf16.mxu1 %v7742_v35  ;;  %v7790_v35 = vld [vmem:[%s10443_s7 + $0xbb0] ss:$28 sps:$4 sm:$0xff]  }
 0x42e   :  { %5959 = vmatpush2.bf16.msra.mxu0 %v7739_v1  ;;  %v7793_v1 = vld [vmem:[%s10443_s7 + $0xd00] ss:$28 sps:$4 sm:$0xff]  }
 0x42f   :  { %7000 = vmatpush3.bf16.msra.mxu1 %v7743_v23  ;;  %5960 = vmatprep.subr.bf16.mxu0 %v7746_v30  ;;  %v7794_v23 = vld [vmem:[%s10443_s7 + $0xb40] ss:$28 sps:$4 sm:$0xff]   ;;  %v7795_v30 = vld [vmem:[%s10443_s7 + $0xcc8] ss:$28 sps:$4 sm:$0xff]  }
 0x430   :  { %7001 = vmatprep.subr.bf16.mxu1 %v7747_v2  ;;  %v7796_v2 = vld [vmem:[%s10443_s7 + $0xb08] ss:$28 sps:$4 sm:$0xff]  }
 0x432   :  { %5961 = vmatpush2.bf16.msra.mxu0 %v7744_v3  ;;  %v7797_v3 = vld [vmem:[%s10443_s7 + $0xc90] ss:$28 sps:$4 sm:$0xff]  }
 0x433   :  { %7002 = vmatpush3.bf16.msra.mxu1 %v7748_v5  ;;  %5962 = vmatprep.subr.bf16.mxu0 %v7751_v31  ;;  %v3159_v5 = vrot.slane %v9681_v48, %v8351_v51  ;;  %v7798_v31 = vld [vmem:[%s10443_s7 + $0xad0] ss:$28 sps:$4 sm:$0xff]   ;;  %v7800_v48 = vld [vmem:[%s10443_s7 + $0xa98] ss:$28 sps:$4 sm:$0xff]  }
 0x434   :  { %7003 = vmatprep.subr.bf16.mxu1 %v7752_v7  ;;  %v7799_v7 = vld [vmem:[%s10443_s7 + $0xc58] ss:$28 sps:$4 sm:$0xff]  }
 0x435   :  { %v5686_v51 = vadd.f32 %v10110_v29, %v3159_v5 }
 0x436   :  { %5963 = vmatpush2.bf16.msra.mxu0 %v7749_v8  ;;  %v10410_v8 = vld [vmem:[%s10444_s8] sm:$0xff] }
 0x437   :  { %7004 = vmatpush3.bf16.msra.mxu1 %v7753_v11  ;;  %5964 = vmatprep.subr.bf16.mxu0 %v7756_v37  ;;  %v3163_v11 = vrot.slane %v10410_v8, %v8357_v53 }
 0x438   :  { %7005 = vmatprep.subr.bf16.mxu1 %v7757_v15 }
 0x439   :  { %v5688_v37 = vadd.f32 %v10123_v6, %v3163_v11 }
 0x43a   :  { %5965 = vmatpush2.bf16.msra.mxu0 %v7754_v20 }
 0x43b   :  { %7006 = vmatpush3.bf16.msra.mxu1 %v7758_v19  ;;  %5966 = vmatprep.subr.bf16.mxu0 %v7761_v4 }
 0x43c   :  { %7007 = vmatprep.subr.bf16.mxu1 %v7762_v12 }
 0x43e   :  { %5967 = vmatpush2.bf16.msra.mxu0 %v7759_v21 }
 0x43f   :  { %7008 = vmatpush3.bf16.msra.mxu1 %v7763_v33  ;;  %5968 = vmatprep.subr.bf16.mxu0 %v7766_v13 }
 0x440   :  { %7009 = vmatprep.subr.bf16.mxu1 %v7767_v9 }
 0x442   :  { %5969 = vmatpush2.bf16.msra.mxu0 %v7764_v14 }
 0x443   :  { %7010 = vmatpush3.bf16.msra.mxu1 %v7768_v16  ;;  %6973 = vmatprep.subr.bf16.mxu0 %v7769_v17 }
 0x445   :  { %v10308_v22 = vpop.f32.mrf.mxu0  ;;  %v10310_v24 = vpop.f32.mrf.mxu1  ;;  %5971 = vmatmul.mubr.bf16.vlgmr.msra.gmra.mxu0 %v9497_v32 }
 0x446   :  { %6092 = vmatmul.mubr.bf16.vlgmr.msra.gmra.mxu1 %v9385_v25  ;;  %6974 = vmatpush3.bf16.msra.mxu0 %v7770_v18  ;;  %v7774_v25 = vld [vmem:[%s10443_s7 + $0x4b0] ss:$28 sps:$4 sm:$0xff]   ;;  %v5727_v15 = vadd.f32 %v10308_v22, %v5686_v51 }
 0x447   :  { %6051 = vmatprep.mubr.bf16.mxu0 %v9195_v61  ;;  %v10318_v34 = vpop.f32.mrf.mxu0  ;;  %v10320_v36 = vpop.f32.mrf.mxu1  ;;  %6975 = vmatprep.subr.bf16.mxu0 %v7771_v10  ;;  %v7775_v61 = vld [vmem:[%s10443_s7 + $0x638] ss:$28 sps:$4 sm:$0xff]  }
 0x448   :  { %v5729_v20 = vadd.f32 %v10318_v34, %v5688_v37  ;;  %v5768_v19 = vadd.f32 %v10310_v24, %v5727_v15 }
 0x449   :  { %v5730_v39 = vpop.f32.mrf.mxu0  ;;  %v5771_v40 = vpop.f32.mrf.mxu1 }
 0x44a   :  { %6976 = vmatpush3.bf16.msra.mxu0 %v7772_v28  ;;  %v5770_v53 = vadd.f32 %v10320_v36, %v5729_v20 }
 0x44b   :  { %v5731_v41 = vpop.f32.mrf.mxu0  ;;  %v5772_v42 = vpop.f32.mrf.mxu1  ;;  %6977 = vmatprep.subr.bf16.mxu0 %v7773_v38 }
 0x44e   :  { %6978 = vmatpush3.bf16.msra.mxu0 %v7774_v25 }
 0x44f   :  { %6979 = vmatprep.subr.bf16.mxu0 %v7775_v61  ;;  %v3167_v61 = vrot.slane %v10410_v8, %v972_v54 }
 0x452   :  { %6980 = vmatpush3.bf16.msra.mxu0 %v7776_v43  ;;  %v3171_v43 = vrot.slane %v10410_v8, %v976_v58 }
 0x453   :  { %6981 = vmatprep.subr.bf16.mxu0 %v7777_v44 }
 0x456   :  { %6982 = vmatpush3.bf16.msra.mxu0 %v7778_v45 }
 0x457   :  { %6983 = vmatprep.subr.bf16.mxu0 %v7779_v46 }
 0x45a   :  { %6984 = vmatpush3.bf16.msra.mxu0 %v7780_v47 }
 0x45b   :  { %6985 = vmatprep.subr.bf16.mxu0 %v7781_v49 }
 0x45e   :  { %6986 = vmatpush3.bf16.msra.mxu0 %v7782_v50 }
 0x45f   :  { %6987 = vmatprep.subr.bf16.mxu0 %v7783_v52 }
 0x462   :  { %6988 = vmatpush3.bf16.msra.mxu0 %v7784_v55 }
 0x463   :  { %7017 = vmatprep.subr.bf16.mxu0 %v7785_v56 }
 0x465   :  { %6052 = vmatmul.mubr.bf16.vlgmr.msra.gmra.mxu0 %v9203_v0  ;;  %v7791_v0 = vld [vmem:[%s10443_s7 + $0xd38] ss:$28 sps:$4 sm:$0xff]  }
 0x466   :  { %7018 = vmatpush3.bf16.msra.mxu0 %v7786_v59  ;;  %6131 = vmatprep.mubr.bf16.mxu0 %v9489_v26  ;;  %v7792_v26 = vld [vmem:[%s10443_s7 + $0xb78] ss:$28 sps:$4 sm:$0xff]   ;;  %s7839_s7 = smov [#allocation2]  }
 0x467   :  { %7019 = vmatprep.subr.bf16.mxu0 %v7787_v60  ;;  %s6159_s8 = sshll.u32 %s7839_s7, 4  ;;  %s6160_s8 = int_to_ptr.vmem [resolvable:$true] %s6159_s8 }
 0x468   :  { %s7816_s20 = scalar_lea.vmem %s6160_s8, 896  ;;  %p7821_p1 = scmp.lt.s32.totalorder %s6160_s8, %s6160_s8 }
 0x469   :  { %p7817_p0 = scmp.ne.s32.totalorder %s6160_s8, %s7816_s20  ;;  %p7822_p2 = scmp.lt.s32.totalorder %s7816_s20, %s7816_s20 }
 0x46a   :  { %7020 = vmatpush3.bf16.msra.mxu0 %v7788_v62 }
 0x46b   :  { %7021 = vmatprep.subr.bf16.mxu0 %v7789_v63  ;;  %p7823_p3 = por %p7822_p2, %p7821_p1 }
 0x46d   :  { %p7824_p4 = pnand %p7823_p3, %p7817_p0 }
 0x46e   :  { %7022 = vmatpush3.bf16.msra.mxu0 %v7790_v35 }
 0x46f   :  { %7023 = vmatprep.subr.bf16.mxu0 %v7791_v0 }
 0x472   :  { %7024 = vmatpush3.bf16.msra.mxu0 %v7792_v26 }
 0x473   :  { %7025 = vmatprep.subr.bf16.mxu0 %v7793_v1 }
 0x476   :  { %7026 = vmatpush3.bf16.msra.mxu0 %v7794_v23 }
 0x477   :  { %7027 = vmatprep.subr.bf16.mxu0 %v7795_v30 }
 0x47a   :  { %7028 = vmatpush3.bf16.msra.mxu0 %v7796_v2 }
 0x47b   :  { %7029 = vmatprep.subr.bf16.mxu0 %v7797_v3  ;;  %v3175_v3 = vrot.slane %v10410_v8, %v980_v57 }
 0x47e   :  { %7030 = vmatpush3.bf16.msra.mxu0 %v7798_v31 }
 0x47f   :  { %7031 = vmatprep.subr.bf16.mxu0 %v7799_v7 }
 0x482   :  { %7032 = vmatpush3.bf16.msra.mxu0 %v7800_v48 }
 0x485   :  { %v5808_v4 = vpop.f32.mrf.mxu0  ;;  %6132 = vmatmul.mubr.bf16.vlgmr.msra.gmra.mxu0 %v9497_v32 }
 0x486   :  { %v5809_v29 = vadd.f32 %v5808_v4, %v5768_v19  ;;  %v5849_v12 = vpop.f32.mrf.mxu1 }
 0x487   :  { %v5810_v21 = vpop.f32.mrf.mxu0  ;;  %v5850_v44 = vadd.f32 %v5849_v12, %v3167_v61 }
 0x488   :  { %7805 = vtanh.f32 %v5809_v29  ;;  %v5811_v33 = vadd.f32 %v5810_v21, %v5770_v53  ;;  %v5851_v13 = vpop.f32.mrf.mxu1 }
 0x489   :  { %v5812_v9 = vpop.f32.mrf.mxu0  ;;  %v5852_v45 = vadd.f32 %v5851_v13, %v3171_v43 }
 0x48a   :  { %7807 = vtanh.f32 %v5811_v33  ;;  %v5853_v6 = vpop.f32.mrf.mxu1 }
 0x48b   :  { %v5813_v14 = vpop.f32.mrf.mxu0 }
 0x48c   :  { %v5854_v16 = vpop.f32.mrf.mxu1 }
 0x495   :  { %v7806_v17 = vpop.eup %7805 }
 0x496   :  { %6148 = vst [vmem:[#allocation2 + $0x10] sm:$0xff] %v7806_v17 }
 0x497   :  { %v7808_v18 = vpop.eup %7807 }
 0x498   :  { %6149 = vst [vmem:[#allocation2 + $0x18] sm:$0xff] %v7808_v18 }
 0x4c5   :  { %v5890_v10 = vpop.f32.mrf.mxu0 }
 0x4c6   :  { %v5931_v22 = vpop.f32.mrf.mxu1  ;;  %v5891_v46 = vadd.f32 %v5890_v10, %v5850_v44 }
 0x4c7   :  { %v5892_v32 = vpop.f32.mrf.mxu0 }
 0x4c8   :  { %v5933_v24 = vpop.f32.mrf.mxu1  ;;  %v5893_v47 = vadd.f32 %v5892_v32, %v5852_v45  ;;  %v5932_v49 = vadd.f32 %v5931_v22, %v5891_v46 }
 0x4c9   :  { %v5894_v28 = vpop.f32.mrf.mxu0 }
 0x4ca   :  { %v5935_v34 = vpop.f32.mrf.mxu1  ;;  %v5934_v52 = vadd.f32 %v5933_v24, %v5893_v47 }
 0x4cb   :  { %v5895_v36 = vpop.f32.mrf.mxu0 }
 0x4cc   :  { %v5936_v38 = vpop.f32.mrf.mxu1 }
 0x4e6   :  { %v6967_v39 = vpop.f32.mrf.mxu1 }
 0x4e8   :  { %v6968_v40 = vpop.f32.mrf.mxu1 }
 0x4e9   :  { %v6969_v25 = vadd.f32 %v6968_v40, %v6967_v39 }
 0x4ea   :  { %v6970_v41 = vpop.f32.mrf.mxu1 }
 0x4eb   :  { %v6014_v31 = vadd.f32 %v6969_v25, %v3175_v3 }
 0x4ec   :  { %v6971_v42 = vpop.f32.mrf.mxu1 }
 0x505   :  { %v5972_v50 = vpop.f32.mrf.mxu0 }
 0x506   :  { %v5973_v55 = vadd.f32 %v5972_v50, %v5932_v49  ;;  %v7011_v56 = vpop.f32.mrf.mxu1 }
 0x507   :  { %v5974_v59 = vpop.f32.mrf.mxu0 }
 0x508   :  { %7809 = vtanh.f32 %v5973_v55  ;;  %v5975_v60 = vadd.f32 %v5974_v59, %v5934_v52  ;;  %v7012_v62 = vpop.f32.mrf.mxu1 }
 0x509   :  { %v5976_v63 = vpop.f32.mrf.mxu0  ;;  %v7013_v51 = vadd.f32 %v7012_v62, %v7011_v56 }
 0x50a   :  { %7811 = vtanh.f32 %v5975_v60  ;;  %v7014_v54 = vpop.f32.mrf.mxu1 }
 0x50b   :  { %v5977_v35 = vpop.f32.mrf.mxu0 }
 0x50c   :  { %v7015_v0 = vpop.f32.mrf.mxu1 }
 0x515   :  { %v7810_v26 = vpop.eup %7809 }
 0x516   :  { %6150 = vst [vmem:[#allocation2 + $0x20] sm:$0xff] %v7810_v26 }
 0x517   :  { %v7812_v58 = vpop.eup %7811 }
 0x518   :  { %6151 = vst [vmem:[#allocation2 + $0x28] sm:$0xff] %v7812_v58 }
 0x525   :  { %v6989_v1 = vpop.f32.mrf.mxu0 }
 0x527   :  { %v6990_v23 = vpop.f32.mrf.mxu0 }
 0x528   :  { %v6991_v5 = vadd.f32 %v6990_v23, %v6989_v1 }
 0x529   :  { %v6992_v30 = vpop.f32.mrf.mxu0 }
 0x52a   :  { %v6054_v7 = vadd.f32 %v6991_v5, %v6014_v31 }
 0x52b   :  { %v6993_v2 = vpop.f32.mrf.mxu0 }
 0x52c   :  { %v6094_v37 = vadd.f32 %v7013_v51, %v6054_v7 }
 0x545   :  { %v7033_v11 = vpop.f32.mrf.mxu0 }
 0x547   :  { %v7034_v48 = vpop.f32.mrf.mxu0 }
 0x548   :  { %v7035_v15 = vadd.f32 %v7034_v48, %v7033_v11 }
 0x549   :  { %v7036_v20 = vpop.f32.mrf.mxu0 }
 0x54a   :  { %v6134_v19 = vadd.f32 %v7035_v15, %v6094_v37 }
 0x54b   :  { %v7037_v4 = vpop.f32.mrf.mxu0 }
 0x54c   :  { %7813 = vtanh.f32 %v6134_v19 }
 0x559   :  { %v7814_v53 = vpop.eup %7813 }
 0x55a   :  { %6152 = vst [vmem:[#allocation2 + $0x30] sm:$0xff] %v7814_v53 }
 0x55b   :  { %7827 = shalt.err (!%p7824_p4)
}
 0x55c   :  { %6162 = dma.vmem_to_hbm [thread:$0]  %s6160_s8, 896, %s10445_s9, [#allocation3]  }
 0x55d   :  { %7836 = dma.done.wait [#allocation3], 896  }
 0x55e   :  { %7837 = vsyncadd [#allocation3], 4294966400 }
 0x55f   :  { %6166 = vsyncpa [#allocation3], 1 }

</bundles_post_ra>
